<compile_context>
chip_gen: v6e
topology: v6e:2x2x1
jax: 0.10.0
libtpu: 0.0.40
codegen_flags: <defaults>
</compile_context>

<pallas_src>
import functools

import jax
import jax.numpy as jnp
from jax.experimental import pallas as pl
from jax.experimental.pallas import tpu as pltpu

HIDDEN = 128          # LSTM hidden size
LSTM_IN = 162         # LSTM input size
X_DIM = 373           # extra features concatenated with last LSTM output
MLP_DIM = 512
OUT_PAD = 128         # dense6 output padded to a full lane width


def _lstm_mlp_kernel(z_ref, x_ref,
                     w_ih_ref, w_hh_ref, b_lstm_ref,
                     w1h_ref, w1x_ref, b1_ref,
                     w2_ref, b2_ref, w3_ref, b3_ref,
                     w4_ref, b4_ref, w5_ref, b5_ref,
                     w6_ref, b6_ref,
                     out_ref, ih_ref, *, acts_bf16):
    T, TB, _ = z_ref.shape            # static block shape: (T, TILE_B, 162)
    H = HIDDEN

    # --- LSTM input projection hoisted out of the recurrence -----------------
    # z block is already bf16; (T, TB, 162) -> (T*TB, 162) is a layout-free
    # merge (TB is a multiple of 16).  Result staged in a VMEM scratch.
    z_flat = z_ref[...].reshape(T * TB, LSTM_IN)
    ih_ref[...] = (jnp.dot(z_flat, w_ih_ref[...],
                           preferred_element_type=jnp.float32)
                   + b_lstm_ref[...])                       # bias = b_ih + b_hh

    # --- LSTM recurrence ------------------------------------------------------
    # Gate columns pre-permuted to [i, f, o, g]: one sigmoid over 3H lanes,
    # one tanh over H lanes per step.
    w_hh = w_hh_ref[...]              # (128, 4H) bf16, pre-transposed
    h = jnp.zeros((TB, H), jnp.float32)
    c = jnp.zeros((TB, H), jnp.float32)
    # TODO(synk): optionally keep w_hh MXU-resident across steps with
    # pltpu.matmul_push_rhs / matmul_acc_lhs instead of re-pushing the RHS.
    for t in range(T):                # T is small (static) -> full unroll
        gates = (ih_ref[t * TB:(t + 1) * TB, :]
                 + jnp.dot(h.astype(jnp.bfloat16), w_hh,
                           preferred_element_type=jnp.float32))   # (TB, 4H)
        sig = jax.nn.sigmoid(gates[:, :3 * H])
        i_g = sig[:, 0 * H:1 * H]
        f_g = sig[:, 1 * H:2 * H]
        o_g = sig[:, 2 * H:3 * H]
        g_g = jnp.tanh(gates[:, 3 * H:])
        c = f_g * c + i_g * g_g
        h = o_g * jnp.tanh(c)
    # lstm_out[:, -1, :] is exactly the final hidden state h.

    def act(y):
        if acts_bf16:                 # bf16 VALU exists (v6e/v7x)
            return jnp.maximum(y.astype(jnp.bfloat16), 0.0)
        return jnp.maximum(y, 0.0)    # v5e and older: keep ReLU in f32

    # --- MLP; dense1 split to avoid the unaligned 501-wide concat ------------
    v = act(jnp.dot(h.astype(jnp.bfloat16), w1h_ref[...],
                    preferred_element_type=jnp.float32)
            + jnp.dot(x_ref[...], w1x_ref[...],
                      preferred_element_type=jnp.float32)
            + b1_ref[...])

    def dense(val, w_ref, b_ref, relu=True):
        y = (jnp.dot(val.astype(jnp.bfloat16), w_ref[...],
                     preferred_element_type=jnp.float32) + b_ref[...])
        return act(y) if relu else y

    v = dense(v, w2_ref, b2_ref)
    v = dense(v, w3_ref, b3_ref)
    v = dense(v, w4_ref, b4_ref)
    v = dense(v, w5_ref, b5_ref)
    v = dense(v, w6_ref, b6_ref, relu=False)   # (TB, 128); only column 0 is real
    out_ref[...] = v.astype(out_ref.dtype)


# --------------------------------------------------------------------------- #
# Parameters
# --------------------------------------------------------------------------- #
def init_params(key):
    """Deterministic synthetic parameters with PyTorch module shapes/init."""
    def uniform(k, shape, fan_in):
        bound = 1.0 / jnp.sqrt(jnp.float32(fan_in))
        return jax.random.uniform(k, shape, jnp.float32, -bound, bound)

    keys = jax.random.split(key, 16)
    p = {}
    # LSTM(162, 128): weight_ih (4H, 162), weight_hh (4H, 128), biases (4H,)
    p["w_ih"] = uniform(keys[0], (4 * HIDDEN, LSTM_IN), HIDDEN)
    p["w_hh"] = uniform(keys[1], (4 * HIDDEN, HIDDEN), HIDDEN)
    p["b_ih"] = uniform(keys[2], (1, 4 * HIDDEN), HIDDEN)
    p["b_hh"] = uniform(keys[3], (1, 4 * HIDDEN), HIDDEN)
    # dense1..dense6 (PyTorch Linear: weight (out, in), bias (out,))
    dims = [(X_DIM + HIDDEN, MLP_DIM), (MLP_DIM, MLP_DIM), (MLP_DIM, MLP_DIM),
            (MLP_DIM, MLP_DIM), (MLP_DIM, MLP_DIM), (MLP_DIM, 1)]
    for idx, (din, dout) in enumerate(dims, start=1):
        p[f"w{idx}"] = uniform(keys[2 * idx + 2], (dout, din), din)
        p[f"b{idx}"] = uniform(keys[2 * idx + 3], (1, dout), din)
    return p


def _permute_gate_rows(w):
    """PyTorch gate order [i, f, g, o] -> kernel order [i, f, o, g] (rows)."""
    H = HIDDEN
    return jnp.concatenate([w[:H], w[H:2 * H], w[3 * H:], w[2 * H:3 * H]], axis=0)


def _permute_gate_cols(b):
    """Same permutation along the column axis for a (1, 4H) bias."""
    H = HIDDEN
    return jnp.concatenate([b[:, :H], b[:, H:2 * H], b[:, 3 * H:],
                            b[:, 2 * H:3 * H]], axis=1)


def prepare_params(p):
    """PyTorch-layout params -> kernel layout: pre-transposed bf16 weights,
    combined + gate-permuted LSTM bias, dense1 split, dense6 lane-padded."""
    kp = {}
    kp["w_ih_t"] = _permute_gate_rows(p["w_ih"]).T.astype(jnp.bfloat16)  # (162, 512)
    kp["w_hh_t"] = _permute_gate_rows(p["w_hh"]).T.astype(jnp.bfloat16)  # (128, 512)
    kp["b_lstm"] = _permute_gate_cols(p["b_ih"] + p["b_hh"]).astype(jnp.float32)
    w1_t = p["w1"].T                                                     # (501, 512)
    kp["w1h_t"] = w1_t[:HIDDEN, :].astype(jnp.bfloat16)                  # (128, 512)
    kp["w1x_t"] = w1_t[HIDDEN:, :].astype(jnp.bfloat16)                  # (373, 512)
    kp["b1"] = p["b1"].astype(jnp.float32)
    for i in range(2, 6):
        kp[f"w{i}_t"] = p[f"w{i}"].T.astype(jnp.bfloat16)                # (512, 512)
        kp[f"b{i}"] = p[f"b{i}"].astype(jnp.float32)
    kp["w6_t"] = jnp.pad(p["w6"].T, ((0, 0), (0, OUT_PAD - 1))
                         ).astype(jnp.bfloat16)                          # (512, 128)
    kp["b6"] = jnp.pad(p["b6"], ((0, 0), (0, OUT_PAD - 1))
                       ).astype(jnp.float32)                             # (1, 128)
    return kp


# --------------------------------------------------------------------------- #
# Wrapper
# --------------------------------------------------------------------------- #
_WEIGHT_NAMES = ["w_ih_t", "w_hh_t", "b_lstm",
                 "w1h_t", "w1x_t", "b1",
                 "w2_t", "b2", "w3_t", "b3",
                 "w4_t", "b4", "w5_t", "b5",
                 "w6_t", "b6"]


def _round_up(n, m):
    return ((n + m - 1) // m) * m


def _device_defaults():
    """Generation-aware defaults: tile size and whether ReLU runs in bf16."""
    kind = ""
    try:
        kind = jax.devices()[0].device_kind.lower()
    except Exception:
        pass
    small_mxu = any(v in kind for v in ("v2", "v3", "v4", "v5"))
    tile_b = 128 if small_mxu else 256     # fill the 256-wide MXU on v6e/v7x
    acts_bf16 = not small_mxu              # bf16 VALU only on v6e/v7x
    return tile_b, acts_bf16


@functools.partial(jax.jit, static_argnames=("tile_b", "acts_bf16"))
def landlord_lstm_values(z, x, kparams, tile_b=256, acts_bf16=True):
    """Returns the `values` tensor of shape (B, 1) computed in one Pallas kernel."""
    B, T, _ = z.shape
    tile_b = max(16, _round_up(tile_b, 16))

    # Pad batch to a multiple of 16 (bf16 sublane tile) and pick the batch tile.
    b_pad = _round_up(B, 16)
    if b_pad <= tile_b:
        tile_b = b_pad
        # A single grid step idles the second TensorCore on v7x: split a big
        # enough batch into two "parallel" tiles.
        if b_pad >= 128 and b_pad % 32 == 0:
            tile_b = b_pad // 2
    else:
        b_pad = _round_up(B, tile_b)
    num_tiles = b_pad // tile_b

    # bf16 inputs: halves the dominant z DMA; the cast, time-major transpose
    # and (optional) batch pad fuse into one HBM pass under jit.
    # TODO(synk): store z time-major bf16 upstream to drop this pass entirely.
    z_tbf = jnp.transpose(z.astype(jnp.bfloat16), (1, 0, 2))   # (T, B, 162)
    x_bf = x.astype(jnp.bfloat16)
    if b_pad != B:
        z_tbf = jnp.pad(z_tbf, ((0, 0), (0, b_pad - B), (0, 0)))
        x_bf = jnp.pad(x_bf, ((0, b_pad - B), (0, 0)))

    weights = [kparams[n] for n in _WEIGHT_NAMES]

    in_specs = [
        pl.BlockSpec((T, tile_b, LSTM_IN), lambda b: (0, b, 0)),   # z (bf16)
        pl.BlockSpec((tile_b, X_DIM), lambda b: (b, 0)),           # x (bf16)
    ]
    # Weights: full-array blocks with a constant index map -> VMEM-resident
    # across all batch tiles; single-buffered to avoid 2x VMEM reservation.
    for w in weights:
        in_specs.append(pl.BlockSpec(w.shape, lambda b: (0, 0),
                                     pipeline_mode=pl.Buffered(1)))

    out = pl.pallas_call(
        functools.partial(_lstm_mlp_kernel, acts_bf16=acts_bf16),
        out_shape=jax.ShapeDtypeStruct((b_pad, OUT_PAD), jnp.float32),
        grid=(num_tiles,),
        in_specs=in_specs,
        out_specs=pl.BlockSpec((tile_b, OUT_PAD), lambda b: (b, 0)),
        scratch_shapes=[pltpu.VMEM((T * tile_b, 4 * HIDDEN), jnp.float32)],
        compiler_params=pltpu.CompilerParams(
            dimension_semantics=("parallel",),     # megacore split on v7x
            vmem_limit_bytes=48 << 20,
        ),
    )(z_tbf, x_bf, *weights)

    return out[:B, :1]                             # (B, 1)


def landlord_lstm_forward(z, x, kparams, return_value=False):
    tile_b, acts_bf16 = _device_defaults()
    values = landlord_lstm_values(z, x, kparams, tile_b=tile_b,
                                  acts_bf16=acts_bf16)
    if return_value:
        return dict(values=values)
    # Greedy action.  TODO(synk): the exp_epsilon random-exploration branch uses
    # host-side np.random control flow; it is not a kernel op and stays outside.
    action = jnp.argmax(values, axis=0)[0]
    return dict(action=action)


# --------------------------------------------------------------------------- #
# Pure-JAX f32 reference (matches the PyTorch module semantics)
# --------------------------------------------------------------------------- #
def reference_forward(z, x, p):
    H = HIDDEN
    B, T, _ = z.shape
    bias = (p["b_ih"] + p["b_hh"])[0]
    h = jnp.zeros((B, H), jnp.float32)
    c = jnp.zeros((B, H), jnp.float32)
    for t in range(T):
        g = z[:, t, :] @ p["w_ih"].T + h @ p["w_hh"].T + bias
        i = jax.nn.sigmoid(g[:, 0 * H:1 * H])
        f = jax.nn.sigmoid(g[:, 1 * H:2 * H])
        gg = jnp.tanh(g[:, 2 * H:3 * H])
        o = jax.nn.sigmoid(g[:, 3 * H:4 * H])
        c = f * c + i * gg
        h = o * jnp.tanh(c)
    v = jnp.concatenate([h, x], axis=-1)
    for idx in range(1, 6):
        v = jnp.maximum(v @ p[f"w{idx}"].T + p[f"b{idx}"][0], 0.0)
    return v @ p["w6"].T + p["b6"][0]              # (B, 1)


if __name__ == "__main__":
    key = jax.random.PRNGKey(0)
    k_params, k_z, k_x = jax.random.split(key, 3)

    B, T = 4, 8
    torch_style_params = init_params(k_params)
    kparams = prepare_params(torch_style_params)
    z = jax.random.normal(k_z, (B, T, LSTM_IN), jnp.float32)
    x = jax.random.normal(k_x, (B, X_DIM), jnp.float32)

    out = landlord_lstm_forward(z, x, kparams, return_value=True)
    values = jax.block_until_ready(out["values"])
    assert values.shape == (B, 1) and values.dtype == jnp.float32

    ref = jax.block_until_ready(reference_forward(z, x, torch_style_params))
    max_err = float(jnp.max(jnp.abs(values - ref)))
    assert max_err < 0.1, f"kernel vs f32 reference max abs err {max_err}"

    act_out = landlord_lstm_forward(z, x, kparams, return_value=False)
    action = jax.block_until_ready(act_out["action"])
    assert action.shape == ()

    print("KERNEL_OK")
</pallas_src>

<mosaic_0001>
module attributes {stable_mosaic.version = 11 : i64} {
  func.func @_lstm_mlp_kernel(%arg0: i32, %arg1: memref<8x16x162xbf16, #tpu.memory_space<vmem>>, %arg2: memref<16x373xbf16, #tpu.memory_space<vmem>>, %arg3: memref<162x512xbf16, #tpu.memory_space<vmem>>, %arg4: memref<128x512xbf16, #tpu.memory_space<vmem>>, %arg5: memref<1x512xf32, #tpu.memory_space<vmem>>, %arg6: memref<128x512xbf16, #tpu.memory_space<vmem>>, %arg7: memref<373x512xbf16, #tpu.memory_space<vmem>>, %arg8: memref<1x512xf32, #tpu.memory_space<vmem>>, %arg9: memref<512x512xbf16, #tpu.memory_space<vmem>>, %arg10: memref<1x512xf32, #tpu.memory_space<vmem>>, %arg11: memref<512x512xbf16, #tpu.memory_space<vmem>>, %arg12: memref<1x512xf32, #tpu.memory_space<vmem>>, %arg13: memref<512x512xbf16, #tpu.memory_space<vmem>>, %arg14: memref<1x512xf32, #tpu.memory_space<vmem>>, %arg15: memref<512x512xbf16, #tpu.memory_space<vmem>>, %arg16: memref<1x512xf32, #tpu.memory_space<vmem>>, %arg17: memref<512x128xbf16, #tpu.memory_space<vmem>>, %arg18: memref<1x128xf32, #tpu.memory_space<vmem>>, %arg19: memref<16x128xf32, #tpu.memory_space<vmem>>, %arg20: memref<128x512xf32, #tpu.memory_space<vmem>>) attributes {dimension_semantics = [#tpu.dimension_semantics<parallel>], iteration_bounds = array<i64: 1>, scalar_prefetch = 0 : i64, scratch_operands = 1 : i64, tpu.core_type = #tpu.core_type<tc>, window_params = [{transform_indices = @transform_0, window_bounds = array<i64: 8, 16, 162>}, {transform_indices = @transform_1, window_bounds = array<i64: 16, 373>}, {pipeline_mode = #tpu.pipeline_mode<synchronous>, transform_indices = @transform_2, window_bounds = array<i64: 162, 512>}, {pipeline_mode = #tpu.pipeline_mode<synchronous>, transform_indices = @transform_3, window_bounds = array<i64: 128, 512>}, {pipeline_mode = #tpu.pipeline_mode<synchronous>, transform_indices = @transform_4, window_bounds = array<i64: 1, 512>}, {pipeline_mode = #tpu.pipeline_mode<synchronous>, transform_indices = @transform_5, window_bounds = array<i64: 128, 512>}, {pipeline_mode = #tpu.pipeline_mode<synchronous>, transform_indices = @transform_6, window_bounds = array<i64: 373, 512>}, {pipeline_mode = #tpu.pipeline_mode<synchronous>, transform_indices = @transform_7, window_bounds = array<i64: 1, 512>}, {pipeline_mode = #tpu.pipeline_mode<synchronous>, transform_indices = @transform_8, window_bounds = array<i64: 512, 512>}, {pipeline_mode = #tpu.pipeline_mode<synchronous>, transform_indices = @transform_9, window_bounds = array<i64: 1, 512>}, {pipeline_mode = #tpu.pipeline_mode<synchronous>, transform_indices = @transform_10, window_bounds = array<i64: 512, 512>}, {pipeline_mode = #tpu.pipeline_mode<synchronous>, transform_indices = @transform_11, window_bounds = array<i64: 1, 512>}, {pipeline_mode = #tpu.pipeline_mode<synchronous>, transform_indices = @transform_12, window_bounds = array<i64: 512, 512>}, {pipeline_mode = #tpu.pipeline_mode<synchronous>, transform_indices = @transform_13, window_bounds = array<i64: 1, 512>}, {pipeline_mode = #tpu.pipeline_mode<synchronous>, transform_indices = @transform_14, window_bounds = array<i64: 512, 512>}, {pipeline_mode = #tpu.pipeline_mode<synchronous>, transform_indices = @transform_15, window_bounds = array<i64: 1, 512>}, {pipeline_mode = #tpu.pipeline_mode<synchronous>, transform_indices = @transform_16, window_bounds = array<i64: 512, 128>}, {pipeline_mode = #tpu.pipeline_mode<synchronous>, transform_indices = @transform_17, window_bounds = array<i64: 1, 128>}, {transform_indices = @transform_18, window_bounds = array<i64: 16, 128>}]} {
    %c0 = arith.constant 0 : index
    %c0_0 = arith.constant 0 : index
    %c0_1 = arith.constant 0 : index
    %0 = vector.load %arg1[%c0, %c0_0, %c0_1] : memref<8x16x162xbf16, #tpu.memory_space<vmem>>, vector<8x16x162xbf16>
    %1 = vector.shape_cast %0 : vector<8x16x162xbf16> to vector<128x162xbf16>
    %c0_2 = arith.constant 0 : index
    %c0_3 = arith.constant 0 : index
    %2 = vector.load %arg3[%c0_2, %c0_3] : memref<162x512xbf16, #tpu.memory_space<vmem>>, vector<162x512xbf16>
    %cst = arith.constant dense<0.000000e+00> : vector<128x512xf32>
    %3 = tpu.matmul %1, %2, %cst {dimension_numbers = #tpu.dot_dimension_numbers<[1], [0], [0], [1], [0, 0, 1, 1], [], []>} : vector<128x162xbf16>, vector<162x512xbf16>, vector<128x512xf32> -> vector<128x512xf32>
    %c0_4 = arith.constant 0 : index
    %c0_5 = arith.constant 0 : index
    %4 = vector.load %arg5[%c0_4, %c0_5] : memref<1x512xf32, #tpu.memory_space<vmem>>, vector<1x512xf32>
    %5 = vector.broadcast %4 : vector<1x512xf32> to vector<128x512xf32>
    %6 = arith.addf %3, %5 : vector<128x512xf32>
    %c0_6 = arith.constant 0 : index
    %c0_7 = arith.constant 0 : index
    %7 = vector.load %arg20[%c0_6, %c0_7] : memref<128x512xf32, #tpu.memory_space<vmem>>, vector<128x512xf32>
    tpu.vector_store %arg20[%c0_6, %c0_7], %6 {strides = array<i32>} : memref<128x512xf32, #tpu.memory_space<vmem>>, vector<128x512xf32>,
    %c0_8 = arith.constant 0 : index
    %c0_9 = arith.constant 0 : index
    %8 = vector.load %arg4[%c0_8, %c0_9] : memref<128x512xbf16, #tpu.memory_space<vmem>>, vector<128x512xbf16>
    %cst_10 = arith.constant 0.000000e+00 : f32
    %9 = vector.broadcast %cst_10 : f32 to vector<16x128xf32>
    %cst_11 = arith.constant 0.000000e+00 : f32
    %10 = vector.broadcast %cst_11 : f32 to vector<16x128xf32>
    %c0_12 = arith.constant 0 : index
    %c0_13 = arith.constant 0 : index
    %11 = vector.load %arg20[%c0_12, %c0_13] : memref<128x512xf32, #tpu.memory_space<vmem>>, vector<16x512xf32>
    %12 = arith.truncf %9 : vector<16x128xf32> to vector<16x128xbf16>
    %cst_14 = arith.constant dense<0.000000e+00> : vector<16x512xf32>
    %13 = tpu.matmul %12, %8, %cst_14 {dimension_numbers = #tpu.dot_dimension_numbers<[1], [0], [0], [1], [0, 0, 1, 1], [], []>} : vector<16x128xbf16>, vector<128x512xbf16>, vector<16x512xf32> -> vector<16x512xf32>
    %14 = arith.addf %11, %13 : vector<16x512xf32>
    %15 = vector.extract_strided_slice %14 {offsets = [0, 0], sizes = [16, 384], strides = [1, 1]} : vector<16x512xf32> to vector<16x384xf32>
    %16 = arith.negf %15 : vector<16x384xf32>
    %17 = math.exp %16 : vector<16x384xf32>
    %cst_15 = arith.constant 1.000000e+00 : f32
    %18 = vector.broadcast %cst_15 : f32 to vector<16x384xf32>
    %19 = arith.addf %18, %17 : vector<16x384xf32>
    %20 = arith.divf %18, %19 : vector<16x384xf32>
    %21 = vector.extract_strided_slice %20 {offsets = [0, 0], sizes = [16, 128], strides = [1, 1]} : vector<16x384xf32> to vector<16x128xf32>
    %22 = vector.extract_strided_slice %20 {offsets = [0, 128], sizes = [16, 128], strides = [1, 1]} : vector<16x384xf32> to vector<16x128xf32>
    %23 = vector.extract_strided_slice %20 {offsets = [0, 256], sizes = [16, 128], strides = [1, 1]} : vector<16x384xf32> to vector<16x128xf32>
    %24 = vector.extract_strided_slice %14 {offsets = [0, 384], sizes = [16, 128], strides = [1, 1]} : vector<16x512xf32> to vector<16x128xf32>
    %25 = math.tanh %24 : vector<16x128xf32>
    %26 = arith.mulf %22, %10 : vector<16x128xf32>
    %27 = arith.mulf %21, %25 : vector<16x128xf32>
    %28 = arith.addf %26, %27 : vector<16x128xf32>
    %29 = math.tanh %28 : vector<16x128xf32>
    %30 = arith.mulf %23, %29 : vector<16x128xf32>
    %c16 = arith.constant 16 : index
    %c0_16 = arith.constant 0 : index
    %31 = vector.load %arg20[%c16, %c0_16] : memref<128x512xf32, #tpu.memory_space<vmem>>, vector<16x512xf32>
    %32 = arith.truncf %30 : vector<16x128xf32> to vector<16x128xbf16>
    %cst_17 = arith.constant dense<0.000000e+00> : vector<16x512xf32>
    %33 = tpu.matmul %32, %8, %cst_17 {dimension_numbers = #tpu.dot_dimension_numbers<[1], [0], [0], [1], [0, 0, 1, 1], [], []>} : vector<16x128xbf16>, vector<128x512xbf16>, vector<16x512xf32> -> vector<16x512xf32>
    %34 = arith.addf %31, %33 : vector<16x512xf32>
    %35 = vector.extract_strided_slice %34 {offsets = [0, 0], sizes = [16, 384], strides = [1, 1]} : vector<16x512xf32> to vector<16x384xf32>
    %36 = arith.negf %35 : vector<16x384xf32>
    %37 = math.exp %36 : vector<16x384xf32>
    %cst_18 = arith.constant 1.000000e+00 : f32
    %38 = vector.broadcast %cst_18 : f32 to vector<16x384xf32>
    %39 = arith.addf %38, %37 : vector<16x384xf32>
    %40 = arith.divf %38, %39 : vector<16x384xf32>
    %41 = vector.extract_strided_slice %40 {offsets = [0, 0], sizes = [16, 128], strides = [1, 1]} : vector<16x384xf32> to vector<16x128xf32>
    %42 = vector.extract_strided_slice %40 {offsets = [0, 128], sizes = [16, 128], strides = [1, 1]} : vector<16x384xf32> to vector<16x128xf32>
    %43 = vector.extract_strided_slice %40 {offsets = [0, 256], sizes = [16, 128], strides = [1, 1]} : vector<16x384xf32> to vector<16x128xf32>
    %44 = vector.extract_strided_slice %34 {offsets = [0, 384], sizes = [16, 128], strides = [1, 1]} : vector<16x512xf32> to vector<16x128xf32>
    %45 = math.tanh %44 : vector<16x128xf32>
    %46 = arith.mulf %42, %28 : vector<16x128xf32>
    %47 = arith.mulf %41, %45 : vector<16x128xf32>
    %48 = arith.addf %46, %47 : vector<16x128xf32>
    %49 = math.tanh %48 : vector<16x128xf32>
    %50 = arith.mulf %43, %49 : vector<16x128xf32>
    %c32 = arith.constant 32 : index
    %c0_19 = arith.constant 0 : index
    %51 = vector.load %arg20[%c32, %c0_19] : memref<128x512xf32, #tpu.memory_space<vmem>>, vector<16x512xf32>
    %52 = arith.truncf %50 : vector<16x128xf32> to vector<16x128xbf16>
    %cst_20 = arith.constant dense<0.000000e+00> : vector<16x512xf32>
    %53 = tpu.matmul %52, %8, %cst_20 {dimension_numbers = #tpu.dot_dimension_numbers<[1], [0], [0], [1], [0, 0, 1, 1], [], []>} : vector<16x128xbf16>, vector<128x512xbf16>, vector<16x512xf32> -> vector<16x512xf32>
    %54 = arith.addf %51, %53 : vector<16x512xf32>
    %55 = vector.extract_strided_slice %54 {offsets = [0, 0], sizes = [16, 384], strides = [1, 1]} : vector<16x512xf32> to vector<16x384xf32>
    %56 = arith.negf %55 : vector<16x384xf32>
    %57 = math.exp %56 : vector<16x384xf32>
    %cst_21 = arith.constant 1.000000e+00 : f32
    %58 = vector.broadcast %cst_21 : f32 to vector<16x384xf32>
    %59 = arith.addf %58, %57 : vector<16x384xf32>
    %60 = arith.divf %58, %59 : vector<16x384xf32>
    %61 = vector.extract_strided_slice %60 {offsets = [0, 0], sizes = [16, 128], strides = [1, 1]} : vector<16x384xf32> to vector<16x128xf32>
    %62 = vector.extract_strided_slice %60 {offsets = [0, 128], sizes = [16, 128], strides = [1, 1]} : vector<16x384xf32> to vector<16x128xf32>
    %63 = vector.extract_strided_slice %60 {offsets = [0, 256], sizes = [16, 128], strides = [1, 1]} : vector<16x384xf32> to vector<16x128xf32>
    %64 = vector.extract_strided_slice %54 {offsets = [0, 384], sizes = [16, 128], strides = [1, 1]} : vector<16x512xf32> to vector<16x128xf32>
    %65 = math.tanh %64 : vector<16x128xf32>
    %66 = arith.mulf %62, %48 : vector<16x128xf32>
    %67 = arith.mulf %61, %65 : vector<16x128xf32>
    %68 = arith.addf %66, %67 : vector<16x128xf32>
    %69 = math.tanh %68 : vector<16x128xf32>
    %70 = arith.mulf %63, %69 : vector<16x128xf32>
    %c48 = arith.constant 48 : index
    %c0_22 = arith.constant 0 : index
    %71 = vector.load %arg20[%c48, %c0_22] : memref<128x512xf32, #tpu.memory_space<vmem>>, vector<16x512xf32>
    %72 = arith.truncf %70 : vector<16x128xf32> to vector<16x128xbf16>
    %cst_23 = arith.constant dense<0.000000e+00> : vector<16x512xf32>
    %73 = tpu.matmul %72, %8, %cst_23 {dimension_numbers = #tpu.dot_dimension_numbers<[1], [0], [0], [1], [0, 0, 1, 1], [], []>} : vector<16x128xbf16>, vector<128x512xbf16>, vector<16x512xf32> -> vector<16x512xf32>
    %74 = arith.addf %71, %73 : vector<16x512xf32>
    %75 = vector.extract_strided_slice %74 {offsets = [0, 0], sizes = [16, 384], strides = [1, 1]} : vector<16x512xf32> to vector<16x384xf32>
    %76 = arith.negf %75 : vector<16x384xf32>
    %77 = math.exp %76 : vector<16x384xf32>
    %cst_24 = arith.constant 1.000000e+00 : f32
    %78 = vector.broadcast %cst_24 : f32 to vector<16x384xf32>
    %79 = arith.addf %78, %77 : vector<16x384xf32>
    %80 = arith.divf %78, %79 : vector<16x384xf32>
    %81 = vector.extract_strided_slice %80 {offsets = [0, 0], sizes = [16, 128], strides = [1, 1]} : vector<16x384xf32> to vector<16x128xf32>
    %82 = vector.extract_strided_slice %80 {offsets = [0, 128], sizes = [16, 128], strides = [1, 1]} : vector<16x384xf32> to vector<16x128xf32>
    %83 = vector.extract_strided_slice %80 {offsets = [0, 256], sizes = [16, 128], strides = [1, 1]} : vector<16x384xf32> to vector<16x128xf32>
    %84 = vector.extract_strided_slice %74 {offsets = [0, 384], sizes = [16, 128], strides = [1, 1]} : vector<16x512xf32> to vector<16x128xf32>
    %85 = math.tanh %84 : vector<16x128xf32>
    %86 = arith.mulf %82, %68 : vector<16x128xf32>
    %87 = arith.mulf %81, %85 : vector<16x128xf32>
    %88 = arith.addf %86, %87 : vector<16x128xf32>
    %89 = math.tanh %88 : vector<16x128xf32>
    %90 = arith.mulf %83, %89 : vector<16x128xf32>
    %c64 = arith.constant 64 : index
    %c0_25 = arith.constant 0 : index
    %91 = vector.load %arg20[%c64, %c0_25] : memref<128x512xf32, #tpu.memory_space<vmem>>, vector<16x512xf32>
    %92 = arith.truncf %90 : vector<16x128xf32> to vector<16x128xbf16>
    %cst_26 = arith.constant dense<0.000000e+00> : vector<16x512xf32>
    %93 = tpu.matmul %92, %8, %cst_26 {dimension_numbers = #tpu.dot_dimension_numbers<[1], [0], [0], [1], [0, 0, 1, 1], [], []>} : vector<16x128xbf16>, vector<128x512xbf16>, vector<16x512xf32> -> vector<16x512xf32>
    %94 = arith.addf %91, %93 : vector<16x512xf32>
    %95 = vector.extract_strided_slice %94 {offsets = [0, 0], sizes = [16, 384], strides = [1, 1]} : vector<16x512xf32> to vector<16x384xf32>
    %96 = arith.negf %95 : vector<16x384xf32>
    %97 = math.exp %96 : vector<16x384xf32>
    %cst_27 = arith.constant 1.000000e+00 : f32
    %98 = vector.broadcast %cst_27 : f32 to vector<16x384xf32>
    %99 = arith.addf %98, %97 : vector<16x384xf32>
    %100 = arith.divf %98, %99 : vector<16x384xf32>
    %101 = vector.extract_strided_slice %100 {offsets = [0, 0], sizes = [16, 128], strides = [1, 1]} : vector<16x384xf32> to vector<16x128xf32>
    %102 = vector.extract_strided_slice %100 {offsets = [0, 128], sizes = [16, 128], strides = [1, 1]} : vector<16x384xf32> to vector<16x128xf32>
    %103 = vector.extract_strided_slice %100 {offsets = [0, 256], sizes = [16, 128], strides = [1, 1]} : vector<16x384xf32> to vector<16x128xf32>
    %104 = vector.extract_strided_slice %94 {offsets = [0, 384], sizes = [16, 128], strides = [1, 1]} : vector<16x512xf32> to vector<16x128xf32>
    %105 = math.tanh %104 : vector<16x128xf32>
    %106 = arith.mulf %102, %88 : vector<16x128xf32>
    %107 = arith.mulf %101, %105 : vector<16x128xf32>
    %108 = arith.addf %106, %107 : vector<16x128xf32>
    %109 = math.tanh %108 : vector<16x128xf32>
    %110 = arith.mulf %103, %109 : vector<16x128xf32>
    %c80 = arith.constant 80 : index
    %c0_28 = arith.constant 0 : index
    %111 = vector.load %arg20[%c80, %c0_28] : memref<128x512xf32, #tpu.memory_space<vmem>>, vector<16x512xf32>
    %112 = arith.truncf %110 : vector<16x128xf32> to vector<16x128xbf16>
    %cst_29 = arith.constant dense<0.000000e+00> : vector<16x512xf32>
    %113 = tpu.matmul %112, %8, %cst_29 {dimension_numbers = #tpu.dot_dimension_numbers<[1], [0], [0], [1], [0, 0, 1, 1], [], []>} : vector<16x128xbf16>, vector<128x512xbf16>, vector<16x512xf32> -> vector<16x512xf32>
    %114 = arith.addf %111, %113 : vector<16x512xf32>
    %115 = vector.extract_strided_slice %114 {offsets = [0, 0], sizes = [16, 384], strides = [1, 1]} : vector<16x512xf32> to vector<16x384xf32>
    %116 = arith.negf %115 : vector<16x384xf32>
    %117 = math.exp %116 : vector<16x384xf32>
    %cst_30 = arith.constant 1.000000e+00 : f32
    %118 = vector.broadcast %cst_30 : f32 to vector<16x384xf32>
    %119 = arith.addf %118, %117 : vector<16x384xf32>
    %120 = arith.divf %118, %119 : vector<16x384xf32>
    %121 = vector.extract_strided_slice %120 {offsets = [0, 0], sizes = [16, 128], strides = [1, 1]} : vector<16x384xf32> to vector<16x128xf32>
    %122 = vector.extract_strided_slice %120 {offsets = [0, 128], sizes = [16, 128], strides = [1, 1]} : vector<16x384xf32> to vector<16x128xf32>
    %123 = vector.extract_strided_slice %120 {offsets = [0, 256], sizes = [16, 128], strides = [1, 1]} : vector<16x384xf32> to vector<16x128xf32>
    %124 = vector.extract_strided_slice %114 {offsets = [0, 384], sizes = [16, 128], strides = [1, 1]} : vector<16x512xf32> to vector<16x128xf32>
    %125 = math.tanh %124 : vector<16x128xf32>
    %126 = arith.mulf %122, %108 : vector<16x128xf32>
    %127 = arith.mulf %121, %125 : vector<16x128xf32>
    %128 = arith.addf %126, %127 : vector<16x128xf32>
    %129 = math.tanh %128 : vector<16x128xf32>
    %130 = arith.mulf %123, %129 : vector<16x128xf32>
    %c96 = arith.constant 96 : index
    %c0_31 = arith.constant 0 : index
    %131 = vector.load %arg20[%c96, %c0_31] : memref<128x512xf32, #tpu.memory_space<vmem>>, vector<16x512xf32>
    %132 = arith.truncf %130 : vector<16x128xf32> to vector<16x128xbf16>
    %cst_32 = arith.constant dense<0.000000e+00> : vector<16x512xf32>
    %133 = tpu.matmul %132, %8, %cst_32 {dimension_numbers = #tpu.dot_dimension_numbers<[1], [0], [0], [1], [0, 0, 1, 1], [], []>} : vector<16x128xbf16>, vector<128x512xbf16>, vector<16x512xf32> -> vector<16x512xf32>
    %134 = arith.addf %131, %133 : vector<16x512xf32>
    %135 = vector.extract_strided_slice %134 {offsets = [0, 0], sizes = [16, 384], strides = [1, 1]} : vector<16x512xf32> to vector<16x384xf32>
    %136 = arith.negf %135 : vector<16x384xf32>
    %137 = math.exp %136 : vector<16x384xf32>
    %cst_33 = arith.constant 1.000000e+00 : f32
    %138 = vector.broadcast %cst_33 : f32 to vector<16x384xf32>
    %139 = arith.addf %138, %137 : vector<16x384xf32>
    %140 = arith.divf %138, %139 : vector<16x384xf32>
    %141 = vector.extract_strided_slice %140 {offsets = [0, 0], sizes = [16, 128], strides = [1, 1]} : vector<16x384xf32> to vector<16x128xf32>
    %142 = vector.extract_strided_slice %140 {offsets = [0, 128], sizes = [16, 128], strides = [1, 1]} : vector<16x384xf32> to vector<16x128xf32>
    %143 = vector.extract_strided_slice %140 {offsets = [0, 256], sizes = [16, 128], strides = [1, 1]} : vector<16x384xf32> to vector<16x128xf32>
    %144 = vector.extract_strided_slice %134 {offsets = [0, 384], sizes = [16, 128], strides = [1, 1]} : vector<16x512xf32> to vector<16x128xf32>
    %145 = math.tanh %144 : vector<16x128xf32>
    %146 = arith.mulf %142, %128 : vector<16x128xf32>
    %147 = arith.mulf %141, %145 : vector<16x128xf32>
    %148 = arith.addf %146, %147 : vector<16x128xf32>
    %149 = math.tanh %148 : vector<16x128xf32>
    %150 = arith.mulf %143, %149 : vector<16x128xf32>
    %c112 = arith.constant 112 : index
    %c0_34 = arith.constant 0 : index
    %151 = vector.load %arg20[%c112, %c0_34] : memref<128x512xf32, #tpu.memory_space<vmem>>, vector<16x512xf32>
    %152 = arith.truncf %150 : vector<16x128xf32> to vector<16x128xbf16>
    %cst_35 = arith.constant dense<0.000000e+00> : vector<16x512xf32>
    %153 = tpu.matmul %152, %8, %cst_35 {dimension_numbers = #tpu.dot_dimension_numbers<[1], [0], [0], [1], [0, 0, 1, 1], [], []>} : vector<16x128xbf16>, vector<128x512xbf16>, vector<16x512xf32> -> vector<16x512xf32>
    %154 = arith.addf %151, %153 : vector<16x512xf32>
    %155 = vector.extract_strided_slice %154 {offsets = [0, 0], sizes = [16, 384], strides = [1, 1]} : vector<16x512xf32> to vector<16x384xf32>
    %156 = arith.negf %155 : vector<16x384xf32>
    %157 = math.exp %156 : vector<16x384xf32>
    %cst_36 = arith.constant 1.000000e+00 : f32
    %158 = vector.broadcast %cst_36 : f32 to vector<16x384xf32>
    %159 = arith.addf %158, %157 : vector<16x384xf32>
    %160 = arith.divf %158, %159 : vector<16x384xf32>
    %161 = vector.extract_strided_slice %160 {offsets = [0, 0], sizes = [16, 128], strides = [1, 1]} : vector<16x384xf32> to vector<16x128xf32>
    %162 = vector.extract_strided_slice %160 {offsets = [0, 128], sizes = [16, 128], strides = [1, 1]} : vector<16x384xf32> to vector<16x128xf32>
    %163 = vector.extract_strided_slice %160 {offsets = [0, 256], sizes = [16, 128], strides = [1, 1]} : vector<16x384xf32> to vector<16x128xf32>
    %164 = vector.extract_strided_slice %154 {offsets = [0, 384], sizes = [16, 128], strides = [1, 1]} : vector<16x512xf32> to vector<16x128xf32>
    %165 = math.tanh %164 : vector<16x128xf32>
    %166 = arith.mulf %162, %148 : vector<16x128xf32>
    %167 = arith.mulf %161, %165 : vector<16x128xf32>
    %168 = arith.addf %166, %167 : vector<16x128xf32>
    %169 = math.tanh %168 : vector<16x128xf32>
    %170 = arith.mulf %163, %169 : vector<16x128xf32>
    %171 = arith.truncf %170 : vector<16x128xf32> to vector<16x128xbf16>
    %c0_37 = arith.constant 0 : index
    %c0_38 = arith.constant 0 : index
    %172 = vector.load %arg6[%c0_37, %c0_38] : memref<128x512xbf16, #tpu.memory_space<vmem>>, vector<128x512xbf16>
    %cst_39 = arith.constant dense<0.000000e+00> : vector<16x512xf32>
    %173 = tpu.matmul %171, %172, %cst_39 {dimension_numbers = #tpu.dot_dimension_numbers<[1], [0], [0], [1], [0, 0, 1, 1], [], []>} : vector<16x128xbf16>, vector<128x512xbf16>, vector<16x512xf32> -> vector<16x512xf32>
    %c0_40 = arith.constant 0 : index
    %c0_41 = arith.constant 0 : index
    %174 = vector.load %arg2[%c0_40, %c0_41] : memref<16x373xbf16, #tpu.memory_space<vmem>>, vector<16x373xbf16>
    %c0_42 = arith.constant 0 : index
    %c0_43 = arith.constant 0 : index
    %175 = vector.load %arg7[%c0_42, %c0_43] : memref<373x512xbf16, #tpu.memory_space<vmem>>, vector<373x512xbf16>
    %cst_44 = arith.constant dense<0.000000e+00> : vector<16x512xf32>
    %176 = tpu.matmul %174, %175, %cst_44 {dimension_numbers = #tpu.dot_dimension_numbers<[1], [0], [0], [1], [0, 0, 1, 1], [], []>} : vector<16x373xbf16>, vector<373x512xbf16>, vector<16x512xf32> -> vector<16x512xf32>
    %177 = arith.addf %173, %176 : vector<16x512xf32>
    %c0_45 = arith.constant 0 : index
    %c0_46 = arith.constant 0 : index
    %178 = vector.load %arg8[%c0_45, %c0_46] : memref<1x512xf32, #tpu.memory_space<vmem>>, vector<1x512xf32>
    %179 = vector.broadcast %178 : vector<1x512xf32> to vector<16x512xf32>
    %180 = arith.addf %177, %179 : vector<16x512xf32>
    %181 = arith.truncf %180 : vector<16x512xf32> to vector<16x512xbf16>
    %cst_47 = arith.constant 0.000000e+00 : bf16
    %182 = vector.broadcast %cst_47 : bf16 to vector<16x512xbf16>
    %183 = arith.maximumf %181, %182 : vector<16x512xbf16>
    %c0_48 = arith.constant 0 : index
    %c0_49 = arith.constant 0 : index
    %184 = vector.load %arg9[%c0_48, %c0_49] : memref<512x512xbf16, #tpu.memory_space<vmem>>, vector<512x512xbf16>
    %cst_50 = arith.constant dense<0.000000e+00> : vector<16x512xf32>
    %185 = tpu.matmul %183, %184, %cst_50 {dimension_numbers = #tpu.dot_dimension_numbers<[1], [0], [0], [1], [0, 0, 1, 1], [], []>} : vector<16x512xbf16>, vector<512x512xbf16>, vector<16x512xf32> -> vector<16x512xf32>
    %c0_51 = arith.constant 0 : index
    %c0_52 = arith.constant 0 : index
    %186 = vector.load %arg10[%c0_51, %c0_52] : memref<1x512xf32, #tpu.memory_space<vmem>>, vector<1x512xf32>
    %187 = vector.broadcast %186 : vector<1x512xf32> to vector<16x512xf32>
    %188 = arith.addf %185, %187 : vector<16x512xf32>
    %189 = arith.truncf %188 : vector<16x512xf32> to vector<16x512xbf16>
    %cst_53 = arith.constant 0.000000e+00 : bf16
    %190 = vector.broadcast %cst_53 : bf16 to vector<16x512xbf16>
    %191 = arith.maximumf %189, %190 : vector<16x512xbf16>
    %c0_54 = arith.constant 0 : index
    %c0_55 = arith.constant 0 : index
    %192 = vector.load %arg11[%c0_54, %c0_55] : memref<512x512xbf16, #tpu.memory_space<vmem>>, vector<512x512xbf16>
    %cst_56 = arith.constant dense<0.000000e+00> : vector<16x512xf32>
    %193 = tpu.matmul %191, %192, %cst_56 {dimension_numbers = #tpu.dot_dimension_numbers<[1], [0], [0], [1], [0, 0, 1, 1], [], []>} : vector<16x512xbf16>, vector<512x512xbf16>, vector<16x512xf32> -> vector<16x512xf32>
    %c0_57 = arith.constant 0 : index
    %c0_58 = arith.constant 0 : index
    %194 = vector.load %arg12[%c0_57, %c0_58] : memref<1x512xf32, #tpu.memory_space<vmem>>, vector<1x512xf32>
    %195 = vector.broadcast %194 : vector<1x512xf32> to vector<16x512xf32>
    %196 = arith.addf %193, %195 : vector<16x512xf32>
    %197 = arith.truncf %196 : vector<16x512xf32> to vector<16x512xbf16>
    %cst_59 = arith.constant 0.000000e+00 : bf16
    %198 = vector.broadcast %cst_59 : bf16 to vector<16x512xbf16>
    %199 = arith.maximumf %197, %198 : vector<16x512xbf16>
    %c0_60 = arith.constant 0 : index
    %c0_61 = arith.constant 0 : index
    %200 = vector.load %arg13[%c0_60, %c0_61] : memref<512x512xbf16, #tpu.memory_space<vmem>>, vector<512x512xbf16>
    %cst_62 = arith.constant dense<0.000000e+00> : vector<16x512xf32>
    %201 = tpu.matmul %199, %200, %cst_62 {dimension_numbers = #tpu.dot_dimension_numbers<[1], [0], [0], [1], [0, 0, 1, 1], [], []>} : vector<16x512xbf16>, vector<512x512xbf16>, vector<16x512xf32> -> vector<16x512xf32>
    %c0_63 = arith.constant 0 : index
    %c0_64 = arith.constant 0 : index
    %202 = vector.load %arg14[%c0_63, %c0_64] : memref<1x512xf32, #tpu.memory_space<vmem>>, vector<1x512xf32>
    %203 = vector.broadcast %202 : vector<1x512xf32> to vector<16x512xf32>
    %204 = arith.addf %201, %203 : vector<16x512xf32>
    %205 = arith.truncf %204 : vector<16x512xf32> to vector<16x512xbf16>
    %cst_65 = arith.constant 0.000000e+00 : bf16
    %206 = vector.broadcast %cst_65 : bf16 to vector<16x512xbf16>
    %207 = arith.maximumf %205, %206 : vector<16x512xbf16>
    %c0_66 = arith.constant 0 : index
    %c0_67 = arith.constant 0 : index
    %208 = vector.load %arg15[%c0_66, %c0_67] : memref<512x512xbf16, #tpu.memory_space<vmem>>, vector<512x512xbf16>
    %cst_68 = arith.constant dense<0.000000e+00> : vector<16x512xf32>
    %209 = tpu.matmul %207, %208, %cst_68 {dimension_numbers = #tpu.dot_dimension_numbers<[1], [0], [0], [1], [0, 0, 1, 1], [], []>} : vector<16x512xbf16>, vector<512x512xbf16>, vector<16x512xf32> -> vector<16x512xf32>
    %c0_69 = arith.constant 0 : index
    %c0_70 = arith.constant 0 : index
    %210 = vector.load %arg16[%c0_69, %c0_70] : memref<1x512xf32, #tpu.memory_space<vmem>>, vector<1x512xf32>
    %211 = vector.broadcast %210 : vector<1x512xf32> to vector<16x512xf32>
    %212 = arith.addf %209, %211 : vector<16x512xf32>
    %213 = arith.truncf %212 : vector<16x512xf32> to vector<16x512xbf16>
    %cst_71 = arith.constant 0.000000e+00 : bf16
    %214 = vector.broadcast %cst_71 : bf16 to vector<16x512xbf16>
    %215 = arith.maximumf %213, %214 : vector<16x512xbf16>
    %c0_72 = arith.constant 0 : index
    %c0_73 = arith.constant 0 : index
    %216 = vector.load %arg17[%c0_72, %c0_73] : memref<512x128xbf16, #tpu.memory_space<vmem>>, vector<512x128xbf16>
    %cst_74 = arith.constant dense<0.000000e+00> : vector<16x128xf32>
    %217 = tpu.matmul %215, %216, %cst_74 {dimension_numbers = #tpu.dot_dimension_numbers<[1], [0], [0], [1], [0, 0, 1, 1], [], []>} : vector<16x512xbf16>, vector<512x128xbf16>, vector<16x128xf32> -> vector<16x128xf32>
    %c0_75 = arith.constant 0 : index
    %c0_76 = arith.constant 0 : index
    %218 = vector.load %arg18[%c0_75, %c0_76] : memref<1x128xf32, #tpu.memory_space<vmem>>, vector<1x128xf32>
    %219 = vector.broadcast %218 : vector<1x128xf32> to vector<16x128xf32>
    %220 = arith.addf %217, %219 : vector<16x128xf32>
    %c0_77 = arith.constant 0 : index
    %c0_78 = arith.constant 0 : index
    %221 = vector.load %arg19[%c0_77, %c0_78] : memref<16x128xf32, #tpu.memory_space<vmem>>, vector<16x128xf32>
    tpu.vector_store %arg19[%c0_77, %c0_78], %220 {strides = array<i32>} : memref<16x128xf32, #tpu.memory_space<vmem>>, vector<16x128xf32>,
    return
  }
  func.func @transform_0(%arg0: i32) -> (i32, i32, i32) {
    %c0_i32 = arith.constant 0 : i32
    %c0_i32_0 = arith.constant 0 : i32
    %c0_i32_1 = arith.constant 0 : i32
    return %c0_i32, %arg0, %c0_i32_0 : i32, i32, i32
  }
  func.func @transform_1(%arg0: i32) -> (i32, i32) {
    %c0_i32 = arith.constant 0 : i32
    %c0_i32_0 = arith.constant 0 : i32
    return %arg0, %c0_i32 : i32, i32
  }
  func.func @transform_2(%arg0: i32) -> (i32, i32) {
    %c0_i32 = arith.constant 0 : i32
    %c0_i32_0 = arith.constant 0 : i32
    %c0_i32_1 = arith.constant 0 : i32
    return %c0_i32, %c0_i32_0 : i32, i32
  }
  func.func @transform_3(%arg0: i32) -> (i32, i32) {
    %c0_i32 = arith.constant 0 : i32
    %c0_i32_0 = arith.constant 0 : i32
    %c0_i32_1 = arith.constant 0 : i32
    return %c0_i32, %c0_i32_0 : i32, i32
  }
  func.func @transform_4(%arg0: i32) -> (i32, i32) {
    %c0_i32 = arith.constant 0 : i32
    %c0_i32_0 = arith.constant 0 : i32
    %c0_i32_1 = arith.constant 0 : i32
    return %c0_i32, %c0_i32_0 : i32, i32
  }
  func.func @transform_5(%arg0: i32) -> (i32, i32) {
    %c0_i32 = arith.constant 0 : i32
    %c0_i32_0 = arith.constant 0 : i32
    %c0_i32_1 = arith.constant 0 : i32
    return %c0_i32, %c0_i32_0 : i32, i32
  }
  func.func @transform_6(%arg0: i32) -> (i32, i32) {
    %c0_i32 = arith.constant 0 : i32
    %c0_i32_0 = arith.constant 0 : i32
    %c0_i32_1 = arith.constant 0 : i32
    return %c0_i32, %c0_i32_0 : i32, i32
  }
  func.func @transform_7(%arg0: i32) -> (i32, i32) {
    %c0_i32 = arith.constant 0 : i32
    %c0_i32_0 = arith.constant 0 : i32
    %c0_i32_1 = arith.constant 0 : i32
    return %c0_i32, %c0_i32_0 : i32, i32
  }
  func.func @transform_8(%arg0: i32) -> (i32, i32) {
    %c0_i32 = arith.constant 0 : i32
    %c0_i32_0 = arith.constant 0 : i32
    %c0_i32_1 = arith.constant 0 : i32
    return %c0_i32, %c0_i32_0 : i32, i32
  }
  func.func @transform_9(%arg0: i32) -> (i32, i32) {
    %c0_i32 = arith.constant 0 : i32
    %c0_i32_0 = arith.constant 0 : i32
    %c0_i32_1 = arith.constant 0 : i32
    return %c0_i32, %c0_i32_0 : i32, i32
  }
  func.func @transform_10(%arg0: i32) -> (i32, i32) {
    %c0_i32 = arith.constant 0 : i32
    %c0_i32_0 = arith.constant 0 : i32
    %c0_i32_1 = arith.constant 0 : i32
    return %c0_i32, %c0_i32_0 : i32, i32
  }
  func.func @transform_11(%arg0: i32) -> (i32, i32) {
    %c0_i32 = arith.constant 0 : i32
    %c0_i32_0 = arith.constant 0 : i32
    %c0_i32_1 = arith.constant 0 : i32
    return %c0_i32, %c0_i32_0 : i32, i32
  }
  func.func @transform_12(%arg0: i32) -> (i32, i32) {
    %c0_i32 = arith.constant 0 : i32
    %c0_i32_0 = arith.constant 0 : i32
    %c0_i32_1 = arith.constant 0 : i32
    return %c0_i32, %c0_i32_0 : i32, i32
  }
  func.func @transform_13(%arg0: i32) -> (i32, i32) {
    %c0_i32 = arith.constant 0 : i32
    %c0_i32_0 = arith.constant 0 : i32
    %c0_i32_1 = arith.constant 0 : i32
    return %c0_i32, %c0_i32_0 : i32, i32
  }
  func.func @transform_14(%arg0: i32) -> (i32, i32) {
    %c0_i32 = arith.constant 0 : i32
    %c0_i32_0 = arith.constant 0 : i32
    %c0_i32_1 = arith.constant 0 : i32
    return %c0_i32, %c0_i32_0 : i32, i32
  }
  func.func @transform_15(%arg0: i32) -> (i32, i32) {
    %c0_i32 = arith.constant 0 : i32
    %c0_i32_0 = arith.constant 0 : i32
    %c0_i32_1 = arith.constant 0 : i32
    return %c0_i32, %c0_i32_0 : i32, i32
  }
  func.func @transform_16(%arg0: i32) -> (i32, i32) {
    %c0_i32 = arith.constant 0 : i32
    %c0_i32_0 = arith.constant 0 : i32
    %c0_i32_1 = arith.constant 0 : i32
    return %c0_i32, %c0_i32_0 : i32, i32
  }
  func.func @transform_17(%arg0: i32) -> (i32, i32) {
    %c0_i32 = arith.constant 0 : i32
    %c0_i32_0 = arith.constant 0 : i32
    %c0_i32_1 = arith.constant 0 : i32
    return %c0_i32, %c0_i32_0 : i32, i32
  }
  func.func @transform_18(%arg0: i32) -> (i32, i32) {
    %c0_i32 = arith.constant 0 : i32
    %c0_i32_0 = arith.constant 0 : i32
    return %arg0, %c0_i32 : i32, i32
  }
}

</mosaic_0001>

<bundles_post_ra>
// kernel: landlord_lstm_values.1
= control target key start
LH: loop header
LB: loop body
LE: loop exit
PB: predicated region body
PF: predicated region fallthrough
CT: control target
= control target key end

     0   :  { %s11455_s0 = inlined_call_operand.vmem [shape: bf16[8,16,162], index: 0, kind: input, shape index: {}]   ;;  %s11456_s1 = inlined_call_operand.vmem [shape: bf16[16,373], index: 1, kind: input, shape index: {}]   ;;  %s11457_s2 = inlined_call_operand.hbm [shape: bf16[162,512], index: 2, kind: input, shape index: {}]   ;;  %s11458_s3 = inlined_call_operand.vmem [shape: bf16[128,512], index: 3, kind: input, shape index: {}]   ;;  %s11459_s4 = inlined_call_operand.vmem [shape: f32[1,512], index: 4, kind: input, shape index: {}]   ;;  %s11460_s5 = inlined_call_operand.hbm [shape: bf16[128,512], index: 5, kind: input, shape index: {}]   ;;  %s11461_s6 = inlined_call_operand.hbm [shape: bf16[373,512], index: 6, kind: input, shape index: {}]   ;;  %s11462_s7 = inlined_call_operand.vmem [shape: f32[1,512], index: 7, kind: input, shape index: {}]   ;;  %s11463_s8 = inlined_call_operand.hbm [shape: bf16[512,512], index: 8, kind: input, shape index: {}]   ;;  %s11464_s9 = inlined_call_operand.vmem [shape: f32[1,512], index: 9, kind: input, shape index: {}]   ;;  %s11465_s10 = inlined_call_operand.hbm [shape: bf16[512,512], index: 10, kind: input, shape index: {}]   ;;  %s11466_s11 = inlined_call_operand.vmem [shape: f32[1,512], index: 11, kind: input, shape index: {}]   ;;  %s11467_s12 = inlined_call_operand.hbm [shape: bf16[512,512], index: 12, kind: input, shape index: {}]   ;;  %s11468_s13 = inlined_call_operand.vmem [shape: f32[1,512], index: 13, kind: input, shape index: {}]   ;;  %s11469_s14 = inlined_call_operand.hbm [shape: bf16[512,512], index: 14, kind: input, shape index: {}]   ;;  %s11470_s15 = inlined_call_operand.vmem [shape: f32[1,512], index: 15, kind: input, shape index: {}]   ;;  %s11471_s16 = inlined_call_operand.hbm [shape: bf16[512,128], index: 16, kind: input, shape index: {}]   ;;  %s11472_s17 = inlined_call_operand.vmem [shape: f32[1,128], index: 17, kind: input, shape index: {}]   ;;  %s11473_s18 = inlined_call_operand.vmem [shape: f32[16,128], index: 18, kind: output, shape index: {}]  }
   0x1   :  { %11486 = sst [smem:[#allocation66_spill]] %s11455_s0 }
   0x2   :  { %11487 = sst [smem:[#allocation67_spill]] %s11456_s1 }
   0x3   :  { %11488 = sst [smem:[#allocation68_spill]] %s11457_s2 }
   0x4   :  { %23 = vsyncpa [#allocation4], 0 }
   0x5   :  { %24 = vsyncpa [#allocation6], 0 }
   0x6   :  { %25 = vsyncpa [#allocation9], 0 }
   0x7   :  { %26 = vsyncpa [#allocation12], 0 }
   0x8   :  { %27 = vsyncpa [#allocation15], 0  ;;  %s10098_s27 = smov [#allocation5]   ;;  %s10099_s29 = smov [#allocation8]  }
   0x9   :  { %s53_s28 = sshll.u32 %s10098_s27, 4  ;;  %s79_s30 = sshll.u32 %s10099_s29, 4  ;;  %s54_s28 = int_to_ptr.vmem [resolvable:$true] %s53_s28  ;;  %s80_s30 = int_to_ptr.vmem [resolvable:$true] %s79_s30 }
   0xa   :  { %s9936_s0 = scalar_lea.vmem %s54_s28, 4096  ;;  %p9941_p1 = scmp.lt.s32.totalorder %s54_s28, %s54_s28 }
   0xb   :  { %p9937_p0 = scmp.ne.s32.totalorder %s54_s28, %s9936_s0  ;;  %p9942_p2 = scmp.lt.s32.totalorder %s9936_s0, %s9936_s0 }
   0xd   :  { %p9943_p3 = por %p9942_p2, %p9941_p1 }
   0xf   :  { %p9944_p4 = pnand %p9943_p3, %p9937_p0 }
  0x11   :  { %9947 = shalt.err (!%p9944_p4)
}
  0x12   :  { %s10100_s19 = smov 256   ;;  %s10101_s1 = smov 16  }
  0x13   :  { %59 = dma.hbm_to_vmem [thread:$0]  %s11460_s5, 4096, %s54_s28, [#allocation6], %s10100_s19, %s10100_s19, %s10101_s1  }
  0x14   :  { %s9956_s22 = scalar_lea.vmem %s80_s30, 16384  ;;  %p9961_p6 = scmp.lt.s32.totalorder %s80_s30, %s80_s30 }
  0x15   :  { %p9957_p5 = scmp.ne.s32.totalorder %s80_s30, %s9956_s22  ;;  %p9962_p7 = scmp.lt.s32.totalorder %s9956_s22, %s9956_s22 }
  0x17   :  { %p9963_p8 = por %p9962_p7, %p9961_p6 }
  0x19   :  { %p9964_p9 = pnand %p9963_p8, %p9957_p5 }
  0x1b   :  { %9967 = shalt.err (!%p9964_p9)
}
  0x1c   :  { %85 = dma.hbm_to_vmem [thread:$0]  %s11463_s8, 16384, %s80_s30, [#allocation9], %s10100_s19, %s10100_s19, %s10101_s1  }
  0x1d   :  { %s10102_s24 = smov [#allocation11]   ;;  %s10103_s26 = smov [#allocation3]  }
  0x1e   :  { %s107_s25 = sshll.u32 %s10102_s24, 4  ;;  %s37_s27 = sshll.u32 %s10103_s26, 4  ;;  %s108_s25 = int_to_ptr.vmem [resolvable:$true] %s107_s25  ;;  %s38_s27 = int_to_ptr.vmem [resolvable:$true] %s37_s27 }
  0x1f   :  { %s9976_s5 = scalar_lea.vmem %s108_s25, 16384  ;;  %p9981_p11 = scmp.lt.s32.totalorder %s108_s25, %s108_s25 }
  0x20   :  { %p9977_p10 = scmp.ne.s32.totalorder %s108_s25, %s9976_s5  ;;  %p9982_p12 = scmp.lt.s32.totalorder %s9976_s5, %s9976_s5 }
  0x22   :  { %p9983_p13 = por %p9982_p12, %p9981_p11 }
  0x24   :  { %p9984_p0 = pnand %p9983_p13, %p9977_p10 }
  0x26   :  { %9987 = shalt.err (!%p9984_p0)
}
  0x27   :  { %113 = dma.hbm_to_vmem [thread:$0]  %s11467_s12, 16384, %s108_s25, [#allocation12], %s10100_s19, %s10100_s19, %s10101_s1  }
  0x28   :  { %s9996_s8 = scalar_lea.vmem %s38_s27, 5376  ;;  %p10001_p2 = scmp.lt.s32.totalorder %s38_s27, %s38_s27 }
  0x29   :  { %p9997_p1 = scmp.ne.s32.totalorder %s38_s27, %s9996_s8  ;;  %p10002_p3 = scmp.lt.s32.totalorder %s9996_s8, %s9996_s8 }
  0x2b   :  { %p10003_p4 = por %p10002_p3, %p10001_p2 }
  0x2d   :  { %p10004_p5 = pnand %p10003_p4, %p9997_p1 }
  0x2f   :  { %10007 = shalt.err (!%p10004_p5)
}
  0x30   :  { %s11489_s20 = sld [smem:[#allocation68_spill]]  ;;  %s10104_s21 = smov [#allocation7]  }
  0x31   :  { %s65_s22 = sshll.u32 %s10104_s21, 4  ;;  %s10105_s2 = smov [#allocation10]   ;;  %s66_s22 = int_to_ptr.vmem [resolvable:$true] %s65_s22 }
  0x32   :  { %s93_s23 = sshll.u32 %s10105_s2, 4  ;;  %s10016_s12 = scalar_lea.vmem %s66_s22, 12032  ;;  %s94_s23 = int_to_ptr.vmem [resolvable:$true] %s93_s23 }
  0x33   :  { %p10017_p6 = scmp.ne.s32.totalorder %s66_s22, %s10016_s12  ;;  %p10021_p7 = scmp.lt.s32.totalorder %s66_s22, %s66_s22 }
  0x34   :  { %p10022_p8 = scmp.lt.s32.totalorder %s10016_s12, %s10016_s12 }
  0x36   :  { %43 = dma.hbm_to_vmem [thread:$0]  %s11489_s20, 5376, %s38_s27, [#allocation4], %s10100_s19, %s10100_s19, %s10101_s1  }
  0x37   :  { %p10023_p9 = por %p10022_p8, %p10021_p7 }
  0x39   :  { %p10024_p10 = pnand %p10023_p9, %p10017_p6 }
  0x3b   :  { %10027 = shalt.err (!%p10024_p10)
}
  0x3c   :  { %71 = dma.hbm_to_vmem [thread:$0]  %s11461_s6, 12032, %s66_s22, [#allocation6], %s10100_s19, %s10100_s19, %s10101_s1  }
  0x3d   :  { %s10036_s26 = scalar_lea.vmem %s94_s23, 16384  ;;  %p10041_p12 = scmp.lt.s32.totalorder %s94_s23, %s94_s23 }
  0x3e   :  { %p10037_p11 = scmp.ne.s32.totalorder %s94_s23, %s10036_s26  ;;  %p10042_p13 = scmp.lt.s32.totalorder %s10036_s26, %s10036_s26 }
  0x40   :  { %p10043_p0 = por %p10042_p13, %p10041_p12 }
  0x42   :  { %p10044_p1 = pnand %p10043_p0, %p10037_p11 }
  0x44   :  { %10047 = shalt.err (!%p10044_p1)
}
  0x45   :  { %99 = dma.hbm_to_vmem [thread:$0]  %s11465_s10, 16384, %s94_s23, [#allocation9], %s10100_s19, %s10100_s19, %s10101_s1  }
  0x46   :  { %s10106_s28 = smov [#allocation13]   ;;  %s10107_s8 = smov [#allocation14]  }
  0x47   :  { %s121_s29 = sshll.u32 %s10106_s28, 4  ;;  %s135_s30 = sshll.u32 %s10107_s8, 4  ;;  %s122_s29 = int_to_ptr.vmem [resolvable:$true] %s121_s29  ;;  %s136_s30 = int_to_ptr.vmem [resolvable:$true] %s135_s30 }
  0x48   :  { %s10056_s6 = scalar_lea.vmem %s122_s29, 16384  ;;  %p10061_p3 = scmp.lt.s32.totalorder %s122_s29, %s122_s29 }
  0x49   :  { %p10057_p2 = scmp.ne.s32.totalorder %s122_s29, %s10056_s6  ;;  %p10062_p4 = scmp.lt.s32.totalorder %s10056_s6, %s10056_s6 }
  0x4b   :  { %p10063_p5 = por %p10062_p4, %p10061_p3 }
  0x4d   :  { %p10064_p6 = pnand %p10063_p5, %p10057_p2 }
  0x4f   :  { %10067 = shalt.err (!%p10064_p6)
}
  0x50   :  { %127 = dma.hbm_to_vmem [thread:$0]  %s11469_s14, 16384, %s122_s29, [#allocation12], %s10100_s19, %s10100_s19, %s10101_s1  }
  0x51   :  { %s10076_s10 = scalar_lea.vmem %s136_s30, 4096  ;;  %p10081_p8 = scmp.lt.s32.totalorder %s136_s30, %s136_s30 }
  0x52   :  { %p10077_p7 = scmp.ne.s32.totalorder %s136_s30, %s10076_s10  ;;  %p10082_p9 = scmp.lt.s32.totalorder %s10076_s10, %s10076_s10 }
  0x54   :  { %p10083_p10 = por %p10082_p9, %p10081_p8 }
  0x56   :  { %p10084_p11 = pnand %p10083_p10, %p10077_p7 }
  0x58   :  { %10087 = shalt.err (!%p10084_p11)
}
  0x59   :  { %s10108_s21 = smov 64   ;;  %s10109_s22 = smov 4  }
  0x5a   :  { %141 = dma.hbm_to_vmem [thread:$0]  %s11471_s16, 4096, %s136_s30, [#allocation15], %s10108_s21, %s10108_s21, %s10109_s22  }
  0x5b   :  { %10088 = dma.done.wait [#allocation4], 5376  }
  0x5c   :  { %10089 = vsyncadd [#allocation4], 4294961920 }
  0x5d   :  { %10090 = dma.done.wait [#allocation6], 16128  }
  0x5e   :  { %10091 = vsyncadd [#allocation6], 4294951168 }
  0x5f   :  { %10092 = dma.done.wait [#allocation9], 32768  }
  0x60   :  { %10093 = vsyncadd [#allocation9], 4294934528 }
  0x61   :  { %10094 = dma.done.wait [#allocation12], 32768  }
  0x62   :  { %10095 = vsyncadd [#allocation12], 4294934528 }
  0x63   :  { %10096 = dma.done.wait [#allocation15], 4096  }
  0x64   :  { %10097 = vsyncadd [#allocation15], 4294963200  ;;  %v8480_v0 = vld [vmem:[#allocation3 + $0xe4] ss:$16 sps:$4 sm:$0xff]   ;;  %v8482_v1 = vld [vmem:[#allocation3 + $0xec] ss:$16 sps:$4 sm:$0xff]  }
  0x65   :  { %569 = vmatprep.subr.bf16.mxu0 %v8480_v0  ;;  %v8484_v2 = vld [vmem:[#allocation3 + $0xe0] ss:$16 sps:$4 sm:$0xff]   ;;  %v8485_v3 = vld [vmem:[#allocation3 + $0xe8] ss:$16 sps:$4 sm:$0xff]   ;;  %682 = vmatprep.subr.bf16.mxu1 %v8482_v1  ;;  %v8486_v4 = vld [vmem:[#allocation3 + $0xc4] ss:$16 sps:$4 sm:$0xff]  }
  0x66   :  { %570 = vmatpush1.bf16.msra.mxu0 %v8484_v2  ;;  %683 = vmatpush1.bf16.msra.mxu1 %v8485_v3  ;;  %v8488_v5 = vld [vmem:[#allocation3 + $0xcc] ss:$16 sps:$4 sm:$0xff]   ;;  %v8490_v6 = vld [vmem:[#allocation3 + $0xc0] ss:$16 sps:$4 sm:$0xff]   ;;  %v8491_v7 = vld [vmem:[#allocation3 + $0xc8] ss:$16 sps:$4 sm:$0xff]  }
  0x67   :  { %571 = vmatprep.subr.bf16.mxu0 %v8486_v4  ;;  %684 = vmatprep.subr.bf16.mxu1 %v8488_v5  ;;  %v8492_v8 = vld [vmem:[#allocation3 + $0xa4] ss:$16 sps:$4 sm:$0xff]   ;;  %v8494_v9 = vld [vmem:[#allocation3 + $0xac] ss:$16 sps:$4 sm:$0xff]   ;;  %v8496_v10 = vld [vmem:[#allocation3 + $0xa0] ss:$16 sps:$4 sm:$0xff]  }
  0x68   :  { %v8497_v11 = vld [vmem:[#allocation3 + $0xa8] ss:$16 sps:$4 sm:$0xff]   ;;  %v8498_v12 = vld [vmem:[#allocation3 + $0x84] ss:$16 sps:$4 sm:$0xff]   ;;  %v8500_v13 = vld [vmem:[#allocation3 + $0x8c] ss:$16 sps:$4 sm:$0xff]  }
  0x69   :  { %v8502_v14 = vld [vmem:[#allocation3 + $0x80] ss:$16 sps:$4 sm:$0xff]   ;;  %v8503_v15 = vld [vmem:[#allocation3 + $0x88] ss:$16 sps:$4 sm:$0xff]   ;;  %v8504_v16 = vld [vmem:[#allocation3 + $0x64] ss:$16 sps:$4 sm:$0xff]  }
  0x6a   :  { %572 = vmatpush1.bf16.msra.mxu0 %v8490_v6  ;;  %685 = vmatpush1.bf16.msra.mxu1 %v8491_v7  ;;  %v8506_v17 = vld [vmem:[#allocation3 + $0x6c] ss:$16 sps:$4 sm:$0xff]   ;;  %v8508_v18 = vld [vmem:[#allocation3 + $0x60] ss:$16 sps:$4 sm:$0xff]   ;;  %v8509_v19 = vld [vmem:[#allocation3 + $0x68] ss:$16 sps:$4 sm:$0xff]  }
  0x6b   :  { %573 = vmatprep.subr.bf16.mxu0 %v8492_v8  ;;  %686 = vmatprep.subr.bf16.mxu1 %v8494_v9  ;;  %v8510_v20 = vld [vmem:[#allocation3 + $0x44] ss:$16 sps:$4 sm:$0xff]   ;;  %v8512_v21 = vld [vmem:[#allocation3 + $0x4c] ss:$16 sps:$4 sm:$0xff]   ;;  %v8514_v22 = vld [vmem:[#allocation3 + $0x40] ss:$16 sps:$4 sm:$0xff]  }
  0x6c   :  { %v8515_v23 = vld [vmem:[#allocation3 + $0x48] ss:$16 sps:$4 sm:$0xff]   ;;  %v8516_v24 = vld [vmem:[#allocation3 + $0x24] ss:$16 sps:$4 sm:$0xff]   ;;  %v8518_v25 = vld [vmem:[#allocation3 + $0x2c] ss:$16 sps:$4 sm:$0xff]  }
  0x6d   :  { %v8520_v26 = vld [vmem:[#allocation3 + $0x20] ss:$16 sps:$4 sm:$0xff]   ;;  %v8521_v27 = vld [vmem:[#allocation3 + $0x28] ss:$16 sps:$4 sm:$0xff]   ;;  %v8522_v28 = vld [vmem:[#allocation3 + $0x4] ss:$16 sps:$4 sm:$0xff]  }
  0x6e   :  { %574 = vmatpush1.bf16.msra.mxu0 %v8496_v10  ;;  %687 = vmatpush1.bf16.msra.mxu1 %v8497_v11  ;;  %v8524_v29 = vld [vmem:[#allocation3 + $0xc] ss:$16 sps:$4 sm:$0xff]   ;;  %v225_v30 = vld [vmem:[#allocation3 + $0x140] sm:$0x11]  ;;  %vm531_vm0 = vcmask 277504   ;;  %s11490_s19 = sld [smem:[#allocation66_spill]] }
  0x6f   :  { %575 = vmatprep.subr.bf16.mxu0 %v8498_v12  ;;  %688 = vmatprep.subr.bf16.mxu1 %v8500_v13  ;;  %v226_v31 = vld [vmem:[#allocation3 + $0x148] sm:$0x11]  ;;  %v8526_v32 = vld [vmem:[#allocation3] ss:$16 sps:$4 sm:$0xff]   ;;  %v7643_v34 = vcombine.high %v225_v30, %v225_v30  ;;  %v7642_v37 = vcombine.low %v225_v30, %v225_v30  ;;  %vm556_vm1 = vcmask 1040384   ;;  %vm2878_vm2 = vcmask 1041408  }
  0x70   :  { %v8527_v33 = vld [vmem:[#allocation3 + $0x8] ss:$16 sps:$4 sm:$0xff]   ;;  %v7645_v36 = vcombine.high %v226_v31, %v226_v31  ;;  %v7644_v38 = vcombine.low %v226_v31, %v226_v31  ;;  %v8532_v39 = vld [vmem:[#allocation3 + $0x124] ss:$16 sps:$4 sm:$0xff]   ;;  %v8534_v42 = vld [vmem:[#allocation3 + $0x12c] ss:$16 sps:$4 sm:$0xff]  }
  0x71   :  { %v558_v40 = vsel %vm556_vm1, %v7642_v37, 0  ;;  %v8536_v43 = vld [vmem:[#allocation3 + $0x120] ss:$16 sps:$4 sm:$0xff]   ;;  %v8537_v44 = vld [vmem:[#allocation3 + $0x128] ss:$16 sps:$4 sm:$0xff]   ;;  %vm2879_vm3 = vcmask 1042432  }
  0x72   :  { %576 = vmatpush1.bf16.msra.mxu0 %v8502_v14  ;;  %689 = vmatpush1.bf16.msra.mxu1 %v8503_v15  ;;  %v564_v41 = vsel %vm556_vm1, %v7644_v38, 0  ;;  %v8538_v45 = vld [vmem:[#allocation3 + $0x104] ss:$16 sps:$4 sm:$0xff]   ;;  %v8540_v46 = vld [vmem:[#allocation3 + $0x10c] ss:$16 sps:$4 sm:$0xff]   ;;  %s11570_s16 = sld [smem:[#allocation67_spill]] }
  0x73   :  { %577 = vmatprep.subr.bf16.mxu0 %v8504_v16  ;;  %690 = vmatprep.subr.bf16.mxu1 %v8506_v17  ;;  %v8542_v47 = vld [vmem:[#allocation3 + $0x100] ss:$16 sps:$4 sm:$0xff]   ;;  %v8543_v48 = vld [vmem:[#allocation3 + $0x108] ss:$16 sps:$4 sm:$0xff]   ;;  %v10260_v49 = vld [vmem:[%s11458_s3 + $0xe4] ss:$16 sps:$4 sm:$0xff]  }
  0x74   :  { %v8546_v35 = vld [vmem:[%s11490_s19 + $0x4] ss:$8 sps:$4 sm:$0xff]   ;;  %v8544_v51 = vld [vmem:[%s11490_s19] ss:$8 sps:$4 sm:$0xff]   ;;  %v8550_v53 = vld [vmem:[%s11490_s19 + $0x14] ss:$8 sps:$4 sm:$0xff]  }
  0x75   :  { %7647 = vmatprep.mubr.msk.bf16.mxu0 %vm531_vm0, %v8546_v35  ;;  %7656 = vmatprep.mubr.msk.bf16.mxu1 %vm531_vm0, %v8546_v35  ;;  %v10265_v50 = vld [vmem:[%s11458_s3 + $0xec] ss:$16 sps:$4 sm:$0xff]   ;;  %v10273_v52 = vld [vmem:[%s11458_s3 + $0xe0] ss:$16 sps:$4 sm:$0xff]   ;;  %v10282_v54 = vld [vmem:[%s11458_s3 + $0xc4] ss:$16 sps:$4 sm:$0xff]  }
  0x76   :  { %578 = vmatpush1.bf16.msra.mxu0 %v8508_v18  ;;  %691 = vmatpush1.bf16.msra.mxu1 %v8509_v19  ;;  %v10288_v55 = vld [vmem:[%s11458_s3 + $0xe8] ss:$16 sps:$4 sm:$0xff]   ;;  %v10293_v56 = vld [vmem:[%s11458_s3 + $0xcc] ss:$16 sps:$4 sm:$0xff]   ;;  %v10300_v57 = vld [vmem:[%s11458_s3 + $0xc0] ss:$16 sps:$4 sm:$0xff]  }
  0x77   :  { %579 = vmatprep.subr.bf16.mxu0 %v8510_v20  ;;  %692 = vmatprep.subr.bf16.mxu1 %v8512_v21  ;;  %v10307_v58 = vld [vmem:[%s11458_s3 + $0xa4] ss:$16 sps:$4 sm:$0xff]   ;;  %v10313_v59 = vld [vmem:[%s11458_s3 + $0xc8] ss:$16 sps:$4 sm:$0xff]   ;;  %v10326_v62 = vld [vmem:[%s11458_s3 + $0xa0] ss:$16 sps:$4 sm:$0xff]  }
  0x78   :  { %v8552_v60 = vld [vmem:[%s11490_s19 + $0x10] ss:$8 sps:$4 sm:$0xff]   ;;  %v8556_v61 = vld [vmem:[%s11490_s19 + $0x24] ss:$8 sps:$4 sm:$0xff]   ;;  %v8558_v3 = vld [vmem:[%s11490_s19 + $0x20] ss:$8 sps:$4 sm:$0xff]  }
  0x79   :  { %v10331_v63 = vld [vmem:[%s11458_s3 + $0x84] ss:$16 sps:$4 sm:$0xff]   ;;  %v10337_v0 = vld [vmem:[%s11458_s3 + $0xac] ss:$16 sps:$4 sm:$0xff]   ;;  %v10343_v1 = vld [vmem:[%s11458_s3 + $0xa8] ss:$16 sps:$4 sm:$0xff]  }
  0x7a   :  { %580 = vmatpush1.bf16.msra.mxu0 %v8514_v22  ;;  %693 = vmatpush1.bf16.msra.mxu1 %v8515_v23  ;;  %v10348_v2 = vld [vmem:[%s11458_s3 + $0x8c] ss:$16 sps:$4 sm:$0xff]   ;;  %v10359_v4 = vld [vmem:[%s11458_s3 + $0x80] ss:$16 sps:$4 sm:$0xff]   ;;  %v10364_v5 = vld [vmem:[%s11458_s3 + $0x64] ss:$16 sps:$4 sm:$0xff]  }
  0x7b   :  { %581 = vmatprep.subr.bf16.mxu0 %v8516_v24  ;;  %694 = vmatprep.subr.bf16.mxu1 %v8518_v25  ;;  %v10372_v6 = vld [vmem:[%s11458_s3 + $0x88] ss:$16 sps:$4 sm:$0xff]   ;;  %v8565_v7 = vld [vmem:[%s11490_s19 + $0x34] ss:$8 sps:$4 sm:$0xff]   ;;  %v10380_v8 = vld [vmem:[%s11458_s3 + $0x60] ss:$16 sps:$4 sm:$0xff]  }
  0x7c   :  { %v10386_v9 = vld [vmem:[%s11458_s3 + $0x6c] ss:$16 sps:$4 sm:$0xff]   ;;  %v10391_v10 = vld [vmem:[%s11458_s3 + $0x44] ss:$16 sps:$4 sm:$0xff]   ;;  %v10396_v11 = vld [vmem:[%s11458_s3 + $0x68] ss:$16 sps:$4 sm:$0xff]  }
  0x7d   :  { %v10402_v12 = vld [vmem:[%s11458_s3 + $0x4c] ss:$16 sps:$4 sm:$0xff]   ;;  %v10409_v13 = vld [vmem:[%s11458_s3 + $0x40] ss:$16 sps:$4 sm:$0xff]   ;;  %v10416_v14 = vld [vmem:[%s11458_s3 + $0x24] ss:$16 sps:$4 sm:$0xff]  }
  0x7e   :  { %582 = vmatpush1.bf16.msra.mxu0 %v8520_v26  ;;  %695 = vmatpush1.bf16.msra.mxu1 %v8521_v27  ;;  %v10421_v15 = vld [vmem:[%s11458_s3 + $0x48] ss:$16 sps:$4 sm:$0xff]   ;;  %v8574_v17 = vld [vmem:[%s11490_s19 + $0x44] ss:$8 sps:$4 sm:$0xff]   ;;  %v10436_v18 = vld [vmem:[%s11458_s3 + $0x20] ss:$16 sps:$4 sm:$0xff]  }
  0x7f   :  { %583 = vmatprep.subr.bf16.mxu0 %v8522_v28  ;;  %696 = vmatprep.subr.bf16.mxu1 %v8524_v29  ;;  %v8567_v16 = vld [vmem:[%s11490_s19 + $0x30] ss:$8 sps:$4 sm:$0xff]   ;;  %v10442_v19 = vld [vmem:[%s11458_s3 + $0x2c] ss:$16 sps:$4 sm:$0xff]   ;;  %v10447_v20 = vld [vmem:[%s11458_s3 + $0x4] ss:$16 sps:$4 sm:$0xff]  }
  0x80   :  { %v10452_v21 = vld [vmem:[%s11458_s3 + $0x28] ss:$16 sps:$4 sm:$0xff]   ;;  %v10458_v22 = vld [vmem:[%s11458_s3 + $0xc] ss:$16 sps:$4 sm:$0xff]   ;;  %v10465_v23 = vld [vmem:[%s11458_s3] ss:$16 sps:$4 sm:$0xff]  }
  0x81   :  { %v10472_v24 = vld [vmem:[%s11458_s3 + $0x8] ss:$16 sps:$4 sm:$0xff]   ;;  %v8583_v26 = vld [vmem:[%s11490_s19 + $0x54] ss:$8 sps:$4 sm:$0xff]   ;;  %v8592_v28 = vld [vmem:[%s11490_s19 + $0x64] ss:$8 sps:$4 sm:$0xff]  }
  0x82   :  { %584 = vmatpush1.bf16.msra.mxu0 %v8526_v32  ;;  %697 = vmatpush1.bf16.msra.mxu1 %v8527_v33  ;;  %v8576_v25 = vld [vmem:[%s11490_s19 + $0x40] ss:$8 sps:$4 sm:$0xff]   ;;  %v8585_v27 = vld [vmem:[%s11490_s19 + $0x50] ss:$8 sps:$4 sm:$0xff]   ;;  %v8604_v30 = vld [vmem:[%s11490_s19 + $0x74] ss:$8 sps:$4 sm:$0xff]   ;;  %v229_v33 = vlaneseq }
  0x83   :  { %7646 = vmatprep.subr.msk.bf16.mxu0 %vm556_vm1, %v7643_v34  ;;  %7655 = vmatprep.subr.msk.bf16.mxu1 %vm556_vm1, %v7645_v36  ;;  %v8594_v29 = vld [vmem:[%s11490_s19 + $0x60] ss:$8 sps:$4 sm:$0xff]   ;;  %v8606_v31 = vld [vmem:[%s11490_s19 + $0x70] ss:$8 sps:$4 sm:$0xff]   ;;  %v11476_v32 = vmov 0   ;;  %vm2874_vm4 = vcmask 957440  }
  0x84   :  { %v230_v34 = vshrl.u32 %v229_v33, 7  ;;  %v227_v37 = vld [vmem:[%s11459_s4] sm:$0xf] }
  0x86   :  { %596 = vmatpush2.bf16.msra.mxu0 %v558_v40  ;;  %709 = vmatpush2.bf16.msra.mxu1 %v564_v41  ;;  %v10559_v40 = vsub.s32 0, %v230_v34  ;;  %v10561_v41 = vsub.s32 2, %v230_v34 }
  0x87   :  { %597 = vmatprep.subr.bf16.mxu0 %v8532_v39  ;;  %710 = vmatprep.subr.bf16.mxu1 %v8534_v42 }
  0x88   :  { %11491 = vst [vmem:[#allocation21_spill] sm:$0xff] %v10559_v40  ;;  %11492 = vst [vmem:[#allocation22_spill] sm:$0xff] %v10561_v41 }
  0x8a   :  { %598 = vmatpush2.bf16.msra.mxu0 %v8536_v43  ;;  %711 = vmatpush2.bf16.msra.mxu1 %v8537_v44  ;;  %v10567_v44 = vsub.s32 1, %v230_v34 }
  0x8b   :  { %599 = vmatprep.subr.bf16.mxu0 %v8538_v45  ;;  %712 = vmatprep.subr.bf16.mxu1 %v8540_v46  ;;  %v10569_v45 = vsub.s32 3, %v230_v34 }
  0x8c   :  { %11493 = vst [vmem:[#allocation23_spill] sm:$0xff] %v10567_v44 }
  0x8d   :  { %11494 = vst [vmem:[#allocation24_spill] sm:$0xff] %v10569_v45 }
  0x8e   :  { %600 = vmatpush2.bf16.msra.mxu0 %v8542_v47  ;;  %713 = vmatpush2.bf16.msra.mxu1 %v8543_v48  ;;  %v10576_v48 = vrot.slane %v227_v37, %v10559_v40 }
  0x8f   :  { %1059 = vmatprep.subr.bf16.mxu0 %v10260_v49  ;;  %1102 = vmatprep.subr.bf16.mxu1 %v10265_v50 }
  0x91   :  { %602 = vmatmul.mubr.bf16.vlgmr.msra.gmra.mxu0 %v8544_v51  ;;  %715 = vmatmul.mubr.bf16.vlgmr.msra.gmra.mxu1 %v8544_v51 }
  0x92   :  { %1060 = vmatpush1.bf16.msra.mxu0 %v10273_v52  ;;  %7648 = vmatprep.mubr.msk.bf16.mxu0 %vm531_vm0, %v8550_v53 }
  0x93   :  { %7657 = vmatprep.mubr.msk.bf16.mxu1 %vm531_vm0, %v8550_v53  ;;  %1061 = vmatprep.subr.bf16.mxu0 %v10282_v54  ;;  %v10585_v53 = vrot.slane %v227_v37, %v10569_v45 }
  0x94   :  { %1103 = vmatpush1.bf16.msra.mxu1 %v10288_v55 }
  0x95   :  { %1104 = vmatprep.subr.bf16.mxu1 %v10293_v56 }
  0x96   :  { %1062 = vmatpush1.bf16.msra.mxu0 %v10300_v57 }
  0x97   :  { %1063 = vmatprep.subr.bf16.mxu0 %v10307_v58 }
  0x98   :  { %1105 = vmatpush1.bf16.msra.mxu1 %v10313_v59 }
  0x99   :  { %612 = vmatmul.mubr.bf16.gmra.mxu0 %v8552_v60  ;;  %725 = vmatmul.mubr.bf16.gmra.mxu1 %v8552_v60 }
  0x9a   :  { %7649 = vmatprep.mubr.msk.bf16.mxu0 %vm531_vm0, %v8556_v61  ;;  %7658 = vmatprep.mubr.msk.bf16.mxu1 %vm531_vm0, %v8556_v61 }
  0x9b   :  { %1064 = vmatpush1.bf16.msra.mxu0 %v10326_v62  ;;  %1106 = vmatprep.subr.bf16.mxu1 %v10337_v0 }
  0x9c   :  { %1065 = vmatprep.subr.bf16.mxu0 %v10331_v63  ;;  %1107 = vmatpush1.bf16.msra.mxu1 %v10343_v1 }
  0x9d   :  { %1108 = vmatprep.subr.bf16.mxu1 %v10348_v2 }
  0x9f   :  { %1066 = vmatpush1.bf16.msra.mxu0 %v10359_v4 }
  0xa0   :  { %1067 = vmatprep.subr.bf16.mxu0 %v10364_v5  ;;  %1109 = vmatpush1.bf16.msra.mxu1 %v10372_v6 }
  0xa1   :  { %622 = vmatmul.mubr.bf16.gmra.mxu0 %v8558_v3  ;;  %735 = vmatmul.mubr.bf16.gmra.mxu1 %v8558_v3 }
  0xa2   :  { %7650 = vmatprep.mubr.msk.bf16.mxu0 %vm531_vm0, %v8565_v7  ;;  %7659 = vmatprep.mubr.msk.bf16.mxu1 %vm531_vm0, %v8565_v7 }
  0xa3   :  { %1068 = vmatpush1.bf16.msra.mxu0 %v10380_v8  ;;  %1110 = vmatprep.subr.bf16.mxu1 %v10386_v9 }
  0xa4   :  { %1069 = vmatprep.subr.bf16.mxu0 %v10391_v10  ;;  %1111 = vmatpush1.bf16.msra.mxu1 %v10396_v11 }
  0xa5   :  { %1112 = vmatprep.subr.bf16.mxu1 %v10402_v12 }
  0xa7   :  { %1070 = vmatpush1.bf16.msra.mxu0 %v10409_v13 }
  0xa8   :  { %1071 = vmatprep.subr.bf16.mxu0 %v10416_v14  ;;  %1113 = vmatpush1.bf16.msra.mxu1 %v10421_v15 }
  0xa9   :  { %632 = vmatmul.mubr.bf16.gmra.mxu0 %v8567_v16  ;;  %745 = vmatmul.mubr.bf16.gmra.mxu1 %v8567_v16 }
  0xaa   :  { %7651 = vmatprep.mubr.msk.bf16.mxu0 %vm531_vm0, %v8574_v17  ;;  %7660 = vmatprep.mubr.msk.bf16.mxu1 %vm531_vm0, %v8574_v17 }
  0xab   :  { %1072 = vmatpush1.bf16.msra.mxu0 %v10436_v18  ;;  %1114 = vmatprep.subr.bf16.mxu1 %v10442_v19 }
  0xac   :  { %1073 = vmatprep.subr.bf16.mxu0 %v10447_v20  ;;  %1115 = vmatpush1.bf16.msra.mxu1 %v10452_v21 }
  0xad   :  { %1116 = vmatprep.subr.bf16.mxu1 %v10458_v22 }
  0xaf   :  { %1074 = vmatpush1.bf16.msra.mxu0 %v10465_v23 }
  0xb0   :  { %1117 = vmatpush1.bf16.msra.mxu1 %v10472_v24  ;;  %1210 = vmatprep.subr.bf16.mxu0 %v10260_v49 }
  0xb1   :  { %642 = vmatmul.mubr.bf16.gmra.mxu0 %v8576_v25  ;;  %755 = vmatmul.mubr.bf16.gmra.mxu1 %v8576_v25 }
  0xb2   :  { %7652 = vmatprep.mubr.msk.bf16.mxu0 %vm531_vm0, %v8583_v26  ;;  %7661 = vmatprep.mubr.msk.bf16.mxu1 %vm531_vm0, %v8583_v26 }
  0xb3   :  { %1253 = vmatprep.subr.bf16.mxu1 %v10265_v50 }
  0xb9   :  { %652 = vmatmul.mubr.bf16.gmra.mxu0 %v8585_v27  ;;  %765 = vmatmul.mubr.bf16.gmra.mxu1 %v8585_v27 }
  0xba   :  { %7653 = vmatprep.mubr.msk.bf16.mxu0 %vm531_vm0, %v8592_v28  ;;  %7662 = vmatprep.mubr.msk.bf16.mxu1 %vm531_vm0, %v8592_v28 }
  0xc1   :  { %662 = vmatmul.mubr.bf16.gmra.mxu0 %v8594_v29  ;;  %775 = vmatmul.mubr.bf16.gmra.mxu1 %v8594_v29 }
  0xc2   :  { %7654 = vmatprep.mubr.msk.bf16.mxu0 %vm531_vm0, %v8604_v30  ;;  %7663 = vmatprep.mubr.msk.bf16.mxu1 %vm531_vm0, %v8604_v30 }
  0xc9   :  { %672 = vmatmul.mubr.bf16.gmra.mxu0 %v8606_v31  ;;  %785 = vmatmul.mubr.bf16.gmra.mxu1 %v8606_v31 }
  0xca   :  { %1091 = vmatprep.mubr.bf16.mxu0 %v11476_v32  ;;  %1134 = vmatprep.mubr.bf16.mxu1 %v11476_v32 }
  0xd1   :  { %1092 = vmatmul.mubr.bf16.vlgmr.msra.gmra.mxu0 %v11476_v32  ;;  %1135 = vmatmul.mubr.bf16.vlgmr.msra.gmra.mxu1 %v11476_v32 }
  0xd2   :  { %1211 = vmatpush1.bf16.msra.mxu0 %v10273_v52  ;;  %1254 = vmatpush1.bf16.msra.mxu1 %v10288_v55  ;;  %v10582_v52 = vrot.slane %v227_v37, %v10567_v44 }
  0xd3   :  { %1212 = vmatprep.subr.bf16.mxu0 %v10282_v54  ;;  %1255 = vmatprep.subr.bf16.mxu1 %v10293_v56 }
  0xd4   :  { %1242 = vmatprep.mubr.bf16.mxu0 %v11476_v32  ;;  %1285 = vmatprep.mubr.bf16.mxu1 %v11476_v32 }
  0xd6   :  { %1213 = vmatpush1.bf16.msra.mxu0 %v10300_v57  ;;  %1256 = vmatpush1.bf16.msra.mxu1 %v10313_v59 }
  0xd7   :  { %1214 = vmatprep.subr.bf16.mxu0 %v10307_v58  ;;  %1257 = vmatprep.subr.bf16.mxu1 %v10337_v0 }
  0xda   :  { %1215 = vmatpush1.bf16.msra.mxu0 %v10326_v62  ;;  %1258 = vmatpush1.bf16.msra.mxu1 %v10343_v1 }
  0xdb   :  { %1216 = vmatprep.subr.bf16.mxu0 %v10331_v63  ;;  %1259 = vmatprep.subr.bf16.mxu1 %v10348_v2 }
  0xde   :  { %1217 = vmatpush1.bf16.msra.mxu0 %v10359_v4  ;;  %1260 = vmatpush1.bf16.msra.mxu1 %v10372_v6 }
  0xdf   :  { %1218 = vmatprep.subr.bf16.mxu0 %v10364_v5  ;;  %1261 = vmatprep.subr.bf16.mxu1 %v10386_v9 }
  0xe2   :  { %1219 = vmatpush1.bf16.msra.mxu0 %v10380_v8  ;;  %1262 = vmatpush1.bf16.msra.mxu1 %v10396_v11 }
  0xe3   :  { %1220 = vmatprep.subr.bf16.mxu0 %v10391_v10  ;;  %1263 = vmatprep.subr.bf16.mxu1 %v10402_v12 }
  0xe6   :  { %1221 = vmatpush1.bf16.msra.mxu0 %v10409_v13  ;;  %1264 = vmatpush1.bf16.msra.mxu1 %v10421_v15 }
  0xe7   :  { %1222 = vmatprep.subr.bf16.mxu0 %v10416_v14  ;;  %1265 = vmatprep.subr.bf16.mxu1 %v10442_v19 }
  0xea   :  { %1223 = vmatpush1.bf16.msra.mxu0 %v10436_v18  ;;  %1266 = vmatpush1.bf16.msra.mxu1 %v10452_v21 }
  0xeb   :  { %1224 = vmatprep.subr.bf16.mxu0 %v10447_v20  ;;  %1267 = vmatprep.subr.bf16.mxu1 %v10458_v22 }
  0xee   :  { %1225 = vmatpush1.bf16.msra.mxu0 %v10465_v23  ;;  %1268 = vmatpush1.bf16.msra.mxu1 %v10472_v24 }
  0xef   :  { %1361 = vmatprep.subr.bf16.mxu0 %v10260_v49  ;;  %1404 = vmatprep.subr.bf16.mxu1 %v10265_v50  ;;  %v10579_v49 = vrot.slane %v227_v37, %v10561_v41 }
 0x151   :  { %v10548_v35 = vpop.f32.mrf.mxu0  ;;  %v10550_v36 = vpop.f32.mrf.mxu1 }
 0x153   :  { %v10555_v38 = vpop.f32.mrf.mxu0  ;;  %v10557_v39 = vpop.f32.mrf.mxu1 }
 0x155   :  { %v10563_v42 = vpop.f32.mrf.mxu0  ;;  %v10565_v43 = vpop.f32.mrf.mxu1 }
 0x157   :  { %v10571_v46 = vpop.f32.mrf.mxu0  ;;  %v10573_v47 = vpop.f32.mrf.mxu1 }
 0x159   :  { %v613_v50 = vpop.f32.mrf.mxu0  ;;  %v726_v51 = vpop.f32.mrf.mxu1 }
 0x15a   :  { %v10588_v54 = vadd.f32 %v613_v50, %v10576_v48  ;;  %v10591_v55 = vadd.f32 %v726_v51, %v10579_v49 }
 0x15b   :  { %v615_v56 = vpop.f32.mrf.mxu0  ;;  %v728_v57 = vpop.f32.mrf.mxu1 }
 0x15c   :  { %v10594_v58 = vadd.f32 %v615_v56, %v10582_v52  ;;  %v10597_v59 = vadd.f32 %v728_v57, %v10585_v53 }
 0x15d   :  { %v617_v60 = vpop.f32.mrf.mxu0  ;;  %v730_v61 = vpop.f32.mrf.mxu1 }
 0x15e   :  { %v10600_v62 = vadd.f32 %v617_v60, %v10576_v48  ;;  %v10603_v63 = vadd.f32 %v730_v61, %v10579_v49 }
 0x15f   :  { %v619_v0 = vpop.f32.mrf.mxu0  ;;  %v732_v1 = vpop.f32.mrf.mxu1 }
 0x160   :  { %v10606_v2 = vadd.f32 %v619_v0, %v10582_v52  ;;  %v10609_v3 = vadd.f32 %v732_v1, %v10585_v53 }
 0x161   :  { %v623_v4 = vpop.f32.mrf.mxu0  ;;  %v736_v5 = vpop.f32.mrf.mxu1 }
 0x162   :  { %v10612_v6 = vadd.f32 %v623_v4, %v10576_v48  ;;  %v10615_v7 = vadd.f32 %v736_v5, %v10579_v49 }
 0x163   :  { %v625_v8 = vpop.f32.mrf.mxu0  ;;  %v738_v9 = vpop.f32.mrf.mxu1 }
 0x164   :  { %v10618_v10 = vadd.f32 %v625_v8, %v10582_v52  ;;  %v10621_v11 = vadd.f32 %v738_v9, %v10585_v53 }
 0x165   :  { %v627_v12 = vpop.f32.mrf.mxu0  ;;  %v740_v13 = vpop.f32.mrf.mxu1 }
 0x166   :  { %v10624_v14 = vadd.f32 %v627_v12, %v10576_v48  ;;  %v10627_v15 = vadd.f32 %v740_v13, %v10579_v49 }
 0x167   :  { %v629_v16 = vpop.f32.mrf.mxu0  ;;  %v742_v17 = vpop.f32.mrf.mxu1 }
 0x168   :  { %v10630_v18 = vadd.f32 %v629_v16, %v10582_v52  ;;  %v10633_v19 = vadd.f32 %v742_v17, %v10585_v53 }
 0x169   :  { %v633_v20 = vpop.f32.mrf.mxu0  ;;  %v746_v21 = vpop.f32.mrf.mxu1 }
 0x16a   :  { %11495 = vst [vmem:[#allocation25_spill] sm:$0xff] %v10633_v19  ;;  %v10636_v22 = vadd.f32 %v633_v20, %v10576_v48  ;;  %v10639_v23 = vadd.f32 %v746_v21, %v10579_v49 }
 0x16b   :  { %v635_v24 = vpop.f32.mrf.mxu0  ;;  %v748_v25 = vpop.f32.mrf.mxu1 }
 0x16c   :  { %11496 = vst [vmem:[#allocation26_spill] sm:$0xff] %v10636_v22  ;;  %11497 = vst [vmem:[#allocation27_spill] sm:$0xff] %v10639_v23  ;;  %v10642_v26 = vadd.f32 %v635_v24, %v10582_v52  ;;  %v10645_v27 = vadd.f32 %v748_v25, %v10585_v53 }
 0x16d   :  { %v637_v28 = vpop.f32.mrf.mxu0  ;;  %v750_v29 = vpop.f32.mrf.mxu1 }
 0x16e   :  { %11498 = vst [vmem:[#allocation28_spill] sm:$0xff] %v10642_v26  ;;  %11499 = vst [vmem:[#allocation29_spill] sm:$0xff] %v10645_v27  ;;  %v10648_v30 = vadd.f32 %v637_v28, %v10576_v48  ;;  %v10651_v31 = vadd.f32 %v750_v29, %v10579_v49 }
 0x16f   :  { %v639_v33 = vpop.f32.mrf.mxu0  ;;  %v752_v34 = vpop.f32.mrf.mxu1 }
 0x170   :  { %11500 = vst [vmem:[#allocation30_spill] sm:$0xff] %v10648_v30  ;;  %11501 = vst [vmem:[#allocation31_spill] sm:$0xff] %v10651_v31  ;;  %v10654_v37 = vadd.f32 %v639_v33, %v10582_v52  ;;  %v10657_v50 = vadd.f32 %v752_v34, %v10585_v53 }
 0x171   :  { %v643_v51 = vpop.f32.mrf.mxu0  ;;  %v756_v56 = vpop.f32.mrf.mxu1 }
 0x172   :  { %11502 = vst [vmem:[#allocation32_spill] sm:$0xff] %v10654_v37  ;;  %11503 = vst [vmem:[#allocation33_spill] sm:$0xff] %v10657_v50  ;;  %v10660_v57 = vadd.f32 %v643_v51, %v10576_v48  ;;  %v10663_v60 = vadd.f32 %v756_v56, %v10579_v49 }
 0x173   :  { %v645_v61 = vpop.f32.mrf.mxu0  ;;  %v758_v0 = vpop.f32.mrf.mxu1 }
 0x174   :  { %11504 = vst [vmem:[#allocation34_spill] sm:$0xff] %v10660_v57  ;;  %11505 = vst [vmem:[#allocation35_spill] sm:$0xff] %v10663_v60  ;;  %v10666_v1 = vadd.f32 %v645_v61, %v10582_v52  ;;  %v10669_v4 = vadd.f32 %v758_v0, %v10585_v53 }
 0x175   :  { %v647_v5 = vpop.f32.mrf.mxu0  ;;  %v760_v8 = vpop.f32.mrf.mxu1 }
 0x176   :  { %11506 = vst [vmem:[#allocation36_spill] sm:$0xff] %v10666_v1  ;;  %11507 = vst [vmem:[#allocation37_spill] sm:$0xff] %v10669_v4  ;;  %v10672_v9 = vadd.f32 %v647_v5, %v10576_v48  ;;  %v10675_v12 = vadd.f32 %v760_v8, %v10579_v49  ;;  %v10962_v4 = vld [vmem:[%s11458_s3 + $0xe4] ss:$16 sps:$4 sm:$0xff]  }
 0x177   :  { %v649_v13 = vpop.f32.mrf.mxu0  ;;  %v762_v16 = vpop.f32.mrf.mxu1 }
 0x178   :  { %11508 = vst [vmem:[#allocation38_spill] sm:$0xff] %v10672_v9  ;;  %11509 = vst [vmem:[#allocation39_spill] sm:$0xff] %v10675_v12  ;;  %v10678_v17 = vadd.f32 %v649_v13, %v10582_v52  ;;  %v10681_v20 = vadd.f32 %v762_v16, %v10585_v53  ;;  %v10968_v12 = vld [vmem:[%s11458_s3 + $0xec] ss:$16 sps:$4 sm:$0xff]  }
 0x179   :  { %v653_v21 = vpop.f32.mrf.mxu0  ;;  %v766_v24 = vpop.f32.mrf.mxu1 }
 0x17a   :  { %11510 = vst [vmem:[#allocation40_spill] sm:$0xff] %v10678_v17  ;;  %11511 = vst [vmem:[#allocation41_spill] sm:$0xff] %v10681_v20  ;;  %v10684_v25 = vadd.f32 %v653_v21, %v10576_v48  ;;  %v10687_v28 = vadd.f32 %v766_v24, %v10579_v49  ;;  %v10956_v20 = vld [vmem:[%s11458_s3 + $0x8] ss:$16 sps:$4 sm:$0xff]  }
 0x17b   :  { %v655_v29 = vpop.f32.mrf.mxu0  ;;  %v768_v33 = vpop.f32.mrf.mxu1 }
 0x17c   :  { %11512 = vst [vmem:[#allocation42_spill] sm:$0xff] %v10684_v25  ;;  %11513 = vst [vmem:[#allocation43_spill] sm:$0xff] %v10687_v28  ;;  %v10690_v34 = vadd.f32 %v655_v29, %v10582_v52  ;;  %v10693_v51 = vadd.f32 %v768_v33, %v10585_v53  ;;  %v10926_v28 = vld [vmem:[%s11458_s3 + $0x20] ss:$16 sps:$4 sm:$0xff]  }
 0x17d   :  { %v657_v56 = vpop.f32.mrf.mxu0  ;;  %v770_v61 = vpop.f32.mrf.mxu1  ;;  %v10950_v25 = vld [vmem:[%s11458_s3] ss:$16 sps:$4 sm:$0xff]  }
 0x17e   :  { %11514 = vst [vmem:[#allocation44_spill] sm:$0xff] %v10690_v34  ;;  %11515 = vst [vmem:[#allocation45_spill] sm:$0xff] %v10693_v51  ;;  %v10696_v0 = vadd.f32 %v657_v56, %v10576_v48  ;;  %v10699_v5 = vadd.f32 %v770_v61, %v10579_v49  ;;  %v10944_v34 = vld [vmem:[%s11458_s3 + $0xc] ss:$16 sps:$4 sm:$0xff]  }
 0x17f   :  { %v659_v8 = vpop.f32.mrf.mxu0  ;;  %v772_v13 = vpop.f32.mrf.mxu1 }
 0x180   :  { %11516 = vst [vmem:[#allocation46_spill] sm:$0xff] %v10696_v0  ;;  %11517 = vst [vmem:[#allocation47_spill] sm:$0xff] %v10699_v5  ;;  %v10702_v16 = vadd.f32 %v659_v8, %v10582_v52  ;;  %v10705_v21 = vadd.f32 %v772_v13, %v10585_v53  ;;  %v10938_v0 = vld [vmem:[%s11458_s3 + $0x4] ss:$16 sps:$4 sm:$0xff]  }
 0x181   :  { %v663_v24 = vpop.f32.mrf.mxu0  ;;  %v776_v29 = vpop.f32.mrf.mxu1 }
 0x182   :  { %11518 = vst [vmem:[#allocation48_spill] sm:$0xff] %v10702_v16  ;;  %11519 = vst [vmem:[#allocation49_spill] sm:$0xff] %v10705_v21  ;;  %v10708_v33 = vadd.f32 %v663_v24, %v10576_v48  ;;  %v10711_v32 = vadd.f32 %v776_v29, %v10579_v49  ;;  %v10932_v16 = vld [vmem:[%s11458_s3 + $0x28] ss:$16 sps:$4 sm:$0xff]  }
 0x183   :  { %v665_v56 = vpop.f32.mrf.mxu0  ;;  %v778_v45 = vpop.f32.mrf.mxu1 }
 0x184   :  { %11520 = vst [vmem:[#allocation50_spill] sm:$0xff] %v10708_v33  ;;  %11521 = vst [vmem:[#allocation51_spill] sm:$0xff] %v10711_v32  ;;  %v10714_v61 = vadd.f32 %v665_v56, %v10582_v52  ;;  %v10717_v44 = vadd.f32 %v778_v45, %v10585_v53 }
 0x185   :  { %v667_v8 = vpop.f32.mrf.mxu0  ;;  %v780_v41 = vpop.f32.mrf.mxu1 }
 0x186   :  { %11522 = vst [vmem:[#allocation52_spill] sm:$0xff] %v10714_v61  ;;  %11523 = vst [vmem:[#allocation53_spill] sm:$0xff] %v10717_v44  ;;  %v10720_v13 = vadd.f32 %v667_v8, %v10576_v48  ;;  %v10723_v40 = vadd.f32 %v780_v41, %v10579_v49 }
 0x187   :  { %v669_v24 = vpop.f32.mrf.mxu0  ;;  %v782_v33 = vpop.f32.mrf.mxu1 }
 0x188   :  { %11524 = vst [vmem:[#allocation54_spill] sm:$0xff] %v10720_v13  ;;  %11525 = vst [vmem:[#allocation55_spill] sm:$0xff] %v10723_v40  ;;  %v10726_v29 = vadd.f32 %v669_v24, %v10582_v52  ;;  %v10729_v32 = vadd.f32 %v782_v33, %v10585_v53 }
 0x189   :  { %v673_v56 = vpop.f32.mrf.mxu0  ;;  %v786_v61 = vpop.f32.mrf.mxu1 }
 0x18a   :  { %11526 = vst [vmem:[#allocation56_spill] sm:$0xff] %v10726_v29  ;;  %11527 = vst [vmem:[#allocation57_spill] sm:$0xff] %v10729_v32  ;;  %v10732_v45 = vadd.f32 %v673_v56, %v10576_v48  ;;  %v10735_v44 = vadd.f32 %v786_v61, %v10579_v49  ;;  %v604_v61 = vadd.f32 %v10548_v35, %v10576_v48 }
 0x18b   :  { %v675_v8 = vpop.f32.mrf.mxu0  ;;  %v788_v13 = vpop.f32.mrf.mxu1  ;;  %v610_v35 = vadd.f32 %v10571_v46, %v10582_v52 }
 0x18c   :  { %11528 = vst [vmem:[#allocation58_spill] sm:$0xff] %v10732_v45  ;;  %11529 = vst [vmem:[#allocation59_spill] sm:$0xff] %v10735_v44  ;;  %v10738_v41 = vadd.f32 %v675_v8, %v10582_v52  ;;  %v10741_v40 = vadd.f32 %v788_v13, %v10585_v53 }
 0x18d   :  { %v677_v24 = vpop.f32.mrf.mxu0  ;;  %v790_v29 = vpop.f32.mrf.mxu1 }
 0x18e   :  { %11530 = vst [vmem:[#allocation60_spill] sm:$0xff] %v10738_v41  ;;  %11531 = vst [vmem:[#allocation61_spill] sm:$0xff] %v10741_v40  ;;  %v10744_v33 = vadd.f32 %v677_v24, %v10576_v48  ;;  %v10747_v32 = vadd.f32 %v790_v29, %v10579_v49  ;;  %v606_v40 = vadd.f32 %v10555_v38, %v10582_v52 }
 0x18f   :  { %v679_v56 = vpop.f32.mrf.mxu0  ;;  %v792_v45 = vpop.f32.mrf.mxu1  ;;  %v608_v29 = vadd.f32 %v10563_v42, %v10576_v48  ;;  %v717_v42 = vadd.f32 %v10550_v36, %v10579_v49  ;;  %v719_v48 = vadd.f32 %v10557_v39, %v10585_v53 }
 0x190   :  { %11532 = vst [vmem:[#allocation62_spill] sm:$0xff] %v10744_v33  ;;  %11533 = vst [vmem:[#allocation63_spill] sm:$0xff] %v10747_v32  ;;  %v10752_v44 = vadd.f32 %v679_v56, %v10582_v52  ;;  %v10755_v8 = vadd.f32 %v792_v45, %v10585_v53 }
 0x191   :  { %v1093_v13 = vpop.f32.mrf.mxu0  ;;  %v1136_v56 = vpop.f32.mrf.mxu1 }
 0x192   :  { %11534 = vst [vmem:[#allocation64_spill] sm:$0xff] %v10752_v44  ;;  %11535 = vst [vmem:[#allocation65_spill] sm:$0xff] %v10755_v8  ;;  %v1145_v24 = vadd.f32 %v1093_v13, %v604_v61  ;;  %v1147_v46 = vadd.f32 %v1136_v56, %v717_v42 }
 0x193   :  { %v1095_v33 = vpop.f32.mrf.mxu0  ;;  %v1138_v38 = vpop.f32.mrf.mxu1 }
 0x194   :  { %v7696_v32 = vmul.f32 -1.442695, %v1145_v24  ;;  %v1146_v41 = vadd.f32 %v1095_v33, %v606_v40  ;;  %v1148_v52 = vadd.f32 %v1138_v38, %v719_v48 }
 0x195   :  { %v1097_v21 = vpop.f32.mrf.mxu0  ;;  %v1140_v40 = vpop.f32.mrf.mxu1 }
 0x196   :  { %9610 = vpow2.f32 %v7696_v32  ;;  %v7697_v44 = vmul.f32 -1.442695, %v1146_v41  ;;  %v1149_v45 = vadd.f32 %v1097_v21, %v608_v29  ;;  %v721_v32 = vadd.f32 %v10565_v43, %v10579_v49 }
 0x197   :  { %v1099_v8 = vpop.f32.mrf.mxu0  ;;  %v7698_v41 = vmul.f32 -1.442695, %v1147_v46 }
 0x198   :  { %9612 = vpow2.f32 %v7697_v44  ;;  %v7699_v51 = vmul.f32 -1.442695, %v1149_v45  ;;  %v1150_v5 = vadd.f32 %v1099_v8, %v610_v35  ;;  %v1151_v21 = vadd.f32 %v1140_v40, %v721_v32  ;;  %v1142_v8 = vpop.f32.mrf.mxu1 }
 0x19a   :  { %9614 = vpow2.f32 %v7699_v51  ;;  %v7700_v61 = vmul.f32 -1.442695, %v1150_v5  ;;  %v723_v5 = vadd.f32 %v10573_v47, %v10585_v53  ;;  %v7701_v36 = vmul.f32 -1.442695, %v1151_v21 }
 0x19c   :  { %9616 = vpow2.f32 %v7700_v61  ;;  %v1152_v39 = vadd.f32 %v1142_v8, %v723_v5 }
 0x19d   :  { %9618 = vtanh.f32 %v1148_v52 }
 0x1a3   :  { %v9611_v44 = vpop.eup %9610 }
 0x1a4   :  { %v1171_v33 = vadd.f32 1.0, %v9611_v44 }
 0x1a5   :  { %v9613_v51 = vpop.eup %9612 }
 0x1a6   :  { %9620 = vrcp.f32 %v1171_v33  ;;  %v1172_v13 = vadd.f32 1.0, %v9613_v51 }
 0x1a7   :  { %v9615_v24 = vpop.eup %9614  ;;  %9622 = vpow2.f32 %v7698_v41 }
 0x1a8   :  { %9624 = vrcp.f32 %v1172_v13  ;;  %v1174_v43 = vadd.f32 1.0, %v9615_v24 }
 0x1a9   :  { %v9617_v49 = vpop.eup %9616  ;;  %9626 = vpow2.f32 %v7701_v36 }
 0x1aa   :  { %9628 = vrcp.f32 %v1174_v43  ;;  %v1175_v29 = vadd.f32 1.0, %v9617_v49  ;;  %v9619_v35 = vpop.eup %9618  ;;  %v10786_v43 = vld [vmem:[%s11458_s3 + $0xe8] ss:$16 sps:$4 sm:$0xff]   ;;  %v10792_v49 = vld [vmem:[%s11458_s3 + $0xc4] ss:$16 sps:$4 sm:$0xff]  }
 0x1ab   :  { %9630 = vtanh.f32 %v1152_v39  ;;  %v10780_v39 = vld [vmem:[%s11458_s3 + $0xe0] ss:$16 sps:$4 sm:$0xff]  }
 0x1ac   :  { %9632 = vrcp.f32 %v1175_v29  ;;  %v10798_v29 = vld [vmem:[%s11458_s3 + $0xcc] ss:$16 sps:$4 sm:$0xff]  }
 0x1b3   :  { %v9621_v56 = vpop.eup %9620 }
 0x1b4   :  { %v9623_v45 = vpop.eup %9622  ;;  %v1193_v38 = vmul.f32 %v9621_v56, %v9619_v35  ;;  %v11536_v35 = vmov 0   ;;  %v10806_v56 = vld [vmem:[%s11458_s3 + $0xc0] ss:$16 sps:$4 sm:$0xff]  }
 0x1b5   :  { %v9625_v47 = vpop.eup %9624  ;;  %v1173_v40 = vadd.f32 1.0, %v9623_v45  ;;  %v10812_v45 = vld [vmem:[%s11458_s3 + $0xc8] ss:$16 sps:$4 sm:$0xff]  }
 0x1b6   :  { %v9627_v53 = vpop.eup %9626  ;;  %v1191_v61 = vmul.f32 0.0, %v9625_v47  ;;  %v10824_v47 = vld [vmem:[%s11458_s3 + $0xac] ss:$16 sps:$4 sm:$0xff]  }
 0x1b7   :  { %v9629_v42 = vpop.eup %9628  ;;  %v1176_v52 = vadd.f32 1.0, %v9627_v53  ;;  %9634 = vrcp.f32 %v1173_v40  ;;  %v10830_v53 = vld [vmem:[%s11458_s3 + $0xa0] ss:$16 sps:$4 sm:$0xff]   ;;  %v10848_v40 = vld [vmem:[%s11458_s3 + $0x8c] ss:$16 sps:$4 sm:$0xff]  }
 0x1b8   :  { %v9631_v48 = vpop.eup %9630  ;;  %v10771_v32 = vadd.f32 %v1193_v38, %v1191_v61  ;;  %v10818_v38 = vld [vmem:[%s11458_s3 + $0xa4] ss:$16 sps:$4 sm:$0xff]   ;;  %v10836_v61 = vld [vmem:[%s11458_s3 + $0xa8] ss:$16 sps:$4 sm:$0xff]  }
 0x1b9   :  { %v9633_v46 = vpop.eup %9632  ;;  %v1194_v44 = vmul.f32 %v9631_v48, %v9629_v42  ;;  %v10842_v42 = vld [vmem:[%s11458_s3 + $0x84] ss:$16 sps:$4 sm:$0xff]   ;;  %v10854_v48 = vld [vmem:[%s11458_s3 + $0x80] ss:$16 sps:$4 sm:$0xff]  }
 0x1ba   :  { %v1192_v21 = vmul.f32 0.0, %v9633_v46  ;;  %9636 = vtanh.f32 %v10771_v32  ;;  %v10860_v46 = vld [vmem:[%s11458_s3 + $0x88] ss:$16 sps:$4 sm:$0xff]  }
 0x1bb   :  { %9638 = vrcp.f32 %v1176_v52  ;;  %v10866_v52 = vld [vmem:[%s11458_s3 + $0x64] ss:$16 sps:$4 sm:$0xff]  }
 0x1bc   :  { %v10774_v41 = vadd.f32 %v1194_v44, %v1192_v21  ;;  %v10872_v21 = vld [vmem:[%s11458_s3 + $0x6c] ss:$16 sps:$4 sm:$0xff]   ;;  %v10878_v44 = vld [vmem:[%s11458_s3 + $0x60] ss:$16 sps:$4 sm:$0xff]  }
 0x1be   :  { %9640 = vtanh.f32 %v10774_v41 }
 0x1c4   :  { %v9635_v33 = vpop.eup %9634 }
 0x1c7   :  { %v9637_v8 = vpop.eup %9636 }
 0x1c8   :  { %v9639_v51 = vpop.eup %9638  ;;  %v1199_v36 = vmul.f32 %v9637_v8, %v9635_v33  ;;  %v10884_v33 = vld [vmem:[%s11458_s3 + $0x68] ss:$16 sps:$4 sm:$0xff]   ;;  %v10890_v8 = vld [vmem:[%s11458_s3 + $0x44] ss:$16 sps:$4 sm:$0xff]  }
 0x1cb   :  { %v9641_v5 = vpop.eup %9640 }
 0x1cc   :  { %v1200_v13 = vmul.f32 %v9641_v5, %v9639_v51  ;;  %v10896_v51 = vld [vmem:[%s11458_s3 + $0x4c] ss:$16 sps:$4 sm:$0xff]   ;;  %v10902_v5 = vld [vmem:[%s11458_s3 + $0x40] ss:$16 sps:$4 sm:$0xff]  }
 0x1ce   :  { %v1209_v24 = vpack.c.bf16 %v1200_v13, %v1199_v36  ;;  %v10908_v36 = vld [vmem:[%s11458_s3 + $0x48] ss:$16 sps:$4 sm:$0xff]   ;;  %v10914_v13 = vld [vmem:[%s11458_s3 + $0x24] ss:$16 sps:$4 sm:$0xff]  }
 0x1d0   :  { %1243 = vmatmul.mubr.bf16.vlgmr.msra.gmra.mxu0 %v1209_v24  ;;  %1286 = vmatmul.mubr.bf16.vlgmr.msra.gmra.mxu1 %v1209_v24  ;;  %v10920_v24 = vld [vmem:[%s11458_s3 + $0x2c] ss:$16 sps:$4 sm:$0xff]  }
 0x1d1   :  { %1362 = vmatpush1.bf16.msra.mxu0 %v10780_v39  ;;  %1405 = vmatpush1.bf16.msra.mxu1 %v10786_v43 }
 0x1d2   :  { %1363 = vmatprep.subr.bf16.mxu0 %v10792_v49  ;;  %1406 = vmatprep.subr.bf16.mxu1 %v10798_v29 }
 0x1d3   :  { %1393 = vmatprep.mubr.bf16.mxu0 %v11536_v35  ;;  %1436 = vmatprep.mubr.bf16.mxu1 %v11536_v35 }
 0x1d5   :  { %1364 = vmatpush1.bf16.msra.mxu0 %v10806_v56  ;;  %1407 = vmatpush1.bf16.msra.mxu1 %v10812_v45 }
 0x1d6   :  { %1365 = vmatprep.subr.bf16.mxu0 %v10818_v38  ;;  %1408 = vmatprep.subr.bf16.mxu1 %v10824_v47 }
 0x1d9   :  { %1366 = vmatpush1.bf16.msra.mxu0 %v10830_v53  ;;  %1409 = vmatpush1.bf16.msra.mxu1 %v10836_v61 }
 0x1da   :  { %1367 = vmatprep.subr.bf16.mxu0 %v10842_v42  ;;  %1410 = vmatprep.subr.bf16.mxu1 %v10848_v40 }
 0x1dd   :  { %1368 = vmatpush1.bf16.msra.mxu0 %v10854_v48  ;;  %1411 = vmatpush1.bf16.msra.mxu1 %v10860_v46 }
 0x1de   :  { %1369 = vmatprep.subr.bf16.mxu0 %v10866_v52  ;;  %1412 = vmatprep.subr.bf16.mxu1 %v10872_v21 }
 0x1e1   :  { %1370 = vmatpush1.bf16.msra.mxu0 %v10878_v44  ;;  %1413 = vmatpush1.bf16.msra.mxu1 %v10884_v33 }
 0x1e2   :  { %1371 = vmatprep.subr.bf16.mxu0 %v10890_v8  ;;  %1414 = vmatprep.subr.bf16.mxu1 %v10896_v51 }
 0x1e5   :  { %1372 = vmatpush1.bf16.msra.mxu0 %v10902_v5  ;;  %1415 = vmatpush1.bf16.msra.mxu1 %v10908_v36 }
 0x1e6   :  { %1373 = vmatprep.subr.bf16.mxu0 %v10914_v13  ;;  %1416 = vmatprep.subr.bf16.mxu1 %v10920_v24 }
 0x1e9   :  { %1374 = vmatpush1.bf16.msra.mxu0 %v10926_v28  ;;  %1417 = vmatpush1.bf16.msra.mxu1 %v10932_v16 }
 0x1ea   :  { %1375 = vmatprep.subr.bf16.mxu0 %v10938_v0  ;;  %1418 = vmatprep.subr.bf16.mxu1 %v10944_v34 }
 0x1ed   :  { %1376 = vmatpush1.bf16.msra.mxu0 %v10950_v25  ;;  %1419 = vmatpush1.bf16.msra.mxu1 %v10956_v20 }
 0x1ee   :  { %1512 = vmatprep.subr.bf16.mxu0 %v10962_v4  ;;  %1555 = vmatprep.subr.bf16.mxu1 %v10968_v12 }
 0x290   :  { %v1244_v60 = vpop.f32.mrf.mxu0  ;;  %v1287_v57 = vpop.f32.mrf.mxu1 }
 0x291   :  { %v1296_v17 = vadd.f32 %v1244_v60, %v10588_v54  ;;  %v1298_v54 = vadd.f32 %v1287_v57, %v10591_v55 }
 0x292   :  { %v1246_v9 = vpop.f32.mrf.mxu0  ;;  %v1289_v30 = vpop.f32.mrf.mxu1 }
 0x293   :  { %v7702_v1 = vmul.f32 -1.442695, %v1296_v17  ;;  %v1297_v50 = vadd.f32 %v1246_v9, %v10594_v58  ;;  %v7704_v58 = vmul.f32 -1.442695, %v1298_v54 }
 0x294   :  { %v1248_v27 = vpop.f32.mrf.mxu0  ;;  %v1291_v60 = vpop.f32.mrf.mxu1 }
 0x295   :  { %9642 = vpow2.f32 %v7702_v1  ;;  %v7703_v31 = vmul.f32 -1.442695, %v1297_v50  ;;  %v1300_v23 = vadd.f32 %v1248_v27, %v10600_v62  ;;  %v1302_v17 = vadd.f32 %v1291_v60, %v10603_v63 }
 0x296   :  { %v1250_v37 = vpop.f32.mrf.mxu0  ;;  %v1299_v1 = vadd.f32 %v1289_v30, %v10597_v59  ;;  %v1293_v50 = vpop.f32.mrf.mxu1 }
 0x297   :  { %9644 = vpow2.f32 %v7703_v31  ;;  %v7705_v26 = vmul.f32 -1.442695, %v1300_v23  ;;  %v1301_v22 = vadd.f32 %v1250_v37, %v10606_v2  ;;  %v7707_v62 = vmul.f32 -1.442695, %v1302_v17 }
 0x298   :  { %v1303_v2 = vadd.f32 %v1293_v50, %v10609_v3 }
 0x299   :  { %9646 = vpow2.f32 %v7705_v26  ;;  %v7706_v19 = vmul.f32 -1.442695, %v1301_v22 }
 0x29b   :  { %9648 = vpow2.f32 %v7706_v19 }
 0x29c   :  { %9650 = vpow2.f32 %v7704_v58 }
 0x29d   :  { %9652 = vtanh.f32 %v1299_v1 }
 0x2a2   :  { %v9643_v9 = vpop.eup %9642 }
 0x2a3   :  { %v1322_v27 = vadd.f32 1.0, %v9643_v9 }
 0x2a4   :  { %v9645_v31 = vpop.eup %9644 }
 0x2a5   :  { %9654 = vrcp.f32 %v1322_v27  ;;  %v1323_v22 = vadd.f32 1.0, %v9645_v31 }
 0x2a6   :  { %v9647_v23 = vpop.eup %9646  ;;  %9656 = vpow2.f32 %v7707_v62 }
 0x2a7   :  { %9658 = vrcp.f32 %v1323_v22  ;;  %v1325_v55 = vadd.f32 1.0, %v9647_v23 }
 0x2a8   :  { %v9649_v19 = vpop.eup %9648  ;;  %9660 = vtanh.f32 %v1303_v2 }
 0x2a9   :  { %9662 = vrcp.f32 %v1325_v55  ;;  %v1326_v63 = vadd.f32 1.0, %v9649_v19  ;;  %v9651_v59 = vpop.eup %9650 }
 0x2aa   :  { %v9653_v26 = vpop.eup %9652  ;;  %v1324_v58 = vadd.f32 1.0, %v9651_v59 }
 0x2ab   :  { %9664 = vrcp.f32 %v1326_v63 }
 0x2ac   :  { %9666 = vrcp.f32 %v1324_v58 }
 0x2b2   :  { %v9655_v30 = vpop.eup %9654 }
 0x2b3   :  { %v9657_v37 = vpop.eup %9656  ;;  %v1344_v57 = vmul.f32 %v9655_v30, %v9653_v26 }
 0x2b4   :  { %v9659_v54 = vpop.eup %9658  ;;  %v1327_v62 = vadd.f32 1.0, %v9657_v37 }
 0x2b5   :  { %v9661_v60 = vpop.eup %9660  ;;  %v1342_v3 = vmul.f32 %v9659_v54, %v10771_v32 }
 0x2b6   :  { %v9663_v17 = vpop.eup %9662 }
 0x2b7   :  { %v10980_v1 = vadd.f32 %v1344_v57, %v1342_v3  ;;  %v1345_v50 = vmul.f32 %v9663_v17, %v9661_v60 }
 0x2b8   :  { %v9665_v9 = vpop.eup %9664 }
 0x2b9   :  { %v1343_v27 = vmul.f32 %v9665_v9, %v10774_v41  ;;  %9668 = vtanh.f32 %v10980_v1  ;;  %v9667_v2 = vpop.eup %9666 }
 0x2ba   :  { %9670 = vrcp.f32 %v1327_v62 }
 0x2bb   :  { %v10984_v31 = vadd.f32 %v1345_v50, %v1343_v27 }
 0x2bd   :  { %9672 = vtanh.f32 %v10984_v31 }
 0x2c6   :  { %v9669_v22 = vpop.eup %9668 }
 0x2c7   :  { %v9671_v32 = vpop.eup %9670  ;;  %v1350_v55 = vmul.f32 %v9669_v22, %v9667_v2 }
 0x2ca   :  { %v9673_v23 = vpop.eup %9672 }
 0x2cb   :  { %v1351_v19 = vmul.f32 %v9673_v23, %v9671_v32 }
 0x2cd   :  { %v1360_v63 = vpack.c.bf16 %v1351_v19, %v1350_v55 }
 0x2cf   :  { %1394 = vmatmul.mubr.bf16.vlgmr.msra.gmra.mxu0 %v1360_v63  ;;  %1437 = vmatmul.mubr.bf16.vlgmr.msra.gmra.mxu1 %v1360_v63  ;;  %v11537_v63 = vld [vmem:[#allocation25_spill] sm:$0xff] }
 0x2d0   :  { %1513 = vmatpush1.bf16.msra.mxu0 %v10780_v39  ;;  %1556 = vmatpush1.bf16.msra.mxu1 %v10786_v43 }
 0x2d1   :  { %1514 = vmatprep.subr.bf16.mxu0 %v10792_v49  ;;  %1557 = vmatprep.subr.bf16.mxu1 %v10798_v29 }
 0x2d2   :  { %1544 = vmatprep.mubr.bf16.mxu0 %v11536_v35  ;;  %1587 = vmatprep.mubr.bf16.mxu1 %v11536_v35 }
 0x2d4   :  { %1515 = vmatpush1.bf16.msra.mxu0 %v10806_v56  ;;  %1558 = vmatpush1.bf16.msra.mxu1 %v10812_v45 }
 0x2d5   :  { %1516 = vmatprep.subr.bf16.mxu0 %v10818_v38  ;;  %1559 = vmatprep.subr.bf16.mxu1 %v10824_v47 }
 0x2d8   :  { %1517 = vmatpush1.bf16.msra.mxu0 %v10830_v53  ;;  %1560 = vmatpush1.bf16.msra.mxu1 %v10836_v61 }
 0x2d9   :  { %1518 = vmatprep.subr.bf16.mxu0 %v10842_v42  ;;  %1561 = vmatprep.subr.bf16.mxu1 %v10848_v40 }
 0x2dc   :  { %1519 = vmatpush1.bf16.msra.mxu0 %v10854_v48  ;;  %1562 = vmatpush1.bf16.msra.mxu1 %v10860_v46 }
 0x2dd   :  { %1520 = vmatprep.subr.bf16.mxu0 %v10866_v52  ;;  %1563 = vmatprep.subr.bf16.mxu1 %v10872_v21 }
 0x2e0   :  { %1521 = vmatpush1.bf16.msra.mxu0 %v10878_v44  ;;  %1564 = vmatpush1.bf16.msra.mxu1 %v10884_v33 }
 0x2e1   :  { %1522 = vmatprep.subr.bf16.mxu0 %v10890_v8  ;;  %1565 = vmatprep.subr.bf16.mxu1 %v10896_v51 }
 0x2e4   :  { %1523 = vmatpush1.bf16.msra.mxu0 %v10902_v5  ;;  %1566 = vmatpush1.bf16.msra.mxu1 %v10908_v36 }
 0x2e5   :  { %1524 = vmatprep.subr.bf16.mxu0 %v10914_v13  ;;  %1567 = vmatprep.subr.bf16.mxu1 %v10920_v24 }
 0x2e8   :  { %1525 = vmatpush1.bf16.msra.mxu0 %v10926_v28  ;;  %1568 = vmatpush1.bf16.msra.mxu1 %v10932_v16 }
 0x2e9   :  { %1526 = vmatprep.subr.bf16.mxu0 %v10938_v0  ;;  %1569 = vmatprep.subr.bf16.mxu1 %v10944_v34 }
 0x2ec   :  { %1527 = vmatpush1.bf16.msra.mxu0 %v10950_v25  ;;  %1570 = vmatpush1.bf16.msra.mxu1 %v10956_v20 }
 0x2ed   :  { %1663 = vmatprep.subr.bf16.mxu0 %v10962_v4  ;;  %1706 = vmatprep.subr.bf16.mxu1 %v10968_v12 }
 0x38f   :  { %v1395_v41 = vpop.f32.mrf.mxu0  ;;  %v1438_v37 = vpop.f32.mrf.mxu1 }
 0x390   :  { %v1447_v59 = vadd.f32 %v1395_v41, %v10612_v6  ;;  %v1449_v6 = vadd.f32 %v1438_v37, %v10615_v7 }
 0x391   :  { %v1397_v26 = vpop.f32.mrf.mxu0  ;;  %v1440_v58 = vpop.f32.mrf.mxu1 }
 0x392   :  { %v7708_v30 = vmul.f32 -1.442695, %v1447_v59  ;;  %v1448_v57 = vadd.f32 %v1397_v26, %v10618_v10  ;;  %v7710_v10 = vmul.f32 -1.442695, %v1449_v6  ;;  %v1450_v22 = vadd.f32 %v1440_v58, %v10621_v11 }
 0x393   :  { %v1399_v54 = vpop.f32.mrf.mxu0  ;;  %v1442_v27 = vpop.f32.mrf.mxu1 }
 0x394   :  { %9674 = vpow2.f32 %v7708_v30  ;;  %v7709_v60 = vmul.f32 -1.442695, %v1448_v57  ;;  %v1451_v3 = vadd.f32 %v1399_v54, %v10624_v14  ;;  %v1453_v2 = vadd.f32 %v1442_v27, %v10627_v15 }
 0x395   :  { %v1401_v17 = vpop.f32.mrf.mxu0  ;;  %v1444_v32 = vpop.f32.mrf.mxu1 }
 0x396   :  { %9676 = vpow2.f32 %v7709_v60  ;;  %v7711_v50 = vmul.f32 -1.442695, %v1451_v3  ;;  %v1452_v9 = vadd.f32 %v1401_v17, %v10630_v18  ;;  %v7713_v14 = vmul.f32 -1.442695, %v1453_v2 }
 0x397   :  { %v1454_v18 = vadd.f32 %v1444_v32, %v11537_v63  ;;  %v11538_v63 = vld [vmem:[#allocation26_spill] sm:$0xff] }
 0x398   :  { %9678 = vpow2.f32 %v7711_v50  ;;  %v7712_v62 = vmul.f32 -1.442695, %v1452_v9 }
 0x39a   :  { %9680 = vpow2.f32 %v7712_v62 }
 0x39b   :  { %9682 = vpow2.f32 %v7710_v10 }
 0x39c   :  { %9684 = vtanh.f32 %v1450_v22 }
 0x3a1   :  { %v9675_v23 = vpop.eup %9674 }
 0x3a2   :  { %v1473_v55 = vadd.f32 1.0, %v9675_v23 }
 0x3a3   :  { %v9677_v19 = vpop.eup %9676 }
 0x3a4   :  { %9686 = vrcp.f32 %v1473_v55  ;;  %v1474_v41 = vadd.f32 1.0, %v9677_v19 }
 0x3a5   :  { %v9679_v59 = vpop.eup %9678  ;;  %9688 = vpow2.f32 %v7713_v14 }
 0x3a6   :  { %9690 = vrcp.f32 %v1474_v41  ;;  %v1476_v7 = vadd.f32 1.0, %v9679_v59 }
 0x3a7   :  { %v9681_v26 = vpop.eup %9680  ;;  %9692 = vtanh.f32 %v1454_v18 }
 0x3a8   :  { %9694 = vrcp.f32 %v1476_v7  ;;  %v1477_v15 = vadd.f32 1.0, %v9681_v26  ;;  %v9683_v11 = vpop.eup %9682  ;;  %v11539_v26 = vld [vmem:[#allocation28_spill] sm:$0xff] }
 0x3a9   :  { %v9685_v30 = vpop.eup %9684  ;;  %v1475_v50 = vadd.f32 1.0, %v9683_v11 }
 0x3aa   :  { %9696 = vrcp.f32 %v1477_v15 }
 0x3ab   :  { %9698 = vrcp.f32 %v1475_v50 }
 0x3b1   :  { %v9687_v37 = vpop.eup %9686 }
 0x3b2   :  { %v9689_v57 = vpop.eup %9688  ;;  %v1495_v54 = vmul.f32 %v9687_v37, %v9685_v30  ;;  %v11540_v37 = vld [vmem:[#allocation30_spill] sm:$0xff] }
 0x3b3   :  { %v9691_v60 = vpop.eup %9690  ;;  %v1478_v27 = vadd.f32 1.0, %v9689_v57 }
 0x3b4   :  { %v9693_v3 = vpop.eup %9692  ;;  %v1493_v17 = vmul.f32 %v9691_v60, %v10980_v1 }
 0x3b5   :  { %v9695_v58 = vpop.eup %9694 }
 0x3b6   :  { %v11030_v9 = vadd.f32 %v1495_v54, %v1493_v17  ;;  %v1496_v62 = vmul.f32 %v9695_v58, %v9693_v3  ;;  %v11541_v17 = vld [vmem:[#allocation32_spill] sm:$0xff] }
 0x3b7   :  { %v9697_v6 = vpop.eup %9696 }
 0x3b8   :  { %v1494_v2 = vmul.f32 %v9697_v6, %v10984_v31  ;;  %9700 = vtanh.f32 %v11030_v9  ;;  %v9699_v22 = vpop.eup %9698 }
 0x3b9   :  { %9702 = vrcp.f32 %v1478_v27 }
 0x3ba   :  { %v11034_v10 = vadd.f32 %v1496_v62, %v1494_v2  ;;  %v11542_v62 = vld [vmem:[#allocation27_spill] sm:$0xff] }
 0x3bb   :  { %v11543_v2 = vld [vmem:[#allocation31_spill] sm:$0xff] }
 0x3bc   :  { %9704 = vtanh.f32 %v11034_v10 }
 0x3c5   :  { %v9701_v32 = vpop.eup %9700 }
 0x3c6   :  { %v9703_v1 = vpop.eup %9702  ;;  %v1501_v14 = vmul.f32 %v9701_v32, %v9699_v22 }
 0x3c9   :  { %v9705_v23 = vpop.eup %9704 }
 0x3ca   :  { %v1502_v55 = vmul.f32 %v9705_v23, %v9703_v1  ;;  %v11544_v1 = vld [vmem:[#allocation29_spill] sm:$0xff] }
 0x3cc   :  { %v1511_v19 = vpack.c.bf16 %v1502_v55, %v1501_v14 }
 0x3ce   :  { %1545 = vmatmul.mubr.bf16.vlgmr.msra.gmra.mxu0 %v1511_v19  ;;  %1588 = vmatmul.mubr.bf16.vlgmr.msra.gmra.mxu1 %v1511_v19 }
 0x3cf   :  { %1664 = vmatpush1.bf16.msra.mxu0 %v10780_v39  ;;  %1707 = vmatpush1.bf16.msra.mxu1 %v10786_v43 }
 0x3d0   :  { %1665 = vmatprep.subr.bf16.mxu0 %v10792_v49  ;;  %1708 = vmatprep.subr.bf16.mxu1 %v10798_v29 }
 0x3d1   :  { %1695 = vmatprep.mubr.bf16.mxu0 %v11536_v35  ;;  %1738 = vmatprep.mubr.bf16.mxu1 %v11536_v35 }
 0x3d3   :  { %1666 = vmatpush1.bf16.msra.mxu0 %v10806_v56  ;;  %1709 = vmatpush1.bf16.msra.mxu1 %v10812_v45 }
 0x3d4   :  { %1667 = vmatprep.subr.bf16.mxu0 %v10818_v38  ;;  %1710 = vmatprep.subr.bf16.mxu1 %v10824_v47 }
 0x3d7   :  { %1668 = vmatpush1.bf16.msra.mxu0 %v10830_v53  ;;  %1711 = vmatpush1.bf16.msra.mxu1 %v10836_v61 }
 0x3d8   :  { %1669 = vmatprep.subr.bf16.mxu0 %v10842_v42  ;;  %1712 = vmatprep.subr.bf16.mxu1 %v10848_v40 }
 0x3db   :  { %1670 = vmatpush1.bf16.msra.mxu0 %v10854_v48  ;;  %1713 = vmatpush1.bf16.msra.mxu1 %v10860_v46 }
 0x3dc   :  { %1671 = vmatprep.subr.bf16.mxu0 %v10866_v52  ;;  %1714 = vmatprep.subr.bf16.mxu1 %v10872_v21 }
 0x3df   :  { %1672 = vmatpush1.bf16.msra.mxu0 %v10878_v44  ;;  %1715 = vmatpush1.bf16.msra.mxu1 %v10884_v33 }
 0x3e0   :  { %1673 = vmatprep.subr.bf16.mxu0 %v10890_v8  ;;  %1716 = vmatprep.subr.bf16.mxu1 %v10896_v51 }
 0x3e3   :  { %1674 = vmatpush1.bf16.msra.mxu0 %v10902_v5  ;;  %1717 = vmatpush1.bf16.msra.mxu1 %v10908_v36 }
 0x3e4   :  { %1675 = vmatprep.subr.bf16.mxu0 %v10914_v13  ;;  %1718 = vmatprep.subr.bf16.mxu1 %v10920_v24 }
 0x3e7   :  { %1676 = vmatpush1.bf16.msra.mxu0 %v10926_v28  ;;  %1719 = vmatpush1.bf16.msra.mxu1 %v10932_v16 }
 0x3e8   :  { %1677 = vmatprep.subr.bf16.mxu0 %v10938_v0  ;;  %1720 = vmatprep.subr.bf16.mxu1 %v10944_v34 }
 0x3eb   :  { %1678 = vmatpush1.bf16.msra.mxu0 %v10950_v25  ;;  %1721 = vmatpush1.bf16.msra.mxu1 %v10956_v20 }
 0x3ec   :  { %1814 = vmatprep.subr.bf16.mxu0 %v10962_v4  ;;  %1857 = vmatprep.subr.bf16.mxu1 %v10968_v12 }
 0x48e   :  { %v1546_v31 = vpop.f32.mrf.mxu0  ;;  %v1589_v7 = vpop.f32.mrf.mxu1 }
 0x48f   :  { %v1598_v18 = vadd.f32 %v1546_v31, %v11538_v63  ;;  %v1600_v6 = vadd.f32 %v1589_v7, %v11542_v62 }
 0x490   :  { %v1548_v41 = vpop.f32.mrf.mxu0  ;;  %v1591_v60 = vpop.f32.mrf.mxu1 }
 0x491   :  { %v7714_v59 = vmul.f32 -1.442695, %v1598_v18  ;;  %v1599_v15 = vadd.f32 %v1548_v41, %v11539_v26  ;;  %v7716_v32 = vmul.f32 -1.442695, %v1600_v6  ;;  %v1601_v23 = vadd.f32 %v1591_v60, %v11544_v1  ;;  %v11545_v18 = vld [vmem:[#allocation33_spill] sm:$0xff] }
 0x492   :  { %v1550_v11 = vpop.f32.mrf.mxu0  ;;  %v1593_v27 = vpop.f32.mrf.mxu1 }
 0x493   :  { %9706 = vpow2.f32 %v7714_v59  ;;  %v7715_v30 = vmul.f32 -1.442695, %v1599_v15  ;;  %v1602_v57 = vadd.f32 %v1550_v11, %v11540_v37  ;;  %v1604_v22 = vadd.f32 %v1593_v27, %v11543_v2 }
 0x494   :  { %v1552_v54 = vpop.f32.mrf.mxu0  ;;  %v1595_v14 = vpop.f32.mrf.mxu1 }
 0x495   :  { %9708 = vpow2.f32 %v7715_v30  ;;  %v7717_v3 = vmul.f32 -1.442695, %v1602_v57  ;;  %v1603_v58 = vadd.f32 %v1552_v54, %v11541_v17  ;;  %v7719_v19 = vmul.f32 -1.442695, %v1604_v22 }
 0x496   :  { %v1605_v41 = vadd.f32 %v1595_v14, %v11545_v18  ;;  %v11546_v18 = vld [vmem:[#allocation34_spill] sm:$0xff] }
 0x497   :  { %9710 = vpow2.f32 %v7717_v3  ;;  %v7718_v50 = vmul.f32 -1.442695, %v1603_v58 }
 0x499   :  { %9712 = vpow2.f32 %v7718_v50 }
 0x49a   :  { %9714 = vpow2.f32 %v7716_v32 }
 0x49b   :  { %9716 = vtanh.f32 %v1601_v23 }
 0x4a0   :  { %v9707_v55 = vpop.eup %9706 }
 0x4a1   :  { %v1624_v31 = vadd.f32 1.0, %v9707_v55 }
 0x4a2   :  { %v9709_v63 = vpop.eup %9708 }
 0x4a3   :  { %9718 = vrcp.f32 %v1624_v31  ;;  %v1625_v59 = vadd.f32 1.0, %v9709_v63 }
 0x4a4   :  { %v9711_v26 = vpop.eup %9710  ;;  %9720 = vpow2.f32 %v7719_v19 }
 0x4a5   :  { %9722 = vrcp.f32 %v1625_v59  ;;  %v1627_v7 = vadd.f32 1.0, %v9711_v26 }
 0x4a6   :  { %v9713_v15 = vpop.eup %9712  ;;  %9724 = vtanh.f32 %v1605_v41 }
 0x4a7   :  { %9726 = vrcp.f32 %v1627_v7  ;;  %v1628_v11 = vadd.f32 1.0, %v9713_v15  ;;  %v9715_v30 = vpop.eup %9714  ;;  %v11547_v15 = vld [vmem:[#allocation36_spill] sm:$0xff] }
 0x4a8   :  { %v9717_v37 = vpop.eup %9716  ;;  %v1626_v62 = vadd.f32 1.0, %v9715_v30 }
 0x4a9   :  { %9728 = vrcp.f32 %v1628_v11 }
 0x4aa   :  { %9730 = vrcp.f32 %v1626_v62 }
 0x4b0   :  { %v9719_v57 = vpop.eup %9718 }
 0x4b1   :  { %v9721_v54 = vpop.eup %9720  ;;  %v1646_v60 = vmul.f32 %v9719_v57, %v9717_v37  ;;  %v11548_v57 = vld [vmem:[#allocation38_spill] sm:$0xff] }
 0x4b2   :  { %v9723_v3 = vpop.eup %9722  ;;  %v1629_v22 = vadd.f32 1.0, %v9721_v54 }
 0x4b3   :  { %v9725_v17 = vpop.eup %9724  ;;  %v1644_v58 = vmul.f32 %v9723_v3, %v11030_v9 }
 0x4b4   :  { %v9727_v50 = vpop.eup %9726 }
 0x4b5   :  { %v11080_v6 = vadd.f32 %v1646_v60, %v1644_v58  ;;  %v1647_v27 = vmul.f32 %v9727_v50, %v9725_v17  ;;  %v11549_v58 = vld [vmem:[#allocation40_spill] sm:$0xff] }
 0x4b6   :  { %v9729_v2 = vpop.eup %9728 }
 0x4b7   :  { %v1645_v32 = vmul.f32 %v9729_v2, %v11034_v10  ;;  %9732 = vtanh.f32 %v11080_v6  ;;  %v9731_v23 = vpop.eup %9730 }
 0x4b8   :  { %9734 = vrcp.f32 %v1629_v22 }
 0x4b9   :  { %v11084_v1 = vadd.f32 %v1647_v27, %v1645_v32  ;;  %v11550_v27 = vld [vmem:[#allocation35_spill] sm:$0xff] }
 0x4ba   :  { %v11551_v32 = vld [vmem:[#allocation39_spill] sm:$0xff] }
 0x4bb   :  { %9736 = vtanh.f32 %v11084_v1 }
 0x4c4   :  { %v9733_v14 = vpop.eup %9732 }
 0x4c5   :  { %v9735_v9 = vpop.eup %9734  ;;  %v1652_v19 = vmul.f32 %v9733_v14, %v9731_v23 }
 0x4c8   :  { %v9737_v55 = vpop.eup %9736 }
 0x4c9   :  { %v1653_v31 = vmul.f32 %v9737_v55, %v9735_v9  ;;  %v11552_v9 = vld [vmem:[#allocation37_spill] sm:$0xff] }
 0x4cb   :  { %v1662_v63 = vpack.c.bf16 %v1653_v31, %v1652_v19 }
 0x4cd   :  { %1696 = vmatmul.mubr.bf16.vlgmr.msra.gmra.mxu0 %v1662_v63  ;;  %1739 = vmatmul.mubr.bf16.vlgmr.msra.gmra.mxu1 %v1662_v63 }
 0x4ce   :  { %1815 = vmatpush1.bf16.msra.mxu0 %v10780_v39  ;;  %1858 = vmatpush1.bf16.msra.mxu1 %v10786_v43 }
 0x4cf   :  { %1816 = vmatprep.subr.bf16.mxu0 %v10792_v49  ;;  %1859 = vmatprep.subr.bf16.mxu1 %v10798_v29 }
 0x4d0   :  { %1846 = vmatprep.mubr.bf16.mxu0 %v11536_v35  ;;  %1889 = vmatprep.mubr.bf16.mxu1 %v11536_v35 }
 0x4d2   :  { %1817 = vmatpush1.bf16.msra.mxu0 %v10806_v56  ;;  %1860 = vmatpush1.bf16.msra.mxu1 %v10812_v45 }
 0x4d3   :  { %1818 = vmatprep.subr.bf16.mxu0 %v10818_v38  ;;  %1861 = vmatprep.subr.bf16.mxu1 %v10824_v47 }
 0x4d6   :  { %1819 = vmatpush1.bf16.msra.mxu0 %v10830_v53  ;;  %1862 = vmatpush1.bf16.msra.mxu1 %v10836_v61 }
 0x4d7   :  { %1820 = vmatprep.subr.bf16.mxu0 %v10842_v42  ;;  %1863 = vmatprep.subr.bf16.mxu1 %v10848_v40 }
 0x4da   :  { %1821 = vmatpush1.bf16.msra.mxu0 %v10854_v48  ;;  %1864 = vmatpush1.bf16.msra.mxu1 %v10860_v46 }
 0x4db   :  { %1822 = vmatprep.subr.bf16.mxu0 %v10866_v52  ;;  %1865 = vmatprep.subr.bf16.mxu1 %v10872_v21 }
 0x4de   :  { %1823 = vmatpush1.bf16.msra.mxu0 %v10878_v44  ;;  %1866 = vmatpush1.bf16.msra.mxu1 %v10884_v33 }
 0x4df   :  { %1824 = vmatprep.subr.bf16.mxu0 %v10890_v8  ;;  %1867 = vmatprep.subr.bf16.mxu1 %v10896_v51 }
 0x4e2   :  { %1825 = vmatpush1.bf16.msra.mxu0 %v10902_v5  ;;  %1868 = vmatpush1.bf16.msra.mxu1 %v10908_v36 }
 0x4e3   :  { %1826 = vmatprep.subr.bf16.mxu0 %v10914_v13  ;;  %1869 = vmatprep.subr.bf16.mxu1 %v10920_v24 }
 0x4e6   :  { %1827 = vmatpush1.bf16.msra.mxu0 %v10926_v28  ;;  %1870 = vmatpush1.bf16.msra.mxu1 %v10932_v16 }
 0x4e7   :  { %1828 = vmatprep.subr.bf16.mxu0 %v10938_v0  ;;  %1871 = vmatprep.subr.bf16.mxu1 %v10944_v34 }
 0x4ea   :  { %1829 = vmatpush1.bf16.msra.mxu0 %v10950_v25  ;;  %1872 = vmatpush1.bf16.msra.mxu1 %v10956_v20 }
 0x4eb   :  { %1965 = vmatprep.subr.bf16.mxu0 %v10962_v4  ;;  %2008 = vmatprep.subr.bf16.mxu1 %v10968_v12 }
 0x58d   :  { %v1697_v10 = vpop.f32.mrf.mxu0  ;;  %v1740_v7 = vpop.f32.mrf.mxu1 }
 0x58e   :  { %v1749_v41 = vadd.f32 %v1697_v10, %v11546_v18  ;;  %v1751_v2 = vadd.f32 %v1740_v7, %v11550_v27 }
 0x58f   :  { %v1699_v59 = vpop.f32.mrf.mxu0  ;;  %v1742_v3 = vpop.f32.mrf.mxu1 }
 0x590   :  { %v7720_v26 = vmul.f32 -1.442695, %v1749_v41  ;;  %v1750_v11 = vadd.f32 %v1699_v59, %v11547_v15  ;;  %v7722_v14 = vmul.f32 -1.442695, %v1751_v2  ;;  %v1752_v55 = vadd.f32 %v1742_v3, %v11552_v9  ;;  %v11553_v41 = vld [vmem:[#allocation41_spill] sm:$0xff] }
 0x591   :  { %v1701_v30 = vpop.f32.mrf.mxu0  ;;  %v1744_v22 = vpop.f32.mrf.mxu1 }
 0x592   :  { %9738 = vpow2.f32 %v7720_v26  ;;  %v7721_v37 = vmul.f32 -1.442695, %v1750_v11  ;;  %v1753_v54 = vadd.f32 %v1701_v30, %v11548_v57  ;;  %v1755_v23 = vadd.f32 %v1744_v22, %v11551_v32 }
 0x593   :  { %v1703_v60 = vpop.f32.mrf.mxu0  ;;  %v1746_v19 = vpop.f32.mrf.mxu1 }
 0x594   :  { %9740 = vpow2.f32 %v7721_v37  ;;  %v7723_v17 = vmul.f32 -1.442695, %v1753_v54  ;;  %v1754_v50 = vadd.f32 %v1703_v60, %v11549_v58  ;;  %v7725_v63 = vmul.f32 -1.442695, %v1755_v23 }
 0x595   :  { %v1756_v59 = vadd.f32 %v1746_v19, %v11553_v41 }
 0x596   :  { %9742 = vpow2.f32 %v7723_v17  ;;  %v7724_v62 = vmul.f32 -1.442695, %v1754_v50 }
 0x598   :  { %9744 = vpow2.f32 %v7724_v62 }
 0x599   :  { %9746 = vpow2.f32 %v7722_v14 }
 0x59a   :  { %9748 = vtanh.f32 %v1752_v55 }
 0x59f   :  { %v9739_v31 = vpop.eup %9738 }
 0x5a0   :  { %v1775_v10 = vadd.f32 1.0, %v9739_v31 }
 0x5a1   :  { %v9741_v18 = vpop.eup %9740 }
 0x5a2   :  { %9750 = vrcp.f32 %v1775_v10  ;;  %v1776_v26 = vadd.f32 1.0, %v9741_v18 }
 0x5a3   :  { %v9743_v15 = vpop.eup %9742  ;;  %9752 = vpow2.f32 %v7725_v63 }
 0x5a4   :  { %9754 = vrcp.f32 %v1776_v26  ;;  %v1778_v7 = vadd.f32 1.0, %v9743_v15 }
 0x5a5   :  { %v9745_v11 = vpop.eup %9744  ;;  %9756 = vtanh.f32 %v1756_v59 }
 0x5a6   :  { %9758 = vrcp.f32 %v1778_v7  ;;  %v1779_v30 = vadd.f32 1.0, %v9745_v11  ;;  %v9747_v37 = vpop.eup %9746 }
 0x5a7   :  { %v9749_v57 = vpop.eup %9748  ;;  %v1777_v27 = vadd.f32 1.0, %v9747_v37 }
 0x5a8   :  { %9760 = vrcp.f32 %v1779_v30 }
 0x5a9   :  { %9762 = vrcp.f32 %v1777_v27 }
 0x5af   :  { %v9751_v54 = vpop.eup %9750 }
 0x5b0   :  { %v9753_v60 = vpop.eup %9752  ;;  %v1797_v3 = vmul.f32 %v9751_v54, %v9749_v57 }
 0x5b1   :  { %v9755_v17 = vpop.eup %9754  ;;  %v1780_v23 = vadd.f32 1.0, %v9753_v60 }
 0x5b2   :  { %v9757_v58 = vpop.eup %9756  ;;  %v1795_v50 = vmul.f32 %v9755_v17, %v11080_v6 }
 0x5b3   :  { %v9759_v62 = vpop.eup %9758 }
 0x5b4   :  { %v11130_v2 = vadd.f32 %v1797_v3, %v1795_v50  ;;  %v1798_v22 = vmul.f32 %v9759_v62, %v9757_v58 }
 0x5b5   :  { %v9761_v32 = vpop.eup %9760 }
 0x5b6   :  { %v1796_v14 = vmul.f32 %v9761_v32, %v11084_v1  ;;  %9764 = vtanh.f32 %v11130_v2  ;;  %v9763_v55 = vpop.eup %9762 }
 0x5b7   :  { %9766 = vrcp.f32 %v1780_v23 }
 0x5b8   :  { %v11134_v9 = vadd.f32 %v1798_v22, %v1796_v14 }
 0x5ba   :  { %9768 = vtanh.f32 %v11134_v9 }
 0x5c3   :  { %v9765_v19 = vpop.eup %9764 }
 0x5c4   :  { %v9767_v6 = vpop.eup %9766  ;;  %v1803_v63 = vmul.f32 %v9765_v19, %v9763_v55 }
 0x5c7   :  { %v9769_v31 = vpop.eup %9768 }
 0x5c8   :  { %v1804_v10 = vmul.f32 %v9769_v31, %v9767_v6 }
 0x5ca   :  { %v1813_v18 = vpack.c.bf16 %v1804_v10, %v1803_v63 }
 0x5cc   :  { %1847 = vmatmul.mubr.bf16.vlgmr.msra.gmra.mxu0 %v1813_v18  ;;  %1890 = vmatmul.mubr.bf16.vlgmr.msra.gmra.mxu1 %v1813_v18  ;;  %v9899_v18 = vld [vmem:[%s11458_s3 + $0xe8] ss:$16 sps:$4 sm:$0xff]  }
 0x5cd   :  { %1966 = vmatpush1.bf16.msra.mxu0 %v10780_v39  ;;  %2009 = vmatpush1.bf16.msra.mxu1 %v10786_v43  ;;  %v11554_v43 = vld [vmem:[#allocation42_spill] sm:$0xff] }
 0x5ce   :  { %1967 = vmatprep.subr.bf16.mxu0 %v10792_v49  ;;  %2010 = vmatprep.subr.bf16.mxu1 %v10798_v29 }
 0x5cf   :  { %1997 = vmatprep.mubr.bf16.mxu0 %v11536_v35  ;;  %2040 = vmatprep.mubr.bf16.mxu1 %v11536_v35 }
 0x5d1   :  { %1968 = vmatpush1.bf16.msra.mxu0 %v10806_v56  ;;  %2011 = vmatpush1.bf16.msra.mxu1 %v10812_v45  ;;  %v11555_v45 = vld [vmem:[#allocation44_spill] sm:$0xff] }
 0x5d2   :  { %1969 = vmatprep.subr.bf16.mxu0 %v10818_v38  ;;  %2012 = vmatprep.subr.bf16.mxu1 %v10824_v47 }
 0x5d5   :  { %1970 = vmatpush1.bf16.msra.mxu0 %v10830_v53  ;;  %2013 = vmatpush1.bf16.msra.mxu1 %v10836_v61 }
 0x5d6   :  { %1971 = vmatprep.subr.bf16.mxu0 %v10842_v42  ;;  %2014 = vmatprep.subr.bf16.mxu1 %v10848_v40  ;;  %v11558_v42 = vld [vmem:[#allocation43_spill] sm:$0xff] }
 0x5d9   :  { %1972 = vmatpush1.bf16.msra.mxu0 %v10854_v48  ;;  %2015 = vmatpush1.bf16.msra.mxu1 %v10860_v46  ;;  %v11559_v46 = vld [vmem:[#allocation47_spill] sm:$0xff] }
 0x5da   :  { %1973 = vmatprep.subr.bf16.mxu0 %v10866_v52  ;;  %2016 = vmatprep.subr.bf16.mxu1 %v10872_v21 }
 0x5dd   :  { %1974 = vmatpush1.bf16.msra.mxu0 %v10878_v44  ;;  %2017 = vmatpush1.bf16.msra.mxu1 %v10884_v33  ;;  %v11560_v44 = vld [vmem:[#allocation45_spill] sm:$0xff] }
 0x5de   :  { %1975 = vmatprep.subr.bf16.mxu0 %v10890_v8  ;;  %2018 = vmatprep.subr.bf16.mxu1 %v10896_v51 }
 0x5e1   :  { %1976 = vmatpush1.bf16.msra.mxu0 %v10902_v5  ;;  %2019 = vmatpush1.bf16.msra.mxu1 %v10908_v36 }
 0x5e2   :  { %1977 = vmatprep.subr.bf16.mxu0 %v10914_v13  ;;  %2020 = vmatprep.subr.bf16.mxu1 %v10920_v24  ;;  %v11561_v24 = vld [vmem:[#allocation49_spill] sm:$0xff] }
 0x5e5   :  { %1978 = vmatpush1.bf16.msra.mxu0 %v10926_v28  ;;  %2021 = vmatpush1.bf16.msra.mxu1 %v10932_v16 }
 0x5e6   :  { %1979 = vmatprep.subr.bf16.mxu0 %v10938_v0  ;;  %2022 = vmatprep.subr.bf16.mxu1 %v10944_v34  ;;  %v11556_v34 = vld [vmem:[#allocation46_spill] sm:$0xff] }
 0x5e9   :  { %1980 = vmatpush1.bf16.msra.mxu0 %v10950_v25  ;;  %2023 = vmatpush1.bf16.msra.mxu1 %v10956_v20 }
 0x5ea   :  { %2116 = vmatprep.subr.bf16.mxu0 %v10962_v4  ;;  %2159 = vmatprep.subr.bf16.mxu1 %v10968_v12  ;;  %v11557_v4 = vld [vmem:[#allocation48_spill] sm:$0xff] }
 0x68c   :  { %v1848_v39 = vpop.f32.mrf.mxu0  ;;  %v1891_v28 = vpop.f32.mrf.mxu1 }
 0x68d   :  { %v1900_v49 = vadd.f32 %v1848_v39, %v11554_v43  ;;  %v1902_v40 = vadd.f32 %v1891_v28, %v11558_v42  ;;  %v9900_v39 = vld [vmem:[%s11458_s3 + $0xc4] ss:$16 sps:$4 sm:$0xff]   ;;  %v9901_v43 = vld [vmem:[%s11458_s3 + $0xcc] ss:$16 sps:$4 sm:$0xff]   ;;  %v9918_v42 = vld [vmem:[%s11458_s3 + $0x40] ss:$16 sps:$4 sm:$0xff]  }
 0x68e   :  { %v1850_v29 = vpop.f32.mrf.mxu0  ;;  %v1893_v20 = vpop.f32.mrf.mxu1  ;;  %v9905_v28 = vld [vmem:[%s11458_s3 + $0xac] ss:$16 sps:$4 sm:$0xff]  }
 0x68f   :  { %v7726_v56 = vmul.f32 -1.442695, %v1900_v49  ;;  %v1901_v16 = vadd.f32 %v1850_v29, %v11555_v45  ;;  %v7728_v21 = vmul.f32 -1.442695, %v1902_v40  ;;  %v1903_v33 = vadd.f32 %v1893_v20, %v11560_v44  ;;  %v9902_v49 = vld [vmem:[%s11458_s3 + $0xc0] ss:$16 sps:$4 sm:$0xff]  }
 0x690   :  { %v1852_v38 = vpop.f32.mrf.mxu0  ;;  %v1895_v48 = vpop.f32.mrf.mxu1  ;;  %v9903_v29 = vld [vmem:[%s11458_s3 + $0xc8] ss:$16 sps:$4 sm:$0xff]   ;;  %v9906_v45 = vld [vmem:[%s11458_s3 + $0xa0] ss:$16 sps:$4 sm:$0xff]   ;;  %v9913_v20 = vld [vmem:[%s11458_s3 + $0x6c] ss:$16 sps:$4 sm:$0xff]  }
 0x691   :  { %9770 = vpow2.f32 %v7726_v56  ;;  %v7727_v0 = vmul.f32 -1.442695, %v1901_v16  ;;  %v1904_v47 = vadd.f32 %v1852_v38, %v11556_v34  ;;  %v1906_v52 = vadd.f32 %v1895_v48, %v11559_v46  ;;  %v9904_v56 = vld [vmem:[%s11458_s3 + $0xa4] ss:$16 sps:$4 sm:$0xff]   ;;  %v9907_v16 = vld [vmem:[%s11458_s3 + $0xa8] ss:$16 sps:$4 sm:$0xff]  }
 0x692   :  { %v1854_v25 = vpop.f32.mrf.mxu0  ;;  %v1897_v8 = vpop.f32.mrf.mxu1  ;;  %v9908_v38 = vld [vmem:[%s11458_s3 + $0x84] ss:$16 sps:$4 sm:$0xff]   ;;  %v9910_v34 = vld [vmem:[%s11458_s3 + $0x80] ss:$16 sps:$4 sm:$0xff]   ;;  %v9919_v40 = vld [vmem:[%s11458_s3 + $0x48] ss:$16 sps:$4 sm:$0xff]  }
 0x693   :  { %9772 = vpow2.f32 %v7727_v0  ;;  %v7729_v53 = vmul.f32 -1.442695, %v1904_v47  ;;  %v1905_v61 = vadd.f32 %v1854_v25, %v11557_v4  ;;  %v7731_v5 = vmul.f32 -1.442695, %v1906_v52  ;;  %v9909_v0 = vld [vmem:[%s11458_s3 + $0x8c] ss:$16 sps:$4 sm:$0xff]  }
 0x694   :  { %v1907_v1 = vadd.f32 %v1897_v8, %v11561_v24  ;;  %v9911_v47 = vld [vmem:[%s11458_s3 + $0x88] ss:$16 sps:$4 sm:$0xff]   ;;  %v9912_v25 = vld [vmem:[%s11458_s3 + $0x64] ss:$16 sps:$4 sm:$0xff]   ;;  %v9921_v46 = vld [vmem:[%s11458_s3 + $0x2c] ss:$16 sps:$4 sm:$0xff]  }
 0x695   :  { %9774 = vpow2.f32 %v7729_v53  ;;  %v7730_v12 = vmul.f32 -1.442695, %v1905_v61  ;;  %v9914_v53 = vld [vmem:[%s11458_s3 + $0x60] ss:$16 sps:$4 sm:$0xff]   ;;  %v9915_v4 = vld [vmem:[%s11458_s3 + $0x68] ss:$16 sps:$4 sm:$0xff]  }
 0x696   :  { %v9916_v61 = vld [vmem:[%s11458_s3 + $0x44] ss:$16 sps:$4 sm:$0xff]   ;;  %v9922_v52 = vld [vmem:[%s11458_s3 + $0x20] ss:$16 sps:$4 sm:$0xff]  }
 0x697   :  { %9776 = vpow2.f32 %v7730_v12  ;;  %v9917_v12 = vld [vmem:[%s11458_s3 + $0x4c] ss:$16 sps:$4 sm:$0xff]   ;;  %v9920_v48 = vld [vmem:[%s11458_s3 + $0x24] ss:$16 sps:$4 sm:$0xff]   ;;  %v9926_v8 = vld [vmem:[%s11458_s3] ss:$16 sps:$4 sm:$0xff]  }
 0x698   :  { %9778 = vpow2.f32 %v7728_v21  ;;  %v9923_v21 = vld [vmem:[%s11458_s3 + $0x28] ss:$16 sps:$4 sm:$0xff]   ;;  %v9924_v44 = vld [vmem:[%s11458_s3 + $0x4] ss:$16 sps:$4 sm:$0xff]  }
 0x699   :  { %9780 = vtanh.f32 %v1903_v33  ;;  %v9925_v33 = vld [vmem:[%s11458_s3 + $0xc] ss:$16 sps:$4 sm:$0xff]  }
 0x69e   :  { %v9771_v51 = vpop.eup %9770 }
 0x69f   :  { %v1926_v36 = vadd.f32 1.0, %v9771_v51  ;;  %v9927_v51 = vld [vmem:[%s11458_s3 + $0x8] ss:$16 sps:$4 sm:$0xff]  }
 0x6a0   :  { %v9773_v13 = vpop.eup %9772 }
 0x6a1   :  { %9782 = vrcp.f32 %v1926_v36  ;;  %v1927_v41 = vadd.f32 1.0, %v9773_v13  ;;  %v2387_v36 = vld [vmem:[#allocation7 + $0x2e0] sm:$0x77] }
 0x6a2   :  { %v9775_v59 = vpop.eup %9774  ;;  %9784 = vpow2.f32 %v7731_v5  ;;  %v8618_v5 = vld [vmem:[#allocation7 + $0xe4] ss:$16 sps:$4 sm:$0xff]   ;;  %v7839_v13 = vcombine.low %v2387_v36, %v2387_v36  ;;  %v7840_v24 = vcombine.high %v2387_v36, %v2387_v36 }
 0x6a3   :  { %9786 = vrcp.f32 %v1927_v41  ;;  %v1929_v26 = vadd.f32 1.0, %v9775_v59 }
 0x6a4   :  { %v9777_v15 = vpop.eup %9776  ;;  %9788 = vtanh.f32 %v1907_v1  ;;  %v10111_v1 = vmov 65535  }
 0x6a5   :  { %9790 = vrcp.f32 %v1929_v26  ;;  %v1930_v7 = vadd.f32 1.0, %v9777_v15  ;;  %v9779_v11 = vpop.eup %9778  ;;  %v2880_v41 = vsel %vm2878_vm2, 4294967295, %v10111_v1 }
 0x6a6   :  { %v9781_v30 = vpop.eup %9780  ;;  %v1928_v50 = vadd.f32 1.0, %v9779_v11  ;;  %v11279_v59 = vsel %vm2879_vm3, %v2880_v41, 0  ;;  %v11562_v11 = vld [vmem:[#allocation50_spill] sm:$0xff] }
 0x6a7   :  { %9792 = vrcp.f32 %v1930_v7  ;;  %v2886_v26 = vand.u32 %v7840_v24, %v11279_v59  ;;  %v11283_v15 = vand.u32 %v7839_v13, %v11279_v59 }
 0x6a8   :  { %9794 = vrcp.f32 %v1928_v50  ;;  %v11564_v50 = vld [vmem:[#allocation54_spill] sm:$0xff] }
 0x6ae   :  { %v9783_v37 = vpop.eup %9782 }
 0x6af   :  { %v9785_v57 = vpop.eup %9784  ;;  %v1948_v54 = vmul.f32 %v9783_v37, %v9781_v30 }
 0x6b0   :  { %v9787_v60 = vpop.eup %9786  ;;  %v1931_v32 = vadd.f32 1.0, %v9785_v57 }
 0x6b1   :  { %v9789_v3 = vpop.eup %9788  ;;  %v1946_v17 = vmul.f32 %v9787_v60, %v11130_v2  ;;  %v11563_v60 = vld [vmem:[#allocation52_spill] sm:$0xff] }
 0x6b2   :  { %v9791_v58 = vpop.eup %9790 }
 0x6b3   :  { %v11180_v62 = vadd.f32 %v1948_v54, %v1946_v17  ;;  %v1949_v27 = vmul.f32 %v9791_v58, %v9789_v3 }
 0x6b4   :  { %v9793_v22 = vpop.eup %9792 }
 0x6b5   :  { %v1947_v23 = vmul.f32 %v9793_v22, %v11134_v9  ;;  %9796 = vtanh.f32 %v11180_v62  ;;  %v9795_v55 = vpop.eup %9794  ;;  %v9898_v9 = vld [vmem:[%s11458_s3 + $0xe0] ss:$16 sps:$4 sm:$0xff]  }
 0x6b6   :  { %9798 = vrcp.f32 %v1931_v32 }
 0x6b7   :  { %v11184_v14 = vadd.f32 %v1949_v27, %v1947_v23 }
 0x6b9   :  { %9800 = vtanh.f32 %v11184_v14 }
 0x6c2   :  { %v9797_v19 = vpop.eup %9796 }
 0x6c3   :  { %v9799_v2 = vpop.eup %9798  ;;  %v1954_v31 = vmul.f32 %v9797_v19, %v9795_v55  ;;  %v11565_v55 = vld [vmem:[#allocation56_spill] sm:$0xff] }
 0x6c6   :  { %v9801_v6 = vpop.eup %9800 }
 0x6c7   :  { %v1955_v63 = vmul.f32 %v9801_v6, %v9799_v2  ;;  %v11566_v6 = vld [vmem:[#allocation51_spill] sm:$0xff] }
 0x6c9   :  { %v1964_v10 = vpack.c.bf16 %v1955_v63, %v1954_v31 }
 0x6cb   :  { %1998 = vmatmul.mubr.bf16.vlgmr.msra.gmra.mxu0 %v1964_v10  ;;  %2041 = vmatmul.mubr.bf16.vlgmr.msra.gmra.mxu1 %v1964_v10  ;;  %v11567_v10 = vld [vmem:[#allocation55_spill] sm:$0xff] }
 0x6cc   :  { %2117 = vmatpush1.bf16.msra.mxu0 %v9898_v9  ;;  %2160 = vmatpush1.bf16.msra.mxu1 %v9899_v18 }
 0x6cd   :  { %2118 = vmatprep.subr.bf16.mxu0 %v9900_v39  ;;  %2161 = vmatprep.subr.bf16.mxu1 %v9901_v43  ;;  %v11568_v39 = vld [vmem:[#allocation53_spill] sm:$0xff] }
 0x6ce   :  { %2148 = vmatprep.mubr.bf16.mxu0 %v11536_v35  ;;  %2191 = vmatprep.mubr.bf16.mxu1 %v11536_v35 }
 0x6d0   :  { %2119 = vmatpush1.bf16.msra.mxu0 %v9902_v49  ;;  %2162 = vmatpush1.bf16.msra.mxu1 %v9903_v29 }
 0x6d1   :  { %2120 = vmatprep.subr.bf16.mxu0 %v9904_v56  ;;  %2163 = vmatprep.subr.bf16.mxu1 %v9905_v28 }
 0x6d4   :  { %2121 = vmatpush1.bf16.msra.mxu0 %v9906_v45  ;;  %2164 = vmatpush1.bf16.msra.mxu1 %v9907_v16  ;;  %v11569_v16 = vld [vmem:[#allocation57_spill] sm:$0xff] }
 0x6d5   :  { %2122 = vmatprep.subr.bf16.mxu0 %v9908_v38  ;;  %2165 = vmatprep.subr.bf16.mxu1 %v9909_v0 }
 0x6d8   :  { %2123 = vmatpush1.bf16.msra.mxu0 %v9910_v34  ;;  %2166 = vmatpush1.bf16.msra.mxu1 %v9911_v47 }
 0x6d9   :  { %2124 = vmatprep.subr.bf16.mxu0 %v9912_v25  ;;  %2167 = vmatprep.subr.bf16.mxu1 %v9913_v20 }
 0x6dc   :  { %2125 = vmatpush1.bf16.msra.mxu0 %v9914_v53  ;;  %2168 = vmatpush1.bf16.msra.mxu1 %v9915_v4 }
 0x6dd   :  { %2126 = vmatprep.subr.bf16.mxu0 %v9916_v61  ;;  %2169 = vmatprep.subr.bf16.mxu1 %v9917_v12 }
 0x6e0   :  { %2127 = vmatpush1.bf16.msra.mxu0 %v9918_v42  ;;  %2170 = vmatpush1.bf16.msra.mxu1 %v9919_v40 }
 0x6e1   :  { %2128 = vmatprep.subr.bf16.mxu0 %v9920_v48  ;;  %2171 = vmatprep.subr.bf16.mxu1 %v9921_v46 }
 0x6e4   :  { %2129 = vmatpush1.bf16.msra.mxu0 %v9922_v52  ;;  %2172 = vmatpush1.bf16.msra.mxu1 %v9923_v21 }
 0x6e5   :  { %2130 = vmatprep.subr.bf16.mxu0 %v9924_v44  ;;  %2173 = vmatprep.subr.bf16.mxu1 %v9925_v33 }
 0x6e8   :  { %2131 = vmatpush1.bf16.msra.mxu0 %v9926_v8  ;;  %2174 = vmatpush1.bf16.msra.mxu1 %v9927_v51 }
 0x6e9   :  { %2894 = vmatprep.subr.bf16.mxu0 %v8618_v5  ;;  %2937 = vmatprep.subr.bf16.mxu1 %v2886_v26 }
 0x78b   :  { %v1999_v7 = vpop.f32.mrf.mxu0  ;;  %v2042_v54 = vpop.f32.mrf.mxu1 }
 0x78c   :  { %v2051_v30 = vadd.f32 %v1999_v7, %v11562_v11  ;;  %v2053_v31 = vadd.f32 %v2042_v54, %v11566_v6  ;;  %v8616_v7 = vld [vmem:[#allocation7 + $0xe0] ss:$16 sps:$4 sm:$0xff]   ;;  %v8671_v6 = vld [vmem:[#allocation7 + $0x244] ss:$16 sps:$4 sm:$0xff]  }
 0x78d   :  { %v2001_v37 = vpop.f32.mrf.mxu0  ;;  %v2044_v32 = vpop.f32.mrf.mxu1  ;;  %v8645_v54 = vld [vmem:[#allocation7 + $0x2c0] ss:$16 sps:$4 sm:$0xff]  }
 0x78e   :  { %v7732_v57 = vmul.f32 -1.442695, %v2051_v30  ;;  %v2052_v3 = vadd.f32 %v2001_v37, %v11563_v60  ;;  %v7734_v18 = vmul.f32 -1.442695, %v2053_v31  ;;  %v2054_v43 = vadd.f32 %v2044_v32, %v11568_v39  ;;  %v8621_v30 = vld [vmem:[#allocation7 + $0xc4] ss:$16 sps:$4 sm:$0xff]  }
 0x78f   :  { %v2003_v17 = vpop.f32.mrf.mxu0  ;;  %v2046_v63 = vpop.f32.mrf.mxu1  ;;  %v8647_v37 = vld [vmem:[#allocation7 + $0x2c4] ss:$16 sps:$4 sm:$0xff]   ;;  %v8631_v31 = vld [vmem:[#allocation7 + $0x40] ss:$16 sps:$4 sm:$0xff]  }
 0x790   :  { %9802 = vpow2.f32 %v7732_v57  ;;  %v7733_v58 = vmul.f32 -1.442695, %v2052_v3  ;;  %v2055_v27 = vadd.f32 %v2003_v17, %v11564_v50  ;;  %v2057_v9 = vadd.f32 %v2046_v63, %v11567_v10  ;;  %v8619_v57 = vld [vmem:[#allocation7 + $0xc0] ss:$16 sps:$4 sm:$0xff]   ;;  %v8624_v60 = vld [vmem:[#allocation7 + $0xa4] ss:$16 sps:$4 sm:$0xff]  }
 0x791   :  { %v2005_v22 = vpop.f32.mrf.mxu0  ;;  %v2048_v49 = vpop.f32.mrf.mxu1  ;;  %v8653_v3 = vld [vmem:[#allocation7 + $0x2a4] ss:$16 sps:$4 sm:$0xff]   ;;  %v8622_v17 = vld [vmem:[#allocation7 + $0xa0] ss:$16 sps:$4 sm:$0xff]  }
 0x792   :  { %9804 = vpow2.f32 %v7733_v58  ;;  %v7735_v23 = vmul.f32 -1.442695, %v2055_v27  ;;  %v2056_v19 = vadd.f32 %v2005_v22, %v11565_v55  ;;  %v7737_v56 = vmul.f32 -1.442695, %v2057_v9  ;;  %v8651_v58 = vld [vmem:[#allocation7 + $0x2a0] ss:$16 sps:$4 sm:$0xff]  }
 0x793   :  { %v2058_v38 = vadd.f32 %v2048_v49, %v11569_v16  ;;  %v8627_v50 = vld [vmem:[#allocation7 + $0x84] ss:$16 sps:$4 sm:$0xff]   ;;  %v8625_v22 = vld [vmem:[#allocation7 + $0x80] ss:$16 sps:$4 sm:$0xff]  }
 0x794   :  { %9806 = vpow2.f32 %v7735_v23  ;;  %v7736_v2 = vmul.f32 -1.442695, %v2056_v19  ;;  %v8659_v27 = vld [vmem:[#allocation7 + $0x284] ss:$16 sps:$4 sm:$0xff]   ;;  %v8628_v55 = vld [vmem:[#allocation7 + $0x60] ss:$16 sps:$4 sm:$0xff]  }
 0x795   :  { %v8630_v32 = vld [vmem:[#allocation7 + $0x64] ss:$16 sps:$4 sm:$0xff]   ;;  %v8663_v19 = vld [vmem:[#allocation7 + $0x260] ss:$16 sps:$4 sm:$0xff]  }
 0x796   :  { %9808 = vpow2.f32 %v7736_v2  ;;  %v8665_v23 = vld [vmem:[#allocation7 + $0x264] ss:$16 sps:$4 sm:$0xff]   ;;  %v8669_v63 = vld [vmem:[#allocation7 + $0x240] ss:$16 sps:$4 sm:$0xff]  }
 0x797   :  { %9810 = vpow2.f32 %v7734_v18  ;;  %v8633_v2 = vld [vmem:[#allocation7 + $0x44] ss:$16 sps:$4 sm:$0xff]   ;;  %v8634_v18 = vld [vmem:[#allocation7 + $0x20] ss:$16 sps:$4 sm:$0xff]  }
 0x798   :  { %9812 = vtanh.f32 %v2054_v43  ;;  %v8636_v10 = vld [vmem:[#allocation7 + $0x24] ss:$16 sps:$4 sm:$0xff]   ;;  %v8675_v39 = vld [vmem:[#allocation7 + $0x220] ss:$16 sps:$4 sm:$0xff]  }
 0x799   :  { %v8677_v9 = vld [vmem:[#allocation7 + $0x224] ss:$16 sps:$4 sm:$0xff]  }
 0x79a   :  { %v8639_v43 = vld [vmem:[#allocation7 + $0x4] ss:$16 sps:$4 sm:$0xff]  }
 0x79b   :  { %v8683_v49 = vld [vmem:[#allocation7 + $0x204] ss:$16 sps:$4 sm:$0xff]  }
 0x79c   :  { %v11312_v16 = vld [vmem:[%s11570_s16 + $0x8] ss:$12 sps:$4 sm:$0xff]  }
 0x79d   :  { %v9803_v29 = vpop.eup %9802 }
 0x79e   :  { %v2077_v28 = vadd.f32 1.0, %v9803_v29  ;;  %v8637_v29 = vld [vmem:[#allocation7] ss:$16 sps:$4 sm:$0xff]  }
 0x79f   :  { %v9805_v45 = vpop.eup %9804 }
 0x7a0   :  { %9814 = vrcp.f32 %v2077_v28  ;;  %v2078_v0 = vadd.f32 1.0, %v9805_v45  ;;  %v8644_v28 = vld [vmem:[#allocation7 + $0x1e4] ss:$16 sps:$4 sm:$0xff]   ;;  %v8689_v45 = vld [vmem:[#allocation7 + $0xec] ss:$16 sps:$4 sm:$0xff]  }
 0x7a1   :  { %v9807_v34 = vpop.eup %9806  ;;  %9816 = vpow2.f32 %v7737_v56  ;;  %v8681_v56 = vld [vmem:[#allocation7 + $0x200] ss:$16 sps:$4 sm:$0xff]  }
 0x7a2   :  { %9818 = vrcp.f32 %v2078_v0  ;;  %v2080_v47 = vadd.f32 1.0, %v9807_v34  ;;  %v8687_v0 = vld [vmem:[#allocation7 + $0xe8] ss:$16 sps:$4 sm:$0xff]   ;;  %v8650_v34 = vld [vmem:[#allocation7 + $0x1c4] ss:$16 sps:$4 sm:$0xff]  }
 0x7a3   :  { %v9809_v25 = vpop.eup %9808  ;;  %9820 = vtanh.f32 %v2058_v38  ;;  %v8642_v38 = vld [vmem:[#allocation7 + $0x1e0] ss:$16 sps:$4 sm:$0xff]  }
 0x7a4   :  { %9822 = vrcp.f32 %v2080_v47  ;;  %v2081_v20 = vadd.f32 1.0, %v9809_v25  ;;  %v9811_v53 = vpop.eup %9810  ;;  %v8696_v47 = vld [vmem:[#allocation7 + $0xcc] ss:$16 sps:$4 sm:$0xff]   ;;  %v8648_v25 = vld [vmem:[#allocation7 + $0x1c0] ss:$16 sps:$4 sm:$0xff]  }
 0x7a5   :  { %v9813_v4 = vpop.eup %9812  ;;  %v2079_v21 = vadd.f32 1.0, %v9811_v53  ;;  %v8656_v53 = vld [vmem:[#allocation7 + $0x1a4] ss:$16 sps:$4 sm:$0xff]  }
 0x7a6   :  { %9824 = vrcp.f32 %v2081_v20  ;;  %v8694_v20 = vld [vmem:[#allocation7 + $0xc8] ss:$16 sps:$4 sm:$0xff]  }
 0x7a7   :  { %9826 = vrcp.f32 %v2079_v21  ;;  %v8705_v21 = vld [vmem:[#allocation7 + $0x6c] ss:$16 sps:$4 sm:$0xff]  }
 0x7ad   :  { %v9815_v61 = vpop.eup %9814 }
 0x7ae   :  { %v9817_v12 = vpop.eup %9816  ;;  %v2099_v42 = vmul.f32 %v9815_v61, %v9813_v4  ;;  %v8699_v4 = vld [vmem:[#allocation7 + $0xac] ss:$16 sps:$4 sm:$0xff]   ;;  %v8654_v61 = vld [vmem:[#allocation7 + $0x1a0] ss:$16 sps:$4 sm:$0xff]  }
 0x7af   :  { %v9819_v40 = vpop.eup %9818  ;;  %v2082_v51 = vadd.f32 1.0, %v9817_v12  ;;  %v8697_v12 = vld [vmem:[#allocation7 + $0xa8] ss:$16 sps:$4 sm:$0xff]  }
 0x7b0   :  { %v9821_v48 = vpop.eup %9820  ;;  %v2097_v46 = vmul.f32 %v9819_v40, %v11180_v62  ;;  %v8702_v40 = vld [vmem:[#allocation7 + $0x8c] ss:$16 sps:$4 sm:$0xff]  }
 0x7b1   :  { %v9823_v52 = vpop.eup %9822 }
 0x7b2   :  { %v11294_v44 = vadd.f32 %v2099_v42, %v2097_v46  ;;  %v2100_v33 = vmul.f32 %v9823_v52, %v9821_v48  ;;  %v8662_v42 = vld [vmem:[#allocation7 + $0x184] ss:$16 sps:$4 sm:$0xff]   ;;  %v8660_v48 = vld [vmem:[#allocation7 + $0x180] ss:$16 sps:$4 sm:$0xff]   ;;  %v8700_v46 = vld [vmem:[#allocation7 + $0x88] ss:$16 sps:$4 sm:$0xff]  }
 0x7b3   :  { %v9825_v8 = vpop.eup %9824  ;;  %v8668_v52 = vld [vmem:[#allocation7 + $0x164] ss:$16 sps:$4 sm:$0xff]  }
 0x7b4   :  { %v2098_v5 = vmul.f32 %v9825_v8, %v11184_v14  ;;  %9828 = vtanh.f32 %v11294_v44  ;;  %v9827_v13 = vpop.eup %9826  ;;  %v11304_v14 = vld [vmem:[%s11570_s16 + $0x4] ss:$12 sps:$4 sm:$0xff]   ;;  %v8703_v8 = vld [vmem:[#allocation7 + $0x68] ss:$16 sps:$4 sm:$0xff]  }
 0x7b5   :  { %9830 = vrcp.f32 %v2082_v51  ;;  %v8674_v51 = vld [vmem:[#allocation7 + $0x144] ss:$16 sps:$4 sm:$0xff]  }
 0x7b6   :  { %v11298_v36 = vadd.f32 %v2100_v33, %v2098_v5  ;;  %v8666_v33 = vld [vmem:[#allocation7 + $0x160] ss:$16 sps:$4 sm:$0xff]   ;;  %v8708_v5 = vld [vmem:[#allocation7 + $0x4c] ss:$16 sps:$4 sm:$0xff]  }
 0x7b8   :  { %9832 = vtanh.f32 %v11298_v36 }
 0x7c1   :  { %v9829_v24 = vpop.eup %9828 }
 0x7c2   :  { %v9831_v62 = vpop.eup %9830  ;;  %v2105_v41 = vmul.f32 %v9829_v24, %v9827_v13  ;;  %v8672_v13 = vld [vmem:[#allocation7 + $0x140] ss:$16 sps:$4 sm:$0xff]   ;;  %v8706_v24 = vld [vmem:[#allocation7 + $0x48] ss:$16 sps:$4 sm:$0xff]  }
 0x7c5   :  { %v9833_v1 = vpop.eup %9832 }
 0x7c6   :  { %v2106_v26 = vmul.f32 %v9833_v1, %v9831_v62  ;;  %v8680_v62 = vld [vmem:[#allocation7 + $0x124] ss:$16 sps:$4 sm:$0xff]   ;;  %v8711_v1 = vld [vmem:[#allocation7 + $0x2c] ss:$16 sps:$4 sm:$0xff]  }
 0x7c8   :  { %v2115_v11 = vpack.c.bf16 %v2106_v26, %v2105_v41  ;;  %v2388_v41 = vld [vmem:[#allocation7 + $0x2e8] sm:$0x77]  ;;  %v8678_v26 = vld [vmem:[#allocation7 + $0x120] ss:$16 sps:$4 sm:$0xff]  }
 0x7ca   :  { %2149 = vmatmul.mubr.bf16.vlgmr.msra.gmra.mxu0 %v2115_v11  ;;  %2192 = vmatmul.mubr.bf16.vlgmr.msra.gmra.mxu1 %v2115_v11  ;;  %v8686_v11 = vld [vmem:[#allocation7 + $0x104] ss:$16 sps:$4 sm:$0xff]  }
 0x7cb   :  { %2895 = vmatpush1.bf16.msra.mxu0 %v8616_v7  ;;  %2938 = vmatpush1.bf16.msra.mxu1 %v11283_v15  ;;  %v8657_v15 = vld [vmem:[#allocation7 + $0x280] ss:$16 sps:$4 sm:$0xff]   ;;  %v8709_v7 = vld [vmem:[#allocation7 + $0x28] ss:$16 sps:$4 sm:$0xff]  }
 0x7cc   :  { %2896 = vmatprep.subr.bf16.mxu0 %v8621_v30  ;;  %2939 = vmatprep.subr.bf16.mxu1 %v8647_v37  ;;  %v8714_v30 = vld [vmem:[#allocation7 + $0xc] ss:$16 sps:$4 sm:$0xff]   ;;  %v7842_v37 = vcombine.high %v2388_v41, %v2388_v41 }
 0x7cd   :  { %2969 = vmatprep.mubr.bf16.mxu1 %v11536_v35  ;;  %2926 = vmatprep.mubr.bf16.mxu0 %v11304_v14 }
 0x7cf   :  { %2897 = vmatpush1.bf16.msra.mxu0 %v8619_v57  ;;  %2940 = vmatpush1.bf16.msra.mxu1 %v8645_v54  ;;  %v8712_v57 = vld [vmem:[#allocation7 + $0x8] ss:$16 sps:$4 sm:$0xff]   ;;  %v7841_v54 = vcombine.low %v2388_v41, %v2388_v41 }
 0x7d0   :  { %2898 = vmatprep.subr.bf16.mxu0 %v8624_v60  ;;  %2941 = vmatprep.subr.bf16.mxu1 %v8653_v3  ;;  %v8717_v60 = vld [vmem:[#allocation7 + $0x1ec] ss:$16 sps:$4 sm:$0xff]   ;;  %v2892_v3 = vand.u32 %v7842_v37, %v11279_v59  ;;  %v8789_v41 = vld [vmem:[#allocation5 + $0x68] ss:$16 sps:$4 sm:$0xff]   ;;  %v8800_v37 = vld [vmem:[#allocation5 + $0x24] ss:$16 sps:$4 sm:$0xff]  }
 0x7d3   :  { %2899 = vmatpush1.bf16.msra.mxu0 %v8622_v17  ;;  %2942 = vmatpush1.bf16.msra.mxu1 %v8651_v58  ;;  %v11321_v17 = vld [vmem:[%s11570_s16] ss:$12 sps:$4 sm:$0xff]   ;;  %v8715_v58 = vld [vmem:[#allocation7 + $0x1e8] ss:$16 sps:$4 sm:$0xff]  }
 0x7d4   :  { %2900 = vmatprep.subr.bf16.mxu0 %v8627_v50  ;;  %2943 = vmatprep.subr.bf16.mxu1 %v8659_v27  ;;  %v2889_v50 = vand.u32 %v7841_v54, %v11279_v59  ;;  %v8722_v27 = vld [vmem:[#allocation7 + $0x1cc] ss:$16 sps:$4 sm:$0xff]   ;;  %v8729_v59 = vld [vmem:[#allocation7 + $0x2a8] ss:$16 sps:$4 sm:$0xff]  }
 0x7d5   :  { %v8801_v54 = vld [vmem:[#allocation5 + $0x28] ss:$16 sps:$4 sm:$0xff]  }
 0x7d7   :  { %2901 = vmatpush1.bf16.msra.mxu0 %v8625_v22  ;;  %2944 = vmatpush1.bf16.msra.mxu1 %v8657_v15  ;;  %v8725_v22 = vld [vmem:[#allocation7 + $0x2cc] ss:$16 sps:$4 sm:$0xff]   ;;  %v8720_v15 = vld [vmem:[#allocation7 + $0x1c8] ss:$16 sps:$4 sm:$0xff]  }
 0x7d8   :  { %2902 = vmatprep.subr.bf16.mxu0 %v8630_v32  ;;  %2945 = vmatprep.subr.bf16.mxu1 %v8665_v23  ;;  %v8723_v32 = vld [vmem:[#allocation7 + $0x2c8] ss:$16 sps:$4 sm:$0xff]   ;;  %v8728_v23 = vld [vmem:[#allocation7 + $0x1ac] ss:$16 sps:$4 sm:$0xff]  }
 0x7db   :  { %2903 = vmatpush1.bf16.msra.mxu0 %v8628_v55  ;;  %2946 = vmatpush1.bf16.msra.mxu1 %v8663_v19  ;;  %v8731_v55 = vld [vmem:[#allocation7 + $0x2ac] ss:$16 sps:$4 sm:$0xff]   ;;  %v8726_v19 = vld [vmem:[#allocation7 + $0x1a8] ss:$16 sps:$4 sm:$0xff]  }
 0x7dc   :  { %2904 = vmatprep.subr.bf16.mxu0 %v8633_v2  ;;  %2947 = vmatprep.subr.bf16.mxu1 %v8671_v6  ;;  %v8734_v2 = vld [vmem:[#allocation7 + $0x18c] ss:$16 sps:$4 sm:$0xff]  }
 0x7dd   :  { %v8737_v6 = vld [vmem:[#allocation7 + $0x28c] ss:$16 sps:$4 sm:$0xff]  }
 0x7df   :  { %2905 = vmatpush1.bf16.msra.mxu0 %v8631_v31  ;;  %2948 = vmatpush1.bf16.msra.mxu1 %v8669_v63  ;;  %v8732_v31 = vld [vmem:[#allocation7 + $0x188] ss:$16 sps:$4 sm:$0xff]  }
 0x7e0   :  { %2906 = vmatprep.subr.bf16.mxu0 %v8636_v10  ;;  %2949 = vmatprep.subr.bf16.mxu1 %v8677_v9  ;;  %v8735_v63 = vld [vmem:[#allocation7 + $0x288] ss:$16 sps:$4 sm:$0xff]   ;;  %v8740_v10 = vld [vmem:[#allocation7 + $0x16c] ss:$16 sps:$4 sm:$0xff]  }
 0x7e1   :  { %v8743_v9 = vld [vmem:[#allocation7 + $0x26c] ss:$16 sps:$4 sm:$0xff]  }
 0x7e3   :  { %2907 = vmatpush1.bf16.msra.mxu0 %v8634_v18  ;;  %2950 = vmatpush1.bf16.msra.mxu1 %v8675_v39  ;;  %v8738_v18 = vld [vmem:[#allocation7 + $0x168] ss:$16 sps:$4 sm:$0xff]  }
 0x7e4   :  { %2908 = vmatprep.subr.bf16.mxu0 %v8639_v43  ;;  %2951 = vmatprep.subr.bf16.mxu1 %v8683_v49  ;;  %v8741_v39 = vld [vmem:[#allocation7 + $0x268] ss:$16 sps:$4 sm:$0xff]   ;;  %v8746_v43 = vld [vmem:[#allocation7 + $0x14c] ss:$16 sps:$4 sm:$0xff]  }
 0x7e5   :  { %v8749_v49 = vld [vmem:[#allocation7 + $0x24c] ss:$16 sps:$4 sm:$0xff]  }
 0x7e7   :  { %2909 = vmatpush1.bf16.msra.mxu0 %v8637_v29  ;;  %2952 = vmatpush1.bf16.msra.mxu1 %v8681_v56  ;;  %v8744_v29 = vld [vmem:[#allocation7 + $0x148] ss:$16 sps:$4 sm:$0xff]  }
 0x7e8   :  { %2910 = vmatprep.subr.bf16.mxu0 %v8644_v28  ;;  %2980 = vmatprep.subr.bf16.mxu1 %v8689_v45  ;;  %v8747_v56 = vld [vmem:[#allocation7 + $0x248] ss:$16 sps:$4 sm:$0xff]   ;;  %v8752_v28 = vld [vmem:[#allocation7 + $0x12c] ss:$16 sps:$4 sm:$0xff]  }
 0x7e9   :  { %v8755_v45 = vld [vmem:[#allocation7 + $0x22c] ss:$16 sps:$4 sm:$0xff]  }
 0x7ea   :  { %7843 = vmatmul.mubr.msk.bf16.vlgmr.msra.gmra.mxu1 %vm2874_vm4, %v11312_v16 }
 0x7eb   :  { %2911 = vmatpush2.bf16.msra.mxu0 %v8642_v38  ;;  %2981 = vmatpush1.bf16.msra.mxu1 %v8687_v0  ;;  %v8750_v38 = vld [vmem:[#allocation7 + $0x128] ss:$16 sps:$4 sm:$0xff]  }
 0x7ec   :  { %2912 = vmatprep.subr.bf16.mxu0 %v8650_v34  ;;  %2982 = vmatprep.subr.bf16.mxu1 %v8696_v47  ;;  %v8753_v0 = vld [vmem:[#allocation7 + $0x228] ss:$16 sps:$4 sm:$0xff]   ;;  %v8758_v34 = vld [vmem:[#allocation7 + $0x10c] ss:$16 sps:$4 sm:$0xff]  }
 0x7ed   :  { %3012 = vmatprep.mubr.bf16.mxu1 %v11304_v14  ;;  %v8684_v14 = vld [vmem:[#allocation7 + $0x100] ss:$16 sps:$4 sm:$0xff]   ;;  %v8761_v47 = vld [vmem:[#allocation7 + $0x20c] ss:$16 sps:$4 sm:$0xff]  }
 0x7ef   :  { %2913 = vmatpush2.bf16.msra.mxu0 %v8648_v25  ;;  %2983 = vmatpush1.bf16.msra.mxu1 %v8694_v20  ;;  %v8756_v25 = vld [vmem:[#allocation7 + $0x108] ss:$16 sps:$4 sm:$0xff]  }
 0x7f0   :  { %2914 = vmatprep.subr.bf16.mxu0 %v8656_v53  ;;  %2984 = vmatprep.subr.bf16.mxu1 %v8699_v4  ;;  %v8759_v20 = vld [vmem:[#allocation7 + $0x208] ss:$16 sps:$4 sm:$0xff]   ;;  %v8764_v53 = vld [vmem:[#allocation5 + $0xe4] ss:$16 sps:$4 sm:$0xff]   ;;  %v8767_v4 = vld [vmem:[#allocation5 + $0xec] ss:$16 sps:$4 sm:$0xff]  }
 0x7f3   :  { %2915 = vmatpush2.bf16.msra.mxu0 %v8654_v61  ;;  %2985 = vmatpush1.bf16.msra.mxu1 %v8697_v12  ;;  %v8762_v61 = vld [vmem:[#allocation5 + $0xe0] ss:$16 sps:$4 sm:$0xff]   ;;  %v8765_v12 = vld [vmem:[#allocation5 + $0xe8] ss:$16 sps:$4 sm:$0xff]  }
 0x7f4   :  { %2916 = vmatprep.subr.bf16.mxu0 %v8662_v42  ;;  %2986 = vmatprep.subr.bf16.mxu1 %v8702_v40  ;;  %v8770_v42 = vld [vmem:[#allocation5 + $0xc4] ss:$16 sps:$4 sm:$0xff]   ;;  %v8773_v40 = vld [vmem:[#allocation5 + $0xcc] ss:$16 sps:$4 sm:$0xff]  }
 0x7f7   :  { %2917 = vmatpush2.bf16.msra.mxu0 %v8660_v48  ;;  %2987 = vmatpush1.bf16.msra.mxu1 %v8700_v46  ;;  %v8768_v48 = vld [vmem:[#allocation5 + $0xc0] ss:$16 sps:$4 sm:$0xff]   ;;  %v8771_v46 = vld [vmem:[#allocation5 + $0xc8] ss:$16 sps:$4 sm:$0xff]  }
 0x7f8   :  { %2918 = vmatprep.subr.bf16.mxu0 %v8668_v52  ;;  %2988 = vmatprep.subr.bf16.mxu1 %v8705_v21  ;;  %v8779_v52 = vld [vmem:[#allocation5 + $0xac] ss:$16 sps:$4 sm:$0xff]   ;;  %v8774_v21 = vld [vmem:[#allocation5 + $0xa0] ss:$16 sps:$4 sm:$0xff]  }
 0x7fb   :  { %2919 = vmatpush2.bf16.msra.mxu0 %v8666_v33  ;;  %2989 = vmatpush1.bf16.msra.mxu1 %v8703_v8  ;;  %v8777_v33 = vld [vmem:[#allocation5 + $0xa8] ss:$16 sps:$4 sm:$0xff]   ;;  %v8782_v8 = vld [vmem:[#allocation5 + $0x84] ss:$16 sps:$4 sm:$0xff]  }
 0x7fc   :  { %2920 = vmatprep.subr.bf16.mxu0 %v8674_v51  ;;  %2990 = vmatprep.subr.bf16.mxu1 %v8708_v5  ;;  %v8785_v51 = vld [vmem:[#allocation5 + $0x8c] ss:$16 sps:$4 sm:$0xff]   ;;  %v8780_v5 = vld [vmem:[#allocation5 + $0x80] ss:$16 sps:$4 sm:$0xff]  }
 0x7ff   :  { %2921 = vmatpush2.bf16.msra.mxu0 %v8672_v13  ;;  %2991 = vmatpush1.bf16.msra.mxu1 %v8706_v24  ;;  %v8783_v13 = vld [vmem:[#allocation5 + $0x88] ss:$16 sps:$4 sm:$0xff]   ;;  %v8788_v24 = vld [vmem:[#allocation5 + $0x64] ss:$16 sps:$4 sm:$0xff]  }
 0x800   :  { %2922 = vmatprep.subr.bf16.mxu0 %v8680_v62  ;;  %2992 = vmatprep.subr.bf16.mxu1 %v8711_v1  ;;  %v8791_v62 = vld [vmem:[#allocation5 + $0x6c] ss:$16 sps:$4 sm:$0xff]   ;;  %v8786_v1 = vld [vmem:[#allocation5 + $0x60] ss:$16 sps:$4 sm:$0xff]  }
 0x803   :  { %2923 = vmatpush2.bf16.msra.mxu0 %v8678_v26  ;;  %2993 = vmatpush1.bf16.msra.mxu1 %v8709_v7  ;;  %v8794_v26 = vld [vmem:[#allocation5 + $0x44] ss:$16 sps:$4 sm:$0xff]   ;;  %v8797_v7 = vld [vmem:[#allocation5 + $0x4c] ss:$16 sps:$4 sm:$0xff]  }
 0x804   :  { %2924 = vmatprep.subr.bf16.mxu0 %v8686_v11  ;;  %2994 = vmatprep.subr.bf16.mxu1 %v8714_v30  ;;  %v8792_v11 = vld [vmem:[#allocation5 + $0x40] ss:$16 sps:$4 sm:$0xff]   ;;  %v8795_v30 = vld [vmem:[#allocation5 + $0x48] ss:$16 sps:$4 sm:$0xff]  }
 0x807   :  { %2925 = vmatpush2.bf16.msra.mxu0 %v8684_v14  ;;  %2995 = vmatpush1.bf16.msra.mxu1 %v8712_v57  ;;  %v8803_v14 = vld [vmem:[#allocation5 + $0x2c] ss:$16 sps:$4 sm:$0xff]   ;;  %v8798_v57 = vld [vmem:[#allocation5 + $0x20] ss:$16 sps:$4 sm:$0xff]  }
 0x808   :  { %2996 = vmatprep.subr.bf16.mxu1 %v8717_v60  ;;  %3023 = vmatprep.subr.bf16.mxu0 %v2892_v3  ;;  %v8806_v60 = vld [vmem:[#allocation5 + $0x4] ss:$16 sps:$4 sm:$0xff]   ;;  %v8809_v3 = vld [vmem:[#allocation5 + $0xc] ss:$16 sps:$4 sm:$0xff]  }
 0x80a   :  { %2927 = vmatmul.mubr.bf16.vlgmr.msra.gmra.mxu0 %v11321_v17 }
 0x80b   :  { %2997 = vmatpush2.bf16.msra.mxu1 %v8715_v58  ;;  %3024 = vmatpush1.bf16.msra.mxu0 %v2889_v50  ;;  %v8807_v58 = vld [vmem:[#allocation5 + $0x8] ss:$16 sps:$4 sm:$0xff]   ;;  %v8812_v50 = vld [vmem:[#allocation8 + $0xe4] ss:$16 sps:$4 sm:$0xff]  }
 0x80c   :  { %2998 = vmatprep.subr.bf16.mxu1 %v8722_v27  ;;  %3025 = vmatprep.subr.bf16.mxu0 %v8725_v22  ;;  %v8815_v27 = vld [vmem:[#allocation8 + $0x2e4] ss:$16 sps:$4 sm:$0xff]  }
 0x80d   :  { %3055 = vmatprep.mubr.bf16.mxu0 %v11536_v35 }
 0x80f   :  { %2999 = vmatpush2.bf16.msra.mxu1 %v8720_v15  ;;  %3026 = vmatpush1.bf16.msra.mxu0 %v8723_v32  ;;  %v11571_v15 = vld [vmem:[#allocation58_spill] sm:$0xff] }
 0x810   :  { %3000 = vmatprep.subr.bf16.mxu1 %v8728_v23  ;;  %3027 = vmatprep.subr.bf16.mxu0 %v8731_v55 }
 0x813   :  { %3001 = vmatpush2.bf16.msra.mxu1 %v8726_v19  ;;  %3028 = vmatpush1.bf16.msra.mxu0 %v8729_v59  ;;  %v11572_v59 = vld [vmem:[#allocation60_spill] sm:$0xff] }
 0x814   :  { %3002 = vmatprep.subr.bf16.mxu1 %v8734_v2  ;;  %3029 = vmatprep.subr.bf16.mxu0 %v8737_v6 }
 0x817   :  { %3003 = vmatpush2.bf16.msra.mxu1 %v8732_v31  ;;  %3030 = vmatpush1.bf16.msra.mxu0 %v8735_v63  ;;  %v11573_v63 = vld [vmem:[#allocation62_spill] sm:$0xff] }
 0x818   :  { %3004 = vmatprep.subr.bf16.mxu1 %v8740_v10  ;;  %3031 = vmatprep.subr.bf16.mxu0 %v8743_v9 }
 0x81b   :  { %3005 = vmatpush2.bf16.msra.mxu1 %v8738_v18  ;;  %3032 = vmatpush1.bf16.msra.mxu0 %v8741_v39 }
 0x81c   :  { %3006 = vmatprep.subr.bf16.mxu1 %v8746_v43  ;;  %3033 = vmatprep.subr.bf16.mxu0 %v8749_v49  ;;  %v11574_v43 = vld [vmem:[#allocation64_spill] sm:$0xff] }
 0x81f   :  { %3007 = vmatpush2.bf16.msra.mxu1 %v8744_v29  ;;  %3034 = vmatpush1.bf16.msra.mxu0 %v8747_v56  ;;  %v11575_v56 = vld [vmem:[#allocation59_spill] sm:$0xff] }
 0x820   :  { %3008 = vmatprep.subr.bf16.mxu1 %v8752_v28  ;;  %3035 = vmatprep.subr.bf16.mxu0 %v8755_v45 }
 0x823   :  { %3009 = vmatpush2.bf16.msra.mxu1 %v8750_v38  ;;  %3036 = vmatpush1.bf16.msra.mxu0 %v8753_v0  ;;  %v11576_v38 = vld [vmem:[#allocation63_spill] sm:$0xff] }
 0x824   :  { %3010 = vmatprep.subr.bf16.mxu1 %v8758_v34  ;;  %3037 = vmatprep.subr.bf16.mxu0 %v8761_v47  ;;  %v11577_v47 = vld [vmem:[#allocation61_spill] sm:$0xff] }
 0x827   :  { %3011 = vmatpush2.bf16.msra.mxu1 %v8756_v25  ;;  %3038 = vmatpush1.bf16.msra.mxu0 %v8759_v20 }
 0x828   :  { %3226 = vmatprep.subr.bf16.mxu0 %v8764_v53  ;;  %3269 = vmatprep.subr.bf16.mxu1 %v8767_v4 }
 0x82a   :  { %3013 = vmatmul.mubr.bf16.vlgmr.msra.gmra.mxu1 %v11321_v17  ;;  %7844 = vmatmul.mubr.msk.bf16.vlgmr.msra.gmra.mxu0 %vm2874_vm4, %v11312_v16  ;;  %v8776_v16 = vld [vmem:[#allocation5 + $0xa4] ss:$16 sps:$4 sm:$0xff]   ;;  %v8804_v17 = vld [vmem:[#allocation5] ss:$16 sps:$4 sm:$0xff]  }
 0x82b   :  { %3258 = vmatprep.mubr.bf16.mxu0 %v11536_v35  ;;  %3301 = vmatprep.mubr.bf16.mxu1 %v11536_v35 }
 0x82c   :  { %3227 = vmatpush1.bf16.msra.mxu0 %v8762_v61  ;;  %3270 = vmatpush1.bf16.msra.mxu1 %v8765_v12 }
 0x82d   :  { %3228 = vmatprep.subr.bf16.mxu0 %v8770_v42  ;;  %3271 = vmatprep.subr.bf16.mxu1 %v8773_v40  ;;  %v11578_v42 = vld [vmem:[#allocation65_spill] sm:$0xff] }
 0x830   :  { %3229 = vmatpush1.bf16.msra.mxu0 %v8768_v48  ;;  %3272 = vmatpush1.bf16.msra.mxu1 %v8771_v46 }
 0x831   :  { %3230 = vmatprep.subr.bf16.mxu0 %v8776_v16  ;;  %3273 = vmatprep.subr.bf16.mxu1 %v8779_v52 }
 0x834   :  { %3231 = vmatpush1.bf16.msra.mxu0 %v8774_v21  ;;  %3274 = vmatpush1.bf16.msra.mxu1 %v8777_v33 }
 0x835   :  { %3232 = vmatprep.subr.bf16.mxu0 %v8782_v8  ;;  %3275 = vmatprep.subr.bf16.mxu1 %v8785_v51 }
 0x838   :  { %3233 = vmatpush1.bf16.msra.mxu0 %v8780_v5  ;;  %3276 = vmatpush1.bf16.msra.mxu1 %v8783_v13 }
 0x839   :  { %3234 = vmatprep.subr.bf16.mxu0 %v8788_v24  ;;  %3277 = vmatprep.subr.bf16.mxu1 %v8791_v62 }
 0x83c   :  { %3235 = vmatpush1.bf16.msra.mxu0 %v8786_v1  ;;  %3278 = vmatpush1.bf16.msra.mxu1 %v8789_v41 }
 0x83d   :  { %3236 = vmatprep.subr.bf16.mxu0 %v8794_v26  ;;  %3279 = vmatprep.subr.bf16.mxu1 %v8797_v7 }
 0x840   :  { %3237 = vmatpush1.bf16.msra.mxu0 %v8792_v11  ;;  %3280 = vmatpush1.bf16.msra.mxu1 %v8795_v30 }
 0x841   :  { %3238 = vmatprep.subr.bf16.mxu0 %v8800_v37  ;;  %3281 = vmatprep.subr.bf16.mxu1 %v8803_v14 }
 0x844   :  { %3239 = vmatpush1.bf16.msra.mxu0 %v8798_v57  ;;  %3282 = vmatpush1.bf16.msra.mxu1 %v8801_v54 }
 0x845   :  { %3240 = vmatprep.subr.bf16.mxu0 %v8806_v60  ;;  %3283 = vmatprep.subr.bf16.mxu1 %v8809_v3 }
 0x848   :  { %3241 = vmatpush1.bf16.msra.mxu0 %v8804_v17  ;;  %3284 = vmatpush1.bf16.msra.mxu1 %v8807_v58 }
 0x849   :  { %4140 = vmatprep.subr.bf16.mxu0 %v8812_v50  ;;  %4183 = vmatprep.subr.bf16.mxu1 %v8815_v27  ;;  %v8810_v27 = vld [vmem:[#allocation8 + $0xe0] ss:$16 sps:$4 sm:$0xff]  }
 0x88a   :  { %v2150_v22 = vpop.f32.mrf.mxu0  ;;  %v2193_v19 = vpop.f32.mrf.mxu1 }
 0x88b   :  { %v2202_v32 = vadd.f32 %v2150_v22, %v11571_v15  ;;  %v2204_v28 = vadd.f32 %v2193_v19, %v11575_v56  ;;  %v8818_v15 = vld [vmem:[#allocation8 + $0xc4] ss:$16 sps:$4 sm:$0xff]   ;;  %v8840_v56 = vld [vmem:[#allocation8 + $0x40] ss:$16 sps:$4 sm:$0xff]  }
 0x88c   :  { %v2152_v23 = vpop.f32.mrf.mxu0  ;;  %v2195_v18 = vpop.f32.mrf.mxu1  ;;  %v8827_v19 = vld [vmem:[#allocation8 + $0x2a4] ss:$16 sps:$4 sm:$0xff]  }
 0x88d   :  { %v7738_v55 = vmul.f32 -1.442695, %v2202_v32  ;;  %v2203_v2 = vadd.f32 %v2152_v23, %v11572_v59  ;;  %v7740_v34 = vmul.f32 -1.442695, %v2204_v28  ;;  %v2205_v25 = vadd.f32 %v2195_v18, %v11577_v47  ;;  %v8821_v32 = vld [vmem:[#allocation8 + $0x2c4] ss:$16 sps:$4 sm:$0xff]  }
 0x88e   :  { %v2154_v6 = vpop.f32.mrf.mxu0  ;;  %v2197_v45 = vpop.f32.mrf.mxu1  ;;  %v8816_v23 = vld [vmem:[#allocation8 + $0xc0] ss:$16 sps:$4 sm:$0xff]   ;;  %v8839_v18 = vld [vmem:[#allocation8 + $0x264] ss:$16 sps:$4 sm:$0xff]  }
 0x88f   :  { %9834 = vpow2.f32 %v7738_v55  ;;  %v7739_v31 = vmul.f32 -1.442695, %v2203_v2  ;;  %v2206_v10 = vadd.f32 %v2154_v6, %v11573_v63  ;;  %v2208_v0 = vadd.f32 %v2197_v45, %v11576_v38  ;;  %v8824_v55 = vld [vmem:[#allocation8 + $0xa4] ss:$16 sps:$4 sm:$0xff]   ;;  %v8822_v59 = vld [vmem:[#allocation8 + $0xa0] ss:$16 sps:$4 sm:$0xff]  }
 0x890   :  { %v2156_v9 = vpop.f32.mrf.mxu0  ;;  %v2199_v20 = vpop.f32.mrf.mxu1  ;;  %v8825_v2 = vld [vmem:[#allocation8 + $0x2a0] ss:$16 sps:$4 sm:$0xff]   ;;  %v8830_v6 = vld [vmem:[#allocation8 + $0x84] ss:$16 sps:$4 sm:$0xff]  }
 0x891   :  { %9836 = vpow2.f32 %v7739_v31  ;;  %v7741_v39 = vmul.f32 -1.442695, %v2206_v10  ;;  %v2207_v49 = vadd.f32 %v2156_v9, %v11574_v43  ;;  %v7743_v4 = vmul.f32 -1.442695, %v2208_v0  ;;  %v8833_v31 = vld [vmem:[#allocation8 + $0x284] ss:$16 sps:$4 sm:$0xff]  }
 0x892   :  { %v2209_v40 = vadd.f32 %v2199_v20, %v11578_v42  ;;  %v8828_v63 = vld [vmem:[#allocation8 + $0x80] ss:$16 sps:$4 sm:$0xff]   ;;  %v8836_v9 = vld [vmem:[#allocation8 + $0x64] ss:$16 sps:$4 sm:$0xff]  }
 0x893   :  { %9838 = vpow2.f32 %v7741_v39  ;;  %v7742_v29 = vmul.f32 -1.442695, %v2207_v49  ;;  %v8831_v10 = vld [vmem:[#allocation8 + $0x280] ss:$16 sps:$4 sm:$0xff]   ;;  %v8842_v49 = vld [vmem:[#allocation8 + $0x44] ss:$16 sps:$4 sm:$0xff]  }
 0x894   :  { %v8834_v39 = vld [vmem:[#allocation8 + $0x60] ss:$16 sps:$4 sm:$0xff]   ;;  %v8848_v45 = vld [vmem:[#allocation8 + $0x24] ss:$16 sps:$4 sm:$0xff]  }
 0x895   :  { %9840 = vpow2.f32 %v7742_v29  ;;  %v8837_v43 = vld [vmem:[#allocation8 + $0x260] ss:$16 sps:$4 sm:$0xff]   ;;  %v8845_v29 = vld [vmem:[#allocation8 + $0x244] ss:$16 sps:$4 sm:$0xff]  }
 0x896   :  { %9842 = vpow2.f32 %v7740_v34  ;;  %v8843_v28 = vld [vmem:[#allocation8 + $0x240] ss:$16 sps:$4 sm:$0xff]   ;;  %v8851_v38 = vld [vmem:[#allocation8 + $0x224] ss:$16 sps:$4 sm:$0xff]  }
 0x897   :  { %9844 = vtanh.f32 %v2205_v25  ;;  %v8846_v0 = vld [vmem:[#allocation8 + $0x20] ss:$16 sps:$4 sm:$0xff]   ;;  %v8854_v47 = vld [vmem:[#allocation8 + $0x4] ss:$16 sps:$4 sm:$0xff]  }
 0x898   :  { %v8849_v34 = vld [vmem:[#allocation8 + $0x220] ss:$16 sps:$4 sm:$0xff]   ;;  %v8857_v25 = vld [vmem:[#allocation8 + $0x204] ss:$16 sps:$4 sm:$0xff]  }
 0x899   :  { %v8852_v20 = vld [vmem:[#allocation8] ss:$16 sps:$4 sm:$0xff]  }
 0x89a   :  { %v8861_v42 = vld [vmem:[#allocation8 + $0x3e0] ss:$16 sps:$4 sm:$0xff]  }
 0x89c   :  { %v9835_v53 = vpop.eup %9834 }
 0x89d   :  { %v2228_v61 = vadd.f32 1.0, %v9835_v53  ;;  %v8855_v53 = vld [vmem:[#allocation8 + $0x200] ss:$16 sps:$4 sm:$0xff]  }
 0x89e   :  { %v9837_v12 = vpop.eup %9836 }
 0x89f   :  { %9846 = vrcp.f32 %v2228_v61  ;;  %v2229_v48 = vadd.f32 1.0, %v9837_v12  ;;  %v8863_v61 = vld [vmem:[#allocation8 + $0x3e4] ss:$16 sps:$4 sm:$0xff]   ;;  %v8858_v12 = vld [vmem:[#allocation8 + $0x1e0] ss:$16 sps:$4 sm:$0xff]  }
 0x8a0   :  { %v9839_v46 = vpop.eup %9838  ;;  %9848 = vpow2.f32 %v7743_v4  ;;  %v8860_v4 = vld [vmem:[#allocation8 + $0x1e4] ss:$16 sps:$4 sm:$0xff]  }
 0x8a1   :  { %9850 = vrcp.f32 %v2229_v48  ;;  %v2231_v16 = vadd.f32 1.0, %v9839_v46  ;;  %v8869_v48 = vld [vmem:[#allocation8 + $0x3c4] ss:$16 sps:$4 sm:$0xff]   ;;  %v8864_v46 = vld [vmem:[#allocation8 + $0x1c0] ss:$16 sps:$4 sm:$0xff]  }
 0x8a2   :  { %v9841_v52 = vpop.eup %9840  ;;  %9852 = vtanh.f32 %v2209_v40  ;;  %v8866_v40 = vld [vmem:[#allocation8 + $0x1c4] ss:$16 sps:$4 sm:$0xff]  }
 0x8a3   :  { %9854 = vrcp.f32 %v2231_v16  ;;  %v2232_v21 = vadd.f32 1.0, %v9841_v52  ;;  %v9843_v33 = vpop.eup %9842  ;;  %v8867_v16 = vld [vmem:[#allocation8 + $0x3c0] ss:$16 sps:$4 sm:$0xff]   ;;  %v8872_v52 = vld [vmem:[#allocation8 + $0x1a4] ss:$16 sps:$4 sm:$0xff]  }
 0x8a4   :  { %v9845_v8 = vpop.eup %9844  ;;  %v2230_v62 = vadd.f32 1.0, %v9843_v33  ;;  %v8870_v33 = vld [vmem:[#allocation8 + $0x1a0] ss:$16 sps:$4 sm:$0xff]  }
 0x8a5   :  { %9856 = vrcp.f32 %v2232_v21  ;;  %v8875_v21 = vld [vmem:[#allocation8 + $0x3a4] ss:$16 sps:$4 sm:$0xff]  }
 0x8a6   :  { %9858 = vrcp.f32 %v2230_v62  ;;  %v8884_v62 = vld [vmem:[#allocation8 + $0x164] ss:$16 sps:$4 sm:$0xff]  }
 0x8ac   :  { %v9847_v51 = vpop.eup %9846 }
 0x8ad   :  { %v9849_v5 = vpop.eup %9848  ;;  %v2250_v13 = vmul.f32 %v9847_v51, %v9845_v8  ;;  %v8873_v8 = vld [vmem:[#allocation8 + $0x3a0] ss:$16 sps:$4 sm:$0xff]   ;;  %v8878_v51 = vld [vmem:[#allocation8 + $0x184] ss:$16 sps:$4 sm:$0xff]  }
 0x8ae   :  { %v9851_v24 = vpop.eup %9850  ;;  %v2233_v37 = vadd.f32 1.0, %v9849_v5  ;;  %v8881_v5 = vld [vmem:[#allocation8 + $0x384] ss:$16 sps:$4 sm:$0xff]  }
 0x8af   :  { %v9853_v1 = vpop.eup %9852  ;;  %v2248_v41 = vmul.f32 %v9851_v24, %v11294_v44  ;;  %v8813_v44 = vld [vmem:[#allocation8 + $0x2e0] ss:$16 sps:$4 sm:$0xff]  }
 0x8b0   :  { %v9855_v26 = vpop.eup %9854  ;;  %v8879_v24 = vld [vmem:[#allocation8 + $0x380] ss:$16 sps:$4 sm:$0xff]  }
 0x8b1   :  { %v2252_v7 = vadd.f32 %v2250_v13, %v2248_v41  ;;  %v2251_v11 = vmul.f32 %v9855_v26, %v9853_v1  ;;  %v8876_v13 = vld [vmem:[#allocation8 + $0x180] ss:$16 sps:$4 sm:$0xff]   ;;  %v8887_v1 = vld [vmem:[#allocation8 + $0x364] ss:$16 sps:$4 sm:$0xff]  }
 0x8b2   :  { %v9857_v30 = vpop.eup %9856  ;;  %v8882_v41 = vld [vmem:[#allocation8 + $0x160] ss:$16 sps:$4 sm:$0xff]  }
 0x8b3   :  { %9860 = vtanh.f32 %v2252_v7  ;;  %v2249_v14 = vmul.f32 %v9857_v30, %v11298_v36  ;;  %v9859_v54 = vpop.eup %9858  ;;  %v8819_v36 = vld [vmem:[#allocation8 + $0x2c0] ss:$16 sps:$4 sm:$0xff]   ;;  %v8890_v7 = vld [vmem:[#allocation8 + $0x144] ss:$16 sps:$4 sm:$0xff]  }
 0x8b4   :  { %9862 = vrcp.f32 %v2233_v37  ;;  %v8885_v26 = vld [vmem:[#allocation8 + $0x360] ss:$16 sps:$4 sm:$0xff]  }
 0x8b5   :  { %v2253_v57 = vadd.f32 %v2251_v11, %v2249_v14  ;;  %v8893_v11 = vld [vmem:[#allocation8 + $0x344] ss:$16 sps:$4 sm:$0xff]   ;;  %v8888_v30 = vld [vmem:[#allocation8 + $0x140] ss:$16 sps:$4 sm:$0xff]  }
 0x8b6   :  { %v8891_v37 = vld [vmem:[#allocation8 + $0x340] ss:$16 sps:$4 sm:$0xff]   ;;  %v8896_v14 = vld [vmem:[#allocation8 + $0x124] ss:$16 sps:$4 sm:$0xff]  }
 0x8b7   :  { %9864 = vtanh.f32 %v2253_v57  ;;  %v8899_v57 = vld [vmem:[#allocation8 + $0x324] ss:$16 sps:$4 sm:$0xff]  }
 0x8c0   :  { %v9861_v60 = vpop.eup %9860 }
 0x8c1   :  { %v2256_v3 = vmul.f32 %v9861_v60, %v9859_v54  ;;  %v9863_v17 = vpop.eup %9862  ;;  %v8894_v54 = vld [vmem:[#allocation8 + $0x120] ss:$16 sps:$4 sm:$0xff]  }
 0x8c2   :  { %v8897_v60 = vld [vmem:[#allocation8 + $0x320] ss:$16 sps:$4 sm:$0xff]  }
 0x8c4   :  { %v9865_v58 = vpop.eup %9864 }
 0x8c5   :  { %v2257_v50 = vmul.f32 %v9865_v58, %v9863_v17  ;;  %v8902_v17 = vld [vmem:[#allocation8 + $0x104] ss:$16 sps:$4 sm:$0xff]   ;;  %v8903_v58 = vld [vmem:[#allocation8 + $0x300] ss:$16 sps:$4 sm:$0xff]  }
 0x8c7   :  { %v2258_v22 = vpack.c.bf16 %v2257_v50, %v2256_v3  ;;  %v8900_v3 = vld [vmem:[#allocation8 + $0x100] ss:$16 sps:$4 sm:$0xff]   ;;  %v8905_v50 = vld [vmem:[#allocation8 + $0x304] ss:$16 sps:$4 sm:$0xff]  }
 0x8c9   :  { %3259 = vmatmul.mubr.bf16.vlgmr.msra.gmra.mxu0 %v2258_v22  ;;  %3302 = vmatmul.mubr.bf16.vlgmr.msra.gmra.mxu1 %v2258_v22 }
 0x8ca   :  { %4141 = vmatpush1.bf16.msra.mxu0 %v8810_v27  ;;  %4184 = vmatpush1.bf16.msra.mxu1 %v8813_v44  ;;  %v8908_v27 = vld [vmem:[#allocation8 + $0xec] ss:$16 sps:$4 sm:$0xff]   ;;  %v2928_v22 = vpop.f32.mrf.mxu0 }
 0x8cb   :  { %4142 = vmatprep.subr.bf16.mxu0 %v8818_v15  ;;  %4185 = vmatprep.subr.bf16.mxu1 %v8821_v32  ;;  %v8911_v44 = vld [vmem:[#allocation8 + $0x2ec] ss:$16 sps:$4 sm:$0xff]   ;;  %v2971_v15 = vpop.f32.mrf.mxu1 }
 0x8cc   :  { %v2930_v32 = vpop.f32.mrf.mxu0 }
 0x8ce   :  { %4143 = vmatpush1.bf16.msra.mxu0 %v8816_v23  ;;  %4186 = vmatpush1.bf16.msra.mxu1 %v8819_v36  ;;  %v2973_v23 = vpop.f32.mrf.mxu1  ;;  %v2932_v36 = vpop.f32.mrf.mxu0 }
 0x8cf   :  { %4144 = vmatprep.subr.bf16.mxu0 %v8824_v55  ;;  %4187 = vmatprep.subr.bf16.mxu1 %v8827_v19 }
 0x8d0   :  { %v2975_v55 = vpop.f32.mrf.mxu1  ;;  %v2934_v19 = vpop.f32.mrf.mxu0 }
 0x8d2   :  { %4145 = vmatpush1.bf16.msra.mxu0 %v8822_v59  ;;  %4188 = vmatpush1.bf16.msra.mxu1 %v8825_v2  ;;  %v2977_v59 = vpop.f32.mrf.mxu1 }
 0x8d3   :  { %4146 = vmatprep.subr.bf16.mxu0 %v8830_v6  ;;  %4189 = vmatprep.subr.bf16.mxu1 %v8833_v31 }
 0x8d6   :  { %4147 = vmatpush1.bf16.msra.mxu0 %v8828_v63  ;;  %4190 = vmatpush1.bf16.msra.mxu1 %v8831_v10 }
 0x8d7   :  { %4148 = vmatprep.subr.bf16.mxu0 %v8836_v9  ;;  %4191 = vmatprep.subr.bf16.mxu1 %v8839_v18 }
 0x8da   :  { %4149 = vmatpush1.bf16.msra.mxu0 %v8834_v39  ;;  %4192 = vmatpush1.bf16.msra.mxu1 %v8837_v43 }
 0x8db   :  { %4150 = vmatprep.subr.bf16.mxu0 %v8842_v49  ;;  %4193 = vmatprep.subr.bf16.mxu1 %v8845_v29  ;;  %v3312_v49 = vld [vmem:[%s11462_s7] sm:$0xf] }
 0x8de   :  { %4151 = vmatpush1.bf16.msra.mxu0 %v8840_v56  ;;  %4194 = vmatpush1.bf16.msra.mxu1 %v8843_v28  ;;  %v2972_v56 = vadd.f32 %v2971_v15, %v2928_v22  ;;  %v2974_v28 = vadd.f32 %v2973_v23, %v2930_v32  ;;  %v8906_v22 = vld [vmem:[#allocation8 + $0xe8] ss:$16 sps:$4 sm:$0xff]  }
 0x8df   :  { %4152 = vmatprep.subr.bf16.mxu0 %v8848_v45  ;;  %4195 = vmatprep.subr.bf16.mxu1 %v8851_v38  ;;  %v2976_v45 = vadd.f32 %v2975_v55, %v2932_v36  ;;  %v2978_v38 = vadd.f32 %v2977_v59, %v2934_v19  ;;  %v8909_v15 = vld [vmem:[#allocation8 + $0x2e8] ss:$16 sps:$4 sm:$0xff]   ;;  %v8914_v36 = vld [vmem:[#allocation8 + $0xcc] ss:$16 sps:$4 sm:$0xff]  }
 0x8e0   :  { %v8917_v55 = vld [vmem:[#allocation8 + $0x2cc] ss:$16 sps:$4 sm:$0xff]   ;;  %v8912_v19 = vld [vmem:[#allocation8 + $0xc8] ss:$16 sps:$4 sm:$0xff]  }
 0x8e1   :  { %v8915_v59 = vld [vmem:[#allocation8 + $0x2c8] ss:$16 sps:$4 sm:$0xff]  }
 0x8e2   :  { %4153 = vmatpush1.bf16.msra.mxu0 %v8846_v0  ;;  %4196 = vmatpush1.bf16.msra.mxu1 %v8849_v34 }
 0x8e3   :  { %4154 = vmatprep.subr.bf16.mxu0 %v8854_v47  ;;  %4197 = vmatprep.subr.bf16.mxu1 %v8857_v25 }
 0x8e6   :  { %4155 = vmatpush1.bf16.msra.mxu0 %v8852_v20  ;;  %4198 = vmatpush1.bf16.msra.mxu1 %v8855_v53 }
 0x8e7   :  { %4156 = vmatprep.subr.bf16.mxu0 %v8860_v4  ;;  %4199 = vmatprep.subr.bf16.mxu1 %v8863_v61  ;;  %v11579_v4 = vld [vmem:[#allocation21_spill] sm:$0xff] }
 0x8e8   :  { %v3317_v61 = vrot.slane %v3312_v49, %v11579_v4 }
 0x8ea   :  { %4157 = vmatpush2.bf16.msra.mxu0 %v8858_v12  ;;  %4200 = vmatpush2.bf16.msra.mxu1 %v8861_v42  ;;  %v3014_v2 = vpop.f32.mrf.mxu1  ;;  %v3057_v6 = vpop.f32.mrf.mxu0  ;;  %v11580_v12 = vld [vmem:[#allocation22_spill] sm:$0xff] }
 0x8eb   :  { %4158 = vmatprep.subr.bf16.mxu0 %v8866_v40  ;;  %4201 = vmatprep.subr.bf16.mxu1 %v8869_v48  ;;  %v3058_v0 = vadd.f32 %v3057_v6, %v3014_v2  ;;  %v3325_v42 = vrot.slane %v3312_v49, %v11580_v12  ;;  %v8920_v2 = vld [vmem:[#allocation8 + $0xac] ss:$16 sps:$4 sm:$0xff]  }
 0x8ec   :  { %v3016_v31 = vpop.f32.mrf.mxu1  ;;  %v3059_v63 = vpop.f32.mrf.mxu0  ;;  %v8923_v6 = vld [vmem:[#allocation8 + $0x2ac] ss:$16 sps:$4 sm:$0xff]  }
 0x8ed   :  { %v3060_v34 = vadd.f32 %v3059_v63, %v3016_v31  ;;  %v8918_v31 = vld [vmem:[#allocation8 + $0xa8] ss:$16 sps:$4 sm:$0xff]  }
 0x8ee   :  { %4159 = vmatpush2.bf16.msra.mxu0 %v8864_v46  ;;  %4202 = vmatpush2.bf16.msra.mxu1 %v8867_v16  ;;  %v3018_v10 = vpop.f32.mrf.mxu1  ;;  %v3061_v9 = vpop.f32.mrf.mxu0  ;;  %v11581_v46 = vld [vmem:[#allocation23_spill] sm:$0xff]  ;;  %v8921_v63 = vld [vmem:[#allocation8 + $0x2a8] ss:$16 sps:$4 sm:$0xff]  }
 0x8ef   :  { %4160 = vmatprep.subr.bf16.mxu0 %v8872_v52  ;;  %4203 = vmatprep.subr.bf16.mxu1 %v8875_v21  ;;  %v3062_v20 = vadd.f32 %v3061_v9, %v3018_v10  ;;  %v3321_v16 = vrot.slane %v3312_v49, %v11581_v46  ;;  %v11582_v52 = vld [vmem:[#allocation24_spill] sm:$0xff] }
 0x8f0   :  { %v3020_v18 = vpop.f32.mrf.mxu1  ;;  %v3063_v39 = vpop.f32.mrf.mxu0  ;;  %v3329_v21 = vrot.slane %v3312_v49, %v11582_v52  ;;  %v8926_v10 = vld [vmem:[#allocation8 + $0x8c] ss:$16 sps:$4 sm:$0xff]  }
 0x8f1   :  { %v3064_v53 = vadd.f32 %v3063_v39, %v3020_v18  ;;  %v8929_v9 = vld [vmem:[#allocation8 + $0x28c] ss:$16 sps:$4 sm:$0xff]   ;;  %v8924_v18 = vld [vmem:[#allocation8 + $0x88] ss:$16 sps:$4 sm:$0xff]  }
 0x8f2   :  { %4161 = vmatpush2.bf16.msra.mxu0 %v8870_v33  ;;  %4204 = vmatpush2.bf16.msra.mxu1 %v8873_v8  ;;  %v8927_v39 = vld [vmem:[#allocation8 + $0x288] ss:$16 sps:$4 sm:$0xff]   ;;  %v8935_v49 = vld [vmem:[#allocation8 + $0x26c] ss:$16 sps:$4 sm:$0xff]  }
 0x8f3   :  { %4162 = vmatprep.subr.bf16.mxu0 %v8878_v51  ;;  %4205 = vmatprep.subr.bf16.mxu1 %v8881_v5 }
 0x8f6   :  { %4163 = vmatpush2.bf16.msra.mxu0 %v8876_v13  ;;  %4206 = vmatpush2.bf16.msra.mxu1 %v8879_v24 }
 0x8f7   :  { %4164 = vmatprep.subr.bf16.mxu0 %v8884_v62  ;;  %4207 = vmatprep.subr.bf16.mxu1 %v8887_v1 }
 0x8fa   :  { %4165 = vmatpush2.bf16.msra.mxu0 %v8882_v41  ;;  %4208 = vmatpush2.bf16.msra.mxu1 %v8885_v26 }
 0x8fb   :  { %4166 = vmatprep.subr.bf16.mxu0 %v8890_v7  ;;  %4209 = vmatprep.subr.bf16.mxu1 %v8893_v11 }
 0x8fe   :  { %4167 = vmatpush2.bf16.msra.mxu0 %v8888_v30  ;;  %4210 = vmatpush2.bf16.msra.mxu1 %v8891_v37 }
 0x8ff   :  { %4168 = vmatprep.subr.bf16.mxu0 %v8896_v14  ;;  %4211 = vmatprep.subr.bf16.mxu1 %v8899_v57 }
 0x902   :  { %4169 = vmatpush2.bf16.msra.mxu0 %v8894_v54  ;;  %4212 = vmatpush2.bf16.msra.mxu1 %v8897_v60 }
 0x903   :  { %4170 = vmatprep.subr.bf16.mxu0 %v8902_v17  ;;  %4213 = vmatprep.subr.bf16.mxu1 %v8905_v50 }
 0x906   :  { %4171 = vmatpush2.bf16.msra.mxu0 %v8900_v3  ;;  %4214 = vmatpush2.bf16.msra.mxu1 %v8903_v58 }
 0x907   :  { %4226 = vmatprep.subr.bf16.mxu0 %v8908_v27  ;;  %4269 = vmatprep.subr.bf16.mxu1 %v8911_v44 }
 0x989   :  { %v3260_v43 = vpop.f32.mrf.mxu0  ;;  %v3303_v29 = vpop.f32.mrf.mxu1 }
 0x98a   :  { %v3261_v40 = vadd.f32 %v3260_v43, %v2972_v56  ;;  %v3304_v48 = vadd.f32 %v3303_v29, %v3058_v0  ;;  %v8932_v43 = vld [vmem:[#allocation8 + $0x6c] ss:$16 sps:$4 sm:$0xff]   ;;  %v8930_v29 = vld [vmem:[#allocation8 + $0x68] ss:$16 sps:$4 sm:$0xff]  }
 0x98b   :  { %v3262_v47 = vpop.f32.mrf.mxu0  ;;  %v3305_v25 = vpop.f32.mrf.mxu1  ;;  %v8933_v56 = vld [vmem:[#allocation8 + $0x268] ss:$16 sps:$4 sm:$0xff]  }
 0x98c   :  { %v3263_v51 = vadd.f32 %v3262_v47, %v2974_v28  ;;  %v3306_v5 = vadd.f32 %v3305_v25, %v3060_v34  ;;  %v3334_v30 = vadd.f32 %v3317_v61, %v3261_v40  ;;  %v3336_v37 = vadd.f32 %v3325_v42, %v3304_v48  ;;  %v8938_v28 = vld [vmem:[#allocation8 + $0x4c] ss:$16 sps:$4 sm:$0xff]   ;;  %v8939_v0 = vld [vmem:[#allocation8 + $0x248] ss:$16 sps:$4 sm:$0xff]  }
 0x98d   :  { %v3264_v33 = vpop.f32.mrf.mxu0  ;;  %v3307_v8 = vpop.f32.mrf.mxu1  ;;  %v8944_v34 = vld [vmem:[#allocation8 + $0x2c] ss:$16 sps:$4 sm:$0xff]   ;;  %v8942_v25 = vld [vmem:[#allocation8 + $0x28] ss:$16 sps:$4 sm:$0xff]  }
 0x98e   :  { %v3265_v13 = vadd.f32 %v3264_v33, %v2976_v45  ;;  %v3308_v24 = vadd.f32 %v3307_v8, %v3062_v20  ;;  %v3335_v14 = vadd.f32 %v3321_v16, %v3263_v51  ;;  %v3337_v57 = vadd.f32 %v3329_v21, %v3306_v5  ;;  %v8941_v45 = vld [vmem:[#allocation8 + $0x24c] ss:$16 sps:$4 sm:$0xff]   ;;  %v8945_v20 = vld [vmem:[#allocation8 + $0x228] ss:$16 sps:$4 sm:$0xff]  }
 0x98f   :  { %v3266_v62 = vpop.f32.mrf.mxu0  ;;  %v3309_v1 = vpop.f32.mrf.mxu1  ;;  %v8947_v47 = vld [vmem:[#allocation8 + $0x22c] ss:$16 sps:$4 sm:$0xff]   ;;  %v8951_v40 = vld [vmem:[#allocation8 + $0x208] ss:$16 sps:$4 sm:$0xff]  }
 0x990   :  { %v3338_v41 = vadd.f32 %v3317_v61, %v3265_v13  ;;  %v3340_v26 = vadd.f32 %v3325_v42, %v3308_v24  ;;  %v3267_v7 = vadd.f32 %v3266_v62, %v2978_v38  ;;  %v3310_v11 = vadd.f32 %v3309_v1, %v3064_v53  ;;  %v8936_v38 = vld [vmem:[#allocation8 + $0x48] ss:$16 sps:$4 sm:$0xff]   ;;  %v8950_v53 = vld [vmem:[#allocation8 + $0xc] ss:$16 sps:$4 sm:$0xff]  }
 0x991   :  { %v8953_v61 = vld [vmem:[#allocation8 + $0x20c] ss:$16 sps:$4 sm:$0xff]   ;;  %v8948_v42 = vld [vmem:[#allocation8 + $0x8] ss:$16 sps:$4 sm:$0xff]  }
 0x992   :  { %v3339_v54 = vadd.f32 %v3321_v16, %v3267_v7  ;;  %v3341_v60 = vadd.f32 %v3329_v21, %v3310_v11  ;;  %v3342_v3 = vpack.c.bf16 %v3338_v41, %v3334_v30  ;;  %v3344_v17 = vpack.c.bf16 %v3340_v26, %v3336_v37  ;;  %v8956_v48 = vld [vmem:[#allocation8 + $0x1ec] ss:$16 sps:$4 sm:$0xff]   ;;  %v8954_v21 = vld [vmem:[#allocation8 + $0x1e8] ss:$16 sps:$4 sm:$0xff]  }
 0x993   :  { %v8959_v16 = vld [vmem:[#allocation8 + $0x3ec] ss:$16 sps:$4 sm:$0xff]   ;;  %v8957_v33 = vld [vmem:[#allocation8 + $0x3e8] ss:$16 sps:$4 sm:$0xff]  }
 0x994   :  { %v3343_v58 = vpack.c.bf16 %v3339_v54, %v3335_v14  ;;  %v3345_v50 = vpack.c.bf16 %v3341_v60, %v3337_v57  ;;  %v11351_v32 = vmax.bf16 %v11536_v35, %v3342_v3  ;;  %v11354_v23 = vmax.bf16 %v11536_v35, %v3344_v17  ;;  %v8962_v8 = vld [vmem:[#allocation8 + $0x1cc] ss:$16 sps:$4 sm:$0xff]   ;;  %v8960_v5 = vld [vmem:[#allocation8 + $0x1c8] ss:$16 sps:$4 sm:$0xff]  }
 0x995   :  { %v8965_v51 = vld [vmem:[#allocation8 + $0x3cc] ss:$16 sps:$4 sm:$0xff]   ;;  %v8963_v13 = vld [vmem:[#allocation8 + $0x3c8] ss:$16 sps:$4 sm:$0xff]  }
 0x996   :  { %v3347_v27 = vmax.bf16 %v11536_v35, %v3343_v58  ;;  %v3349_v44 = vmax.bf16 %v11536_v35, %v3345_v50  ;;  %v8968_v24 = vld [vmem:[#allocation8 + $0x1ac] ss:$16 sps:$4 sm:$0xff]   ;;  %v8966_v1 = vld [vmem:[#allocation8 + $0x1a8] ss:$16 sps:$4 sm:$0xff]  }
 0x997   :  { %v8971_v62 = vld [vmem:[#allocation8 + $0x3ac] ss:$16 sps:$4 sm:$0xff]   ;;  %v8969_v41 = vld [vmem:[#allocation8 + $0x3a8] ss:$16 sps:$4 sm:$0xff]  }
 0x998   :  { %4172 = vmatprep.mubr.bf16.mxu0 %v3347_v27  ;;  %4215 = vmatprep.mubr.bf16.mxu1 %v3349_v44  ;;  %v8974_v26 = vld [vmem:[#allocation8 + $0x18c] ss:$16 sps:$4 sm:$0xff]   ;;  %v8972_v11 = vld [vmem:[#allocation8 + $0x188] ss:$16 sps:$4 sm:$0xff]  }
 0x999   :  { %4173 = vmatmul.mubr.bf16.vlgmr.msra.gmra.mxu0 %v11351_v32  ;;  %4216 = vmatmul.mubr.bf16.vlgmr.msra.gmra.mxu1 %v11354_v23  ;;  %v8977_v7 = vld [vmem:[#allocation8 + $0x38c] ss:$16 sps:$4 sm:$0xff]   ;;  %v8975_v30 = vld [vmem:[#allocation8 + $0x388] ss:$16 sps:$4 sm:$0xff]  }
 0x99a   :  { %4227 = vmatpush1.bf16.msra.mxu0 %v8906_v22  ;;  %4270 = vmatpush1.bf16.msra.mxu1 %v8909_v15  ;;  %v8980_v37 = vld [vmem:[#allocation8 + $0x16c] ss:$16 sps:$4 sm:$0xff]   ;;  %v8978_v57 = vld [vmem:[#allocation8 + $0x168] ss:$16 sps:$4 sm:$0xff]  }
 0x99b   :  { %4258 = vmatprep.mubr.bf16.mxu0 %v3347_v27  ;;  %4301 = vmatprep.mubr.bf16.mxu1 %v3349_v44  ;;  %v8983_v14 = vld [vmem:[#allocation8 + $0x36c] ss:$16 sps:$4 sm:$0xff]   ;;  %v8981_v54 = vld [vmem:[#allocation8 + $0x368] ss:$16 sps:$4 sm:$0xff]  }
 0x99c   :  { %4228 = vmatprep.subr.bf16.mxu0 %v8914_v36  ;;  %4271 = vmatprep.subr.bf16.mxu1 %v8917_v55  ;;  %v8986_v60 = vld [vmem:[#allocation8 + $0x14c] ss:$16 sps:$4 sm:$0xff]   ;;  %v8984_v17 = vld [vmem:[#allocation8 + $0x148] ss:$16 sps:$4 sm:$0xff]  }
 0x99d   :  { %v8989_v3 = vld [vmem:[#allocation8 + $0x34c] ss:$16 sps:$4 sm:$0xff]   ;;  %v8987_v58 = vld [vmem:[#allocation8 + $0x348] ss:$16 sps:$4 sm:$0xff]  }
 0x99e   :  { %4229 = vmatpush1.bf16.msra.mxu0 %v8912_v19  ;;  %4272 = vmatpush1.bf16.msra.mxu1 %v8915_v59  ;;  %v8992_v50 = vld [vmem:[#allocation8 + $0x12c] ss:$16 sps:$4 sm:$0xff]   ;;  %v8990_v44 = vld [vmem:[#allocation8 + $0x128] ss:$16 sps:$4 sm:$0xff]   ;;  %v9004_v59 = vld [vmem:[#allocation10 + $0xe4] ss:$16 sps:$4 sm:$0xff]  }
 0x99f   :  { %4230 = vmatprep.subr.bf16.mxu0 %v8920_v2  ;;  %4273 = vmatprep.subr.bf16.mxu1 %v8923_v6  ;;  %v8995_v27 = vld [vmem:[#allocation8 + $0x32c] ss:$16 sps:$4 sm:$0xff]   ;;  %v8993_v22 = vld [vmem:[#allocation8 + $0x328] ss:$16 sps:$4 sm:$0xff]   ;;  %v9002_v2 = vld [vmem:[#allocation10 + $0xe0] ss:$16 sps:$4 sm:$0xff]  }
 0x9a0   :  { %v8998_v15 = vld [vmem:[#allocation8 + $0x10c] ss:$16 sps:$4 sm:$0xff]   ;;  %v8996_v55 = vld [vmem:[#allocation8 + $0x108] ss:$16 sps:$4 sm:$0xff]   ;;  %v9007_v6 = vld [vmem:[#allocation10 + $0xc4] ss:$16 sps:$4 sm:$0xff]  }
 0x9a1   :  { %v9001_v36 = vld [vmem:[#allocation8 + $0x30c] ss:$16 sps:$4 sm:$0xff]   ;;  %v8999_v19 = vld [vmem:[#allocation8 + $0x308] ss:$16 sps:$4 sm:$0xff]  }
 0x9a2   :  { %4231 = vmatpush1.bf16.msra.mxu0 %v8918_v31  ;;  %4274 = vmatpush1.bf16.msra.mxu1 %v8921_v63  ;;  %v9005_v31 = vld [vmem:[#allocation10 + $0xc0] ss:$16 sps:$4 sm:$0xff]   ;;  %v9010_v63 = vld [vmem:[#allocation10 + $0xa4] ss:$16 sps:$4 sm:$0xff]  }
 0x9a3   :  { %4232 = vmatprep.subr.bf16.mxu0 %v8926_v10  ;;  %4275 = vmatprep.subr.bf16.mxu1 %v8929_v9  ;;  %v9008_v10 = vld [vmem:[#allocation10 + $0xa0] ss:$16 sps:$4 sm:$0xff]   ;;  %v9013_v9 = vld [vmem:[#allocation10 + $0x84] ss:$16 sps:$4 sm:$0xff]  }
 0x9a6   :  { %4233 = vmatpush1.bf16.msra.mxu0 %v8924_v18  ;;  %4276 = vmatpush1.bf16.msra.mxu1 %v8927_v39  ;;  %v9011_v18 = vld [vmem:[#allocation10 + $0x80] ss:$16 sps:$4 sm:$0xff]   ;;  %v9016_v39 = vld [vmem:[#allocation10 + $0x64] ss:$16 sps:$4 sm:$0xff]  }
 0x9a7   :  { %4234 = vmatprep.subr.bf16.mxu0 %v8932_v43  ;;  %4277 = vmatprep.subr.bf16.mxu1 %v8935_v49  ;;  %v9050_v43 = vld [vmem:[#allocation10 + $0x2e0] ss:$16 sps:$4 sm:$0xff]   ;;  %v9052_v49 = vld [vmem:[#allocation10 + $0x2e4] ss:$16 sps:$4 sm:$0xff]  }
 0x9aa   :  { %4235 = vmatpush1.bf16.msra.mxu0 %v8930_v29  ;;  %4278 = vmatpush1.bf16.msra.mxu1 %v8933_v56  ;;  %v9014_v29 = vld [vmem:[#allocation10 + $0x60] ss:$16 sps:$4 sm:$0xff]  }
 0x9ab   :  { %4236 = vmatprep.subr.bf16.mxu0 %v8938_v28  ;;  %4279 = vmatprep.subr.bf16.mxu1 %v8941_v45  ;;  %v9056_v56 = vld [vmem:[#allocation10 + $0x2c0] ss:$16 sps:$4 sm:$0xff]   ;;  %v9058_v28 = vld [vmem:[#allocation10 + $0x2c4] ss:$16 sps:$4 sm:$0xff]  }
 0x9ac   :  { %v9022_v45 = vld [vmem:[#allocation10 + $0x24] ss:$16 sps:$4 sm:$0xff]  }
 0x9ae   :  { %4237 = vmatpush1.bf16.msra.mxu0 %v8936_v38  ;;  %4280 = vmatpush1.bf16.msra.mxu1 %v8939_v0  ;;  %v9020_v38 = vld [vmem:[#allocation10 + $0x20] ss:$16 sps:$4 sm:$0xff]  }
 0x9af   :  { %4238 = vmatprep.subr.bf16.mxu0 %v8944_v34  ;;  %4281 = vmatprep.subr.bf16.mxu1 %v8947_v47  ;;  %v9062_v0 = vld [vmem:[#allocation10 + $0x2a0] ss:$16 sps:$4 sm:$0xff]   ;;  %v9064_v34 = vld [vmem:[#allocation10 + $0x2a4] ss:$16 sps:$4 sm:$0xff]  }
 0x9b0   :  { %v9025_v47 = vld [vmem:[#allocation10 + $0x4] ss:$16 sps:$4 sm:$0xff]  }
 0x9b2   :  { %4239 = vmatpush1.bf16.msra.mxu0 %v8942_v25  ;;  %4282 = vmatpush1.bf16.msra.mxu1 %v8945_v20  ;;  %v9023_v25 = vld [vmem:[#allocation10] ss:$16 sps:$4 sm:$0xff]  }
 0x9b3   :  { %4240 = vmatprep.subr.bf16.mxu0 %v8950_v53  ;;  %4283 = vmatprep.subr.bf16.mxu1 %v8953_v61  ;;  %v9068_v20 = vld [vmem:[#allocation10 + $0x280] ss:$16 sps:$4 sm:$0xff]   ;;  %v9070_v53 = vld [vmem:[#allocation10 + $0x284] ss:$16 sps:$4 sm:$0xff]  }
 0x9b4   :  { %v9028_v61 = vld [vmem:[#allocation10 + $0x1e4] ss:$16 sps:$4 sm:$0xff]  }
 0x9b6   :  { %4241 = vmatpush1.bf16.msra.mxu0 %v8948_v42  ;;  %4284 = vmatpush1.bf16.msra.mxu1 %v8951_v40  ;;  %v9026_v42 = vld [vmem:[#allocation10 + $0x1e0] ss:$16 sps:$4 sm:$0xff]  }
 0x9b7   :  { %4242 = vmatprep.subr.bf16.mxu0 %v8956_v48  ;;  %4285 = vmatprep.subr.bf16.mxu1 %v8959_v16  ;;  %v9074_v40 = vld [vmem:[#allocation10 + $0x260] ss:$16 sps:$4 sm:$0xff]   ;;  %v9076_v48 = vld [vmem:[#allocation10 + $0x264] ss:$16 sps:$4 sm:$0xff]  }
 0x9b8   :  { %v9031_v16 = vld [vmem:[#allocation10 + $0x1c4] ss:$16 sps:$4 sm:$0xff]  }
 0x9ba   :  { %4243 = vmatpush2.bf16.msra.mxu0 %v8954_v21  ;;  %4286 = vmatpush2.bf16.msra.mxu1 %v8957_v33  ;;  %v9029_v21 = vld [vmem:[#allocation10 + $0x1c0] ss:$16 sps:$4 sm:$0xff]  }
 0x9bb   :  { %4244 = vmatprep.subr.bf16.mxu0 %v8962_v8  ;;  %4287 = vmatprep.subr.bf16.mxu1 %v8965_v51  ;;  %v9080_v33 = vld [vmem:[#allocation10 + $0x240] ss:$16 sps:$4 sm:$0xff]   ;;  %v9082_v8 = vld [vmem:[#allocation10 + $0x244] ss:$16 sps:$4 sm:$0xff]  }
 0x9bc   :  { %v9034_v51 = vld [vmem:[#allocation10 + $0x1a4] ss:$16 sps:$4 sm:$0xff]  }
 0x9be   :  { %4245 = vmatpush2.bf16.msra.mxu0 %v8960_v5  ;;  %4288 = vmatpush2.bf16.msra.mxu1 %v8963_v13  ;;  %v9032_v5 = vld [vmem:[#allocation10 + $0x1a0] ss:$16 sps:$4 sm:$0xff]  }
 0x9bf   :  { %4246 = vmatprep.subr.bf16.mxu0 %v8968_v24  ;;  %4289 = vmatprep.subr.bf16.mxu1 %v8971_v62  ;;  %v9086_v13 = vld [vmem:[#allocation10 + $0x220] ss:$16 sps:$4 sm:$0xff]   ;;  %v9088_v24 = vld [vmem:[#allocation10 + $0x224] ss:$16 sps:$4 sm:$0xff]  }
 0x9c0   :  { %v9037_v62 = vld [vmem:[#allocation10 + $0x184] ss:$16 sps:$4 sm:$0xff]  }
 0x9c2   :  { %4247 = vmatpush2.bf16.msra.mxu0 %v8966_v1  ;;  %4290 = vmatpush2.bf16.msra.mxu1 %v8969_v41  ;;  %v9035_v1 = vld [vmem:[#allocation10 + $0x180] ss:$16 sps:$4 sm:$0xff]  }
 0x9c3   :  { %4248 = vmatprep.subr.bf16.mxu0 %v8974_v26  ;;  %4291 = vmatprep.subr.bf16.mxu1 %v8977_v7  ;;  %v9092_v41 = vld [vmem:[#allocation10 + $0x200] ss:$16 sps:$4 sm:$0xff]   ;;  %v9094_v26 = vld [vmem:[#allocation10 + $0x204] ss:$16 sps:$4 sm:$0xff]  }
 0x9c4   :  { %v9040_v7 = vld [vmem:[#allocation10 + $0x164] ss:$16 sps:$4 sm:$0xff]  }
 0x9c6   :  { %4249 = vmatpush2.bf16.msra.mxu0 %v8972_v11  ;;  %4292 = vmatpush2.bf16.msra.mxu1 %v8975_v30  ;;  %v9038_v11 = vld [vmem:[#allocation10 + $0x160] ss:$16 sps:$4 sm:$0xff]  }
 0x9c7   :  { %4250 = vmatprep.subr.bf16.mxu0 %v8980_v37  ;;  %4293 = vmatprep.subr.bf16.mxu1 %v8983_v14  ;;  %v9098_v30 = vld [vmem:[#allocation10 + $0x3e0] ss:$16 sps:$4 sm:$0xff]   ;;  %v9100_v37 = vld [vmem:[#allocation10 + $0x3e4] ss:$16 sps:$4 sm:$0xff]  }
 0x9c8   :  { %v9043_v14 = vld [vmem:[#allocation10 + $0x144] ss:$16 sps:$4 sm:$0xff]  }
 0x9ca   :  { %4251 = vmatpush2.bf16.msra.mxu0 %v8978_v57  ;;  %4294 = vmatpush2.bf16.msra.mxu1 %v8981_v54  ;;  %v9041_v57 = vld [vmem:[#allocation10 + $0x140] ss:$16 sps:$4 sm:$0xff]  }
 0x9cb   :  { %4252 = vmatprep.subr.bf16.mxu0 %v8986_v60  ;;  %4295 = vmatprep.subr.bf16.mxu1 %v8989_v3  ;;  %v9104_v54 = vld [vmem:[#allocation10 + $0x3c0] ss:$16 sps:$4 sm:$0xff]   ;;  %v9106_v60 = vld [vmem:[#allocation10 + $0x3c4] ss:$16 sps:$4 sm:$0xff]  }
 0x9cc   :  { %v9046_v3 = vld [vmem:[#allocation10 + $0x124] ss:$16 sps:$4 sm:$0xff]  }
 0x9ce   :  { %4253 = vmatpush2.bf16.msra.mxu0 %v8984_v17  ;;  %4296 = vmatpush2.bf16.msra.mxu1 %v8987_v58  ;;  %v9044_v17 = vld [vmem:[#allocation10 + $0x120] ss:$16 sps:$4 sm:$0xff]  }
 0x9cf   :  { %4254 = vmatprep.subr.bf16.mxu0 %v8992_v50  ;;  %4297 = vmatprep.subr.bf16.mxu1 %v8995_v27  ;;  %v9110_v58 = vld [vmem:[#allocation10 + $0x3a0] ss:$16 sps:$4 sm:$0xff]   ;;  %v9112_v50 = vld [vmem:[#allocation10 + $0x3a4] ss:$16 sps:$4 sm:$0xff]  }
 0x9d0   :  { %v9049_v27 = vld [vmem:[#allocation10 + $0x104] ss:$16 sps:$4 sm:$0xff]  }
 0x9d2   :  { %4255 = vmatpush2.bf16.msra.mxu0 %v8990_v44  ;;  %4298 = vmatpush2.bf16.msra.mxu1 %v8993_v22  ;;  %v9047_v44 = vld [vmem:[#allocation10 + $0x100] ss:$16 sps:$4 sm:$0xff]  }
 0x9d3   :  { %4256 = vmatprep.subr.bf16.mxu0 %v8998_v15  ;;  %4299 = vmatprep.subr.bf16.mxu1 %v9001_v36  ;;  %v9116_v22 = vld [vmem:[#allocation10 + $0x380] ss:$16 sps:$4 sm:$0xff]   ;;  %v9118_v15 = vld [vmem:[#allocation10 + $0x384] ss:$16 sps:$4 sm:$0xff]   ;;  %v9055_v36 = vld [vmem:[#allocation10 + $0xec] ss:$16 sps:$4 sm:$0xff]  }
 0x9d6   :  { %4257 = vmatpush2.bf16.msra.mxu0 %v8996_v55  ;;  %4300 = vmatpush2.bf16.msra.mxu1 %v8999_v19  ;;  %v9122_v55 = vld [vmem:[#allocation10 + $0x360] ss:$16 sps:$4 sm:$0xff]   ;;  %v9124_v19 = vld [vmem:[#allocation10 + $0x364] ss:$16 sps:$4 sm:$0xff]  }
 0x9d7   :  { %5110 = vmatprep.subr.bf16.mxu0 %v9004_v59  ;;  %5153 = vmatprep.subr.bf16.mxu1 %v9052_v49  ;;  %v9130_v59 = vld [vmem:[#allocation10 + $0x344] ss:$16 sps:$4 sm:$0xff]  }
 0x9d9   :  { %4259 = vmatmul.mubr.bf16.vlgmr.msra.gmra.mxu0 %v11351_v32  ;;  %4302 = vmatmul.mubr.bf16.vlgmr.msra.gmra.mxu1 %v11354_v23  ;;  %v9019_v32 = vld [vmem:[#allocation10 + $0x44] ss:$16 sps:$4 sm:$0xff]   ;;  %v9017_v23 = vld [vmem:[#allocation10 + $0x40] ss:$16 sps:$4 sm:$0xff]  }
 0x9da   :  { %5111 = vmatpush1.bf16.msra.mxu0 %v9002_v2  ;;  %5154 = vmatpush1.bf16.msra.mxu1 %v9050_v43  ;;  %v9128_v2 = vld [vmem:[#allocation10 + $0x340] ss:$16 sps:$4 sm:$0xff]  }
 0x9db   :  { %5112 = vmatprep.subr.bf16.mxu0 %v9007_v6  ;;  %5155 = vmatprep.subr.bf16.mxu1 %v9058_v28  ;;  %v9136_v6 = vld [vmem:[#allocation10 + $0x324] ss:$16 sps:$4 sm:$0xff]  }
 0x9de   :  { %5113 = vmatpush1.bf16.msra.mxu0 %v9005_v31  ;;  %5156 = vmatpush1.bf16.msra.mxu1 %v9056_v56  ;;  %v9134_v31 = vld [vmem:[#allocation10 + $0x320] ss:$16 sps:$4 sm:$0xff]  }
 0x9df   :  { %5114 = vmatprep.subr.bf16.mxu0 %v9010_v63  ;;  %5157 = vmatprep.subr.bf16.mxu1 %v9064_v34  ;;  %v9140_v63 = vld [vmem:[#allocation10 + $0x300] ss:$16 sps:$4 sm:$0xff]  }
 0x9e2   :  { %5115 = vmatpush1.bf16.msra.mxu0 %v9008_v10  ;;  %5158 = vmatpush1.bf16.msra.mxu1 %v9062_v0  ;;  %v9142_v10 = vld [vmem:[#allocation10 + $0x304] ss:$16 sps:$4 sm:$0xff]  }
 0x9e3   :  { %5116 = vmatprep.subr.bf16.mxu0 %v9013_v9  ;;  %5159 = vmatprep.subr.bf16.mxu1 %v9070_v53  ;;  %v9148_v9 = vld [vmem:[#allocation10 + $0x2ec] ss:$16 sps:$4 sm:$0xff]  }
 0x9e6   :  { %5117 = vmatpush1.bf16.msra.mxu0 %v9011_v18  ;;  %5160 = vmatpush1.bf16.msra.mxu1 %v9068_v20  ;;  %v11363_v18 = vld [vmem:[%s11464_s9] sm:$0xf] }
 0x9e7   :  { %5118 = vmatprep.subr.bf16.mxu0 %v9016_v39  ;;  %5161 = vmatprep.subr.bf16.mxu1 %v9076_v48  ;;  %v3483_v39 = vrot.slane %v11363_v18, %v11579_v4 }
 0x9ea   :  { %5119 = vmatpush1.bf16.msra.mxu0 %v9014_v29  ;;  %5162 = vmatpush1.bf16.msra.mxu1 %v9074_v40  ;;  %v3487_v29 = vrot.slane %v11363_v18, %v11581_v46 }
 0x9eb   :  { %5120 = vmatprep.subr.bf16.mxu0 %v9019_v32  ;;  %5163 = vmatprep.subr.bf16.mxu1 %v9082_v8  ;;  %v9061_v8 = vld [vmem:[#allocation10 + $0xcc] ss:$16 sps:$4 sm:$0xff]  }
 0x9ee   :  { %5121 = vmatpush1.bf16.msra.mxu0 %v9017_v23  ;;  %5164 = vmatpush1.bf16.msra.mxu1 %v9080_v33 }
 0x9ef   :  { %5122 = vmatprep.subr.bf16.mxu0 %v9022_v45  ;;  %5165 = vmatprep.subr.bf16.mxu1 %v9088_v24  ;;  %v9073_v24 = vld [vmem:[#allocation10 + $0x8c] ss:$16 sps:$4 sm:$0xff]  }
 0x9f2   :  { %5123 = vmatpush1.bf16.msra.mxu0 %v9020_v38  ;;  %5166 = vmatpush1.bf16.msra.mxu1 %v9086_v13  ;;  %v9065_v13 = vld [vmem:[#allocation10 + $0xa8] ss:$16 sps:$4 sm:$0xff]  }
 0x9f3   :  { %5124 = vmatprep.subr.bf16.mxu0 %v9025_v47  ;;  %5167 = vmatprep.subr.bf16.mxu1 %v9094_v26  ;;  %v9085_v26 = vld [vmem:[#allocation10 + $0x4c] ss:$16 sps:$4 sm:$0xff]  }
 0x9f6   :  { %5125 = vmatpush1.bf16.msra.mxu0 %v9023_v25  ;;  %5168 = vmatpush1.bf16.msra.mxu1 %v9092_v41  ;;  %v9077_v41 = vld [vmem:[#allocation10 + $0x68] ss:$16 sps:$4 sm:$0xff]  }
 0x9f7   :  { %5126 = vmatprep.subr.bf16.mxu0 %v9028_v61  ;;  %5169 = vmatprep.subr.bf16.mxu1 %v9100_v37  ;;  %v9097_v37 = vld [vmem:[#allocation10 + $0xc] ss:$16 sps:$4 sm:$0xff]  }
 0x9fa   :  { %5127 = vmatpush2.bf16.msra.mxu0 %v9026_v42  ;;  %5170 = vmatpush2.bf16.msra.mxu1 %v9098_v30  ;;  %v9089_v30 = vld [vmem:[#allocation10 + $0x28] ss:$16 sps:$4 sm:$0xff]  }
 0x9fb   :  { %5128 = vmatprep.subr.bf16.mxu0 %v9031_v16  ;;  %5171 = vmatprep.subr.bf16.mxu1 %v9106_v60  ;;  %v9109_v60 = vld [vmem:[#allocation10 + $0x1cc] ss:$16 sps:$4 sm:$0xff]  }
 0x9fe   :  { %5129 = vmatpush2.bf16.msra.mxu0 %v9029_v21  ;;  %5172 = vmatpush2.bf16.msra.mxu1 %v9104_v54  ;;  %v9053_v21 = vld [vmem:[#allocation10 + $0xe8] ss:$16 sps:$4 sm:$0xff]  }
 0x9ff   :  { %5130 = vmatprep.subr.bf16.mxu0 %v9034_v51  ;;  %5173 = vmatprep.subr.bf16.mxu1 %v9112_v50  ;;  %v9059_v51 = vld [vmem:[#allocation10 + $0xc8] ss:$16 sps:$4 sm:$0xff]   ;;  %v9121_v50 = vld [vmem:[#allocation10 + $0x18c] ss:$16 sps:$4 sm:$0xff]  }
 0xa00   :  { %v9101_v54 = vld [vmem:[#allocation10 + $0x1e8] ss:$16 sps:$4 sm:$0xff]  }
 0xa02   :  { %5131 = vmatpush2.bf16.msra.mxu0 %v9032_v5  ;;  %5174 = vmatpush2.bf16.msra.mxu1 %v9110_v58  ;;  %v9067_v5 = vld [vmem:[#allocation10 + $0xac] ss:$16 sps:$4 sm:$0xff]   ;;  %v9113_v58 = vld [vmem:[#allocation10 + $0x1a8] ss:$16 sps:$4 sm:$0xff]  }
 0xa03   :  { %5132 = vmatprep.subr.bf16.mxu0 %v9037_v62  ;;  %5175 = vmatprep.subr.bf16.mxu1 %v9118_v15  ;;  %v9071_v62 = vld [vmem:[#allocation10 + $0x88] ss:$16 sps:$4 sm:$0xff]   ;;  %v9133_v15 = vld [vmem:[#allocation10 + $0x14c] ss:$16 sps:$4 sm:$0xff]  }
 0xa06   :  { %5133 = vmatpush2.bf16.msra.mxu0 %v9035_v1  ;;  %5176 = vmatpush2.bf16.msra.mxu1 %v9116_v22  ;;  %v9079_v1 = vld [vmem:[#allocation10 + $0x6c] ss:$16 sps:$4 sm:$0xff]   ;;  %v9125_v22 = vld [vmem:[#allocation10 + $0x168] ss:$16 sps:$4 sm:$0xff]  }
 0xa07   :  { %5134 = vmatprep.subr.bf16.mxu0 %v9040_v7  ;;  %5177 = vmatprep.subr.bf16.mxu1 %v9124_v19  ;;  %v9083_v7 = vld [vmem:[#allocation10 + $0x48] ss:$16 sps:$4 sm:$0xff]  }
 0xa0a   :  { %5135 = vmatpush2.bf16.msra.mxu0 %v9038_v11  ;;  %5178 = vmatpush2.bf16.msra.mxu1 %v9122_v55  ;;  %v9091_v11 = vld [vmem:[#allocation10 + $0x2c] ss:$16 sps:$4 sm:$0xff]  }
 0xa0b   :  { %5136 = vmatprep.subr.bf16.mxu0 %v9043_v14  ;;  %5179 = vmatprep.subr.bf16.mxu1 %v9130_v59  ;;  %v9095_v14 = vld [vmem:[#allocation10 + $0x8] ss:$16 sps:$4 sm:$0xff]   ;;  %v3495_v59 = vrot.slane %v11363_v18, %v11582_v52 }
 0xa0e   :  { %5137 = vmatpush2.bf16.msra.mxu0 %v9041_v57  ;;  %5180 = vmatpush2.bf16.msra.mxu1 %v9128_v2  ;;  %v9103_v57 = vld [vmem:[#allocation10 + $0x1ec] ss:$16 sps:$4 sm:$0xff]   ;;  %v9131_v2 = vld [vmem:[#allocation10 + $0x148] ss:$16 sps:$4 sm:$0xff]  }
 0xa0f   :  { %5138 = vmatprep.subr.bf16.mxu0 %v9046_v3  ;;  %5181 = vmatprep.subr.bf16.mxu1 %v9136_v6  ;;  %v9107_v3 = vld [vmem:[#allocation10 + $0x1c8] ss:$16 sps:$4 sm:$0xff]  }
 0xa12   :  { %5139 = vmatpush2.bf16.msra.mxu0 %v9044_v17  ;;  %5182 = vmatpush2.bf16.msra.mxu1 %v9134_v31  ;;  %v9115_v17 = vld [vmem:[#allocation10 + $0x1ac] ss:$16 sps:$4 sm:$0xff]  }
 0xa13   :  { %5140 = vmatprep.subr.bf16.mxu0 %v9049_v27  ;;  %5183 = vmatprep.subr.bf16.mxu1 %v9142_v10  ;;  %v9119_v27 = vld [vmem:[#allocation10 + $0x188] ss:$16 sps:$4 sm:$0xff]  }
 0xa16   :  { %5141 = vmatpush2.bf16.msra.mxu0 %v9047_v44  ;;  %5184 = vmatpush2.bf16.msra.mxu1 %v9140_v63  ;;  %v9127_v44 = vld [vmem:[#allocation10 + $0x16c] ss:$16 sps:$4 sm:$0xff]  }
 0xa17   :  { %5196 = vmatprep.subr.bf16.mxu0 %v9055_v36  ;;  %5239 = vmatprep.subr.bf16.mxu1 %v9148_v9  ;;  %v3491_v36 = vrot.slane %v11363_v18, %v11580_v12  ;;  %v9139_v63 = vld [vmem:[#allocation10 + $0x12c] ss:$16 sps:$4 sm:$0xff]  }
 0xa59   :  { %v4174_v43 = vpop.f32.mrf.mxu0  ;;  %v4217_v49 = vpop.f32.mrf.mxu1 }
 0xa5a   :  { %v4175_v56 = vadd.f32 %v4174_v43, %v3483_v39 }
 0xa5b   :  { %v4176_v32 = vpop.f32.mrf.mxu0  ;;  %v4219_v23 = vpop.f32.mrf.mxu1 }
 0xa5c   :  { %v4177_v38 = vadd.f32 %v4176_v32, %v3487_v29  ;;  %v4218_v20 = vadd.f32 %v4217_v49, %v4175_v56 }
 0xa5d   :  { %v4178_v28 = vpop.f32.mrf.mxu0  ;;  %v4221_v45 = vpop.f32.mrf.mxu1 }
 0xa5e   :  { %v4179_v0 = vadd.f32 %v4178_v28, %v3483_v39  ;;  %v4220_v61 = vadd.f32 %v4219_v23, %v4177_v38  ;;  %v9145_v23 = vld [vmem:[#allocation10 + $0x10c] ss:$16 sps:$4 sm:$0xff]  }
 0xa5f   :  { %v4180_v34 = vpop.f32.mrf.mxu0  ;;  %v4223_v53 = vpop.f32.mrf.mxu1 }
 0xa60   :  { %v4222_v47 = vadd.f32 %v4221_v45, %v4179_v0  ;;  %v4181_v25 = vadd.f32 %v4180_v34, %v3487_v29  ;;  %v9137_v29 = vld [vmem:[#allocation10 + $0x128] ss:$16 sps:$4 sm:$0xff]  }
 0xa61   :  { %v9143_v34 = vld [vmem:[#allocation10 + $0x108] ss:$16 sps:$4 sm:$0xff]  }
 0xa62   :  { %v4224_v42 = vadd.f32 %v4223_v53, %v4181_v25  ;;  %v4312_v40 = vpack.c.bf16 %v4222_v47, %v4218_v20  ;;  %v9146_v53 = vld [vmem:[#allocation10 + $0x2e8] ss:$16 sps:$4 sm:$0xff]  }
 0xa64   :  { %v4313_v48 = vpack.c.bf16 %v4224_v42, %v4220_v61  ;;  %v11371_v33 = vmax.bf16 %v11536_v35, %v4312_v40  ;;  %v9151_v42 = vld [vmem:[#allocation10 + $0x2cc] ss:$16 sps:$4 sm:$0xff]   ;;  %v9149_v40 = vld [vmem:[#allocation10 + $0x2c8] ss:$16 sps:$4 sm:$0xff]  }
 0xa66   :  { %v4317_v16 = vmax.bf16 %v11536_v35, %v4313_v48  ;;  %v9154_v48 = vld [vmem:[#allocation10 + $0x2ac] ss:$16 sps:$4 sm:$0xff]  }
 0xa68   :  { %5142 = vmatprep.mubr.bf16.mxu0 %v4317_v16 }
 0xa69   :  { %5143 = vmatmul.mubr.bf16.vlgmr.msra.gmra.mxu0 %v11371_v33 }
 0xa6a   :  { %5197 = vmatpush1.bf16.msra.mxu0 %v9053_v21  ;;  %5228 = vmatprep.mubr.bf16.mxu0 %v4317_v16  ;;  %v9152_v16 = vld [vmem:[#allocation10 + $0x2a8] ss:$16 sps:$4 sm:$0xff]   ;;  %v9157_v21 = vld [vmem:[#allocation10 + $0x28c] ss:$16 sps:$4 sm:$0xff]  }
 0xa6b   :  { %5198 = vmatprep.subr.bf16.mxu0 %v9061_v8  ;;  %v9194_v8 = vld [vmem:[#allocation11 + $0xe0] ss:$16 sps:$4 sm:$0xff]  }
 0xa6e   :  { %5199 = vmatpush1.bf16.msra.mxu0 %v9059_v51  ;;  %v9196_v51 = vld [vmem:[#allocation11 + $0xe4] ss:$16 sps:$4 sm:$0xff]  }
 0xa6f   :  { %5200 = vmatprep.subr.bf16.mxu0 %v9067_v5  ;;  %v9199_v5 = vld [vmem:[#allocation11 + $0xc4] ss:$16 sps:$4 sm:$0xff]  }
 0xa72   :  { %5201 = vmatpush1.bf16.msra.mxu0 %v9065_v13  ;;  %v9155_v13 = vld [vmem:[#allocation10 + $0x288] ss:$16 sps:$4 sm:$0xff]  }
 0xa73   :  { %5202 = vmatprep.subr.bf16.mxu0 %v9073_v24  ;;  %v9160_v24 = vld [vmem:[#allocation10 + $0x26c] ss:$16 sps:$4 sm:$0xff]  }
 0xa76   :  { %5203 = vmatpush1.bf16.msra.mxu0 %v9071_v62  ;;  %v9197_v62 = vld [vmem:[#allocation11 + $0xc0] ss:$16 sps:$4 sm:$0xff]  }
 0xa77   :  { %5204 = vmatprep.subr.bf16.mxu0 %v9079_v1  ;;  %v9158_v1 = vld [vmem:[#allocation10 + $0x268] ss:$16 sps:$4 sm:$0xff]  }
 0xa7a   :  { %5205 = vmatpush1.bf16.msra.mxu0 %v9077_v41  ;;  %v9163_v41 = vld [vmem:[#allocation10 + $0x24c] ss:$16 sps:$4 sm:$0xff]  }
 0xa7b   :  { %5206 = vmatprep.subr.bf16.mxu0 %v9085_v26  ;;  %v9200_v26 = vld [vmem:[#allocation11 + $0xa0] ss:$16 sps:$4 sm:$0xff]  }
 0xa7e   :  { %5207 = vmatpush1.bf16.msra.mxu0 %v9083_v7  ;;  %v9205_v7 = vld [vmem:[#allocation11 + $0x84] ss:$16 sps:$4 sm:$0xff]  }
 0xa7f   :  { %5208 = vmatprep.subr.bf16.mxu0 %v9091_v11  ;;  %v9161_v11 = vld [vmem:[#allocation10 + $0x248] ss:$16 sps:$4 sm:$0xff]  }
 0xa82   :  { %5209 = vmatpush1.bf16.msra.mxu0 %v9089_v30  ;;  %v9166_v30 = vld [vmem:[#allocation10 + $0x22c] ss:$16 sps:$4 sm:$0xff]  }
 0xa83   :  { %5210 = vmatprep.subr.bf16.mxu0 %v9097_v37  ;;  %v9203_v37 = vld [vmem:[#allocation11 + $0x80] ss:$16 sps:$4 sm:$0xff]  }
 0xa86   :  { %5211 = vmatpush1.bf16.msra.mxu0 %v9095_v14  ;;  %v9208_v14 = vld [vmem:[#allocation11 + $0x64] ss:$16 sps:$4 sm:$0xff]  }
 0xa87   :  { %5212 = vmatprep.subr.bf16.mxu0 %v9103_v57  ;;  %v9164_v57 = vld [vmem:[#allocation10 + $0x228] ss:$16 sps:$4 sm:$0xff]  }
 0xa8a   :  { %5213 = vmatpush2.bf16.msra.mxu0 %v9101_v54  ;;  %v9169_v54 = vld [vmem:[#allocation10 + $0x20c] ss:$16 sps:$4 sm:$0xff]  }
 0xa8b   :  { %5214 = vmatprep.subr.bf16.mxu0 %v9109_v60  ;;  %v9206_v60 = vld [vmem:[#allocation11 + $0x60] ss:$16 sps:$4 sm:$0xff]  }
 0xa8e   :  { %5215 = vmatpush2.bf16.msra.mxu0 %v9107_v3  ;;  %v9211_v3 = vld [vmem:[#allocation11 + $0x44] ss:$16 sps:$4 sm:$0xff]  }
 0xa8f   :  { %5216 = vmatprep.subr.bf16.mxu0 %v9115_v17  ;;  %v9167_v17 = vld [vmem:[#allocation10 + $0x208] ss:$16 sps:$4 sm:$0xff]  }
 0xa92   :  { %5217 = vmatpush2.bf16.msra.mxu0 %v9113_v58  ;;  %v9172_v58 = vld [vmem:[#allocation10 + $0x3ec] ss:$16 sps:$4 sm:$0xff]  }
 0xa93   :  { %5218 = vmatprep.subr.bf16.mxu0 %v9121_v50  ;;  %v9209_v50 = vld [vmem:[#allocation11 + $0x40] ss:$16 sps:$4 sm:$0xff]  }
 0xa96   :  { %5219 = vmatpush2.bf16.msra.mxu0 %v9119_v27  ;;  %v9214_v27 = vld [vmem:[#allocation11 + $0x24] ss:$16 sps:$4 sm:$0xff]  }
 0xa97   :  { %5220 = vmatprep.subr.bf16.mxu0 %v9127_v44  ;;  %v9170_v44 = vld [vmem:[#allocation10 + $0x3e8] ss:$16 sps:$4 sm:$0xff]  }
 0xa99   :  { %v4260_v55 = vpop.f32.mrf.mxu0  ;;  %v4303_v19 = vpop.f32.mrf.mxu1 }
 0xa9a   :  { %5221 = vmatpush2.bf16.msra.mxu0 %v9125_v22  ;;  %v4261_v10 = vadd.f32 %v4260_v55, %v3491_v36  ;;  %v9175_v22 = vld [vmem:[#allocation10 + $0x3cc] ss:$16 sps:$4 sm:$0xff]   ;;  %v9173_v55 = vld [vmem:[#allocation10 + $0x3c8] ss:$16 sps:$4 sm:$0xff]  }
 0xa9b   :  { %v4262_v6 = vpop.f32.mrf.mxu0  ;;  %v4305_v31 = vpop.f32.mrf.mxu1  ;;  %5222 = vmatprep.subr.bf16.mxu0 %v9133_v15  ;;  %v9212_v15 = vld [vmem:[#allocation11 + $0x20] ss:$16 sps:$4 sm:$0xff]  }
 0xa9c   :  { %v4263_v43 = vadd.f32 %v4262_v6, %v3495_v59  ;;  %v4304_v45 = vadd.f32 %v4303_v19, %v4261_v10  ;;  %v9178_v19 = vld [vmem:[#allocation10 + $0x3ac] ss:$16 sps:$4 sm:$0xff]   ;;  %v9176_v6 = vld [vmem:[#allocation10 + $0x3a8] ss:$16 sps:$4 sm:$0xff]   ;;  %v9223_v10 = vld [vmem:[#allocation11 + $0x1c4] ss:$16 sps:$4 sm:$0xff]  }
 0xa9d   :  { %v4264_v9 = vpop.f32.mrf.mxu0  ;;  %v4307_v39 = vpop.f32.mrf.mxu1 }
 0xa9e   :  { %v4265_v49 = vadd.f32 %v4264_v9, %v3491_v36  ;;  %5223 = vmatpush2.bf16.msra.mxu0 %v9131_v2  ;;  %v4306_v18 = vadd.f32 %v4305_v31, %v4263_v43  ;;  %v9217_v36 = vld [vmem:[#allocation11 + $0x4] ss:$16 sps:$4 sm:$0xff]   ;;  %v9181_v31 = vld [vmem:[#allocation10 + $0x38c] ss:$16 sps:$4 sm:$0xff]   ;;  %v9179_v9 = vld [vmem:[#allocation10 + $0x388] ss:$16 sps:$4 sm:$0xff]  }
 0xa9f   :  { %v4266_v32 = vpop.f32.mrf.mxu0  ;;  %5224 = vmatprep.subr.bf16.mxu0 %v9139_v63  ;;  %v4309_v38 = vpop.f32.mrf.mxu1  ;;  %v9220_v2 = vld [vmem:[#allocation11 + $0x1e4] ss:$16 sps:$4 sm:$0xff]   ;;  %v9218_v63 = vld [vmem:[#allocation11 + $0x1e0] ss:$16 sps:$4 sm:$0xff]  }
 0xaa0   :  { %v4308_v56 = vadd.f32 %v4307_v39, %v4265_v49  ;;  %v4267_v28 = vadd.f32 %v4266_v32, %v3495_v59  ;;  %v9215_v59 = vld [vmem:[#allocation11] ss:$16 sps:$4 sm:$0xff]   ;;  %v9184_v39 = vld [vmem:[#allocation10 + $0x36c] ss:$16 sps:$4 sm:$0xff]   ;;  %v9226_v49 = vld [vmem:[#allocation11 + $0x1a4] ss:$16 sps:$4 sm:$0xff]  }
 0xaa1   :  { %v9221_v43 = vld [vmem:[#allocation11 + $0x1c0] ss:$16 sps:$4 sm:$0xff]   ;;  %v9187_v32 = vld [vmem:[#allocation10 + $0x34c] ss:$16 sps:$4 sm:$0xff]  }
 0xaa2   :  { %v4310_v0 = vadd.f32 %v4309_v38, %v4267_v28  ;;  %5225 = vmatpush2.bf16.msra.mxu0 %v9137_v29  ;;  %v4314_v47 = vpack.c.bf16 %v4308_v56, %v4304_v45  ;;  %v9182_v29 = vld [vmem:[#allocation10 + $0x368] ss:$16 sps:$4 sm:$0xff]   ;;  %v9229_v56 = vld [vmem:[#allocation11 + $0x184] ss:$16 sps:$4 sm:$0xff]   ;;  %v9190_v45 = vld [vmem:[#allocation10 + $0x32c] ss:$16 sps:$4 sm:$0xff]  }
 0xaa3   :  { %5226 = vmatprep.subr.bf16.mxu0 %v9145_v23  ;;  %v9224_v23 = vld [vmem:[#allocation11 + $0x1a0] ss:$16 sps:$4 sm:$0xff]   ;;  %v9185_v28 = vld [vmem:[#allocation10 + $0x348] ss:$16 sps:$4 sm:$0xff]  }
 0xaa4   :  { %v4315_v25 = vpack.c.bf16 %v4310_v0, %v4306_v18  ;;  %v11380_v61 = vmax.bf16 %v11536_v35, %v4314_v47  ;;  %v9227_v38 = vld [vmem:[#allocation11 + $0x180] ss:$16 sps:$4 sm:$0xff]   ;;  %v9232_v18 = vld [vmem:[#allocation11 + $0x164] ss:$16 sps:$4 sm:$0xff]   ;;  %v9188_v0 = vld [vmem:[#allocation10 + $0x328] ss:$16 sps:$4 sm:$0xff]  }
 0xaa5   :  { %v9230_v47 = vld [vmem:[#allocation11 + $0x160] ss:$16 sps:$4 sm:$0xff]  }
 0xaa6   :  { %5227 = vmatpush2.bf16.msra.mxu0 %v9143_v34  ;;  %v4319_v20 = vmax.bf16 %v11536_v35, %v4315_v25  ;;  %v9193_v34 = vld [vmem:[#allocation10 + $0x30c] ss:$16 sps:$4 sm:$0xff]   ;;  %v9191_v25 = vld [vmem:[#allocation10 + $0x308] ss:$16 sps:$4 sm:$0xff]  }
 0xaa7   :  { %6080 = vmatprep.subr.bf16.mxu0 %v9196_v51  ;;  %v9247_v51 = vld [vmem:[#allocation11 + $0xec] ss:$16 sps:$4 sm:$0xff]  }
 0xaa8   :  { %5185 = vmatprep.mubr.bf16.mxu1 %v4319_v20 }
 0xaa9   :  { %5186 = vmatmul.mubr.bf16.vlgmr.msra.gmra.mxu1 %v11380_v61  ;;  %5229 = vmatmul.mubr.bf16.vlgmr.msra.gmra.mxu0 %v11371_v33  ;;  %v9202_v33 = vld [vmem:[#allocation11 + $0xa4] ss:$16 sps:$4 sm:$0xff]  }
 0xaaa   :  { %5240 = vmatpush1.bf16.msra.mxu1 %v9146_v53  ;;  %5271 = vmatprep.mubr.bf16.mxu1 %v4319_v20  ;;  %v9233_v20 = vld [vmem:[#allocation11 + $0x140] ss:$16 sps:$4 sm:$0xff]   ;;  %v9235_v53 = vld [vmem:[#allocation11 + $0x144] ss:$16 sps:$4 sm:$0xff]  }
 0xaab   :  { %5241 = vmatprep.subr.bf16.mxu1 %v9151_v42  ;;  %6081 = vmatpush1.bf16.msra.mxu0 %v9194_v8  ;;  %v9238_v42 = vld [vmem:[#allocation11 + $0x124] ss:$16 sps:$4 sm:$0xff]  }
 0xaac   :  { %6082 = vmatprep.subr.bf16.mxu0 %v9199_v5  ;;  %v9244_v8 = vld [vmem:[#allocation11 + $0x2e4] ss:$16 sps:$4 sm:$0xff]   ;;  %v9248_v5 = vld [vmem:[#allocation11 + $0x2c0] ss:$16 sps:$4 sm:$0xff]  }
 0xaae   :  { %5242 = vmatpush1.bf16.msra.mxu1 %v9149_v40  ;;  %v9236_v40 = vld [vmem:[#allocation11 + $0x120] ss:$16 sps:$4 sm:$0xff]  }
 0xaaf   :  { %5243 = vmatprep.subr.bf16.mxu1 %v9154_v48  ;;  %6083 = vmatpush1.bf16.msra.mxu0 %v9197_v62  ;;  %v9239_v48 = vld [vmem:[#allocation11 + $0x100] ss:$16 sps:$4 sm:$0xff]  }
 0xab0   :  { %6084 = vmatprep.subr.bf16.mxu0 %v9202_v33  ;;  %v9260_v62 = vld [vmem:[#allocation11 + $0x280] ss:$16 sps:$4 sm:$0xff]   ;;  %v9262_v33 = vld [vmem:[#allocation11 + $0x284] ss:$16 sps:$4 sm:$0xff]  }
 0xab2   :  { %5244 = vmatpush1.bf16.msra.mxu1 %v9152_v16  ;;  %v9241_v16 = vld [vmem:[#allocation11 + $0x104] ss:$16 sps:$4 sm:$0xff]  }
 0xab3   :  { %5245 = vmatprep.subr.bf16.mxu1 %v9157_v21  ;;  %6085 = vmatpush1.bf16.msra.mxu0 %v9200_v26  ;;  %v9242_v21 = vld [vmem:[#allocation11 + $0x2e0] ss:$16 sps:$4 sm:$0xff]  }
 0xab4   :  { %6086 = vmatprep.subr.bf16.mxu0 %v9205_v7  ;;  %v9272_v26 = vld [vmem:[#allocation11 + $0x240] ss:$16 sps:$4 sm:$0xff]   ;;  %v9274_v7 = vld [vmem:[#allocation11 + $0x244] ss:$16 sps:$4 sm:$0xff]  }
 0xab6   :  { %5246 = vmatpush1.bf16.msra.mxu1 %v9155_v13  ;;  %v9254_v13 = vld [vmem:[#allocation11 + $0x2a0] ss:$16 sps:$4 sm:$0xff]  }
 0xab7   :  { %5247 = vmatprep.subr.bf16.mxu1 %v9160_v24  ;;  %6087 = vmatpush1.bf16.msra.mxu0 %v9203_v37  ;;  %v9256_v24 = vld [vmem:[#allocation11 + $0x2a4] ss:$16 sps:$4 sm:$0xff]   ;;  %v9284_v37 = vld [vmem:[#allocation11 + $0x200] ss:$16 sps:$4 sm:$0xff]  }
 0xab8   :  { %6088 = vmatprep.subr.bf16.mxu0 %v9208_v14  ;;  %v9286_v14 = vld [vmem:[#allocation11 + $0x204] ss:$16 sps:$4 sm:$0xff]  }
 0xaba   :  { %5248 = vmatpush1.bf16.msra.mxu1 %v9158_v1  ;;  %v9266_v1 = vld [vmem:[#allocation11 + $0x260] ss:$16 sps:$4 sm:$0xff]  }
 0xabb   :  { %5249 = vmatprep.subr.bf16.mxu1 %v9163_v41  ;;  %6089 = vmatpush1.bf16.msra.mxu0 %v9206_v60  ;;  %v9268_v41 = vld [vmem:[#allocation11 + $0x264] ss:$16 sps:$4 sm:$0xff]   ;;  %v9296_v60 = vld [vmem:[#allocation11 + $0x3c0] ss:$16 sps:$4 sm:$0xff]  }
 0xabc   :  { %6090 = vmatprep.subr.bf16.mxu0 %v9211_v3  ;;  %v9298_v3 = vld [vmem:[#allocation11 + $0x3c4] ss:$16 sps:$4 sm:$0xff]  }
 0xabe   :  { %5250 = vmatpush1.bf16.msra.mxu1 %v9161_v11  ;;  %v9278_v11 = vld [vmem:[#allocation11 + $0x220] ss:$16 sps:$4 sm:$0xff]  }
 0xabf   :  { %5251 = vmatprep.subr.bf16.mxu1 %v9166_v30  ;;  %6091 = vmatpush1.bf16.msra.mxu0 %v9209_v50  ;;  %v9280_v30 = vld [vmem:[#allocation11 + $0x224] ss:$16 sps:$4 sm:$0xff]   ;;  %v9308_v50 = vld [vmem:[#allocation11 + $0x380] ss:$16 sps:$4 sm:$0xff]  }
 0xac0   :  { %6092 = vmatprep.subr.bf16.mxu0 %v9214_v27  ;;  %v9310_v27 = vld [vmem:[#allocation11 + $0x384] ss:$16 sps:$4 sm:$0xff]  }
 0xac2   :  { %5252 = vmatpush1.bf16.msra.mxu1 %v9164_v57  ;;  %v9290_v57 = vld [vmem:[#allocation11 + $0x3e0] ss:$16 sps:$4 sm:$0xff]  }
 0xac3   :  { %5253 = vmatprep.subr.bf16.mxu1 %v9169_v54  ;;  %6093 = vmatpush1.bf16.msra.mxu0 %v9212_v15  ;;  %v9292_v54 = vld [vmem:[#allocation11 + $0x3e4] ss:$16 sps:$4 sm:$0xff]  }
 0xac4   :  { %6094 = vmatprep.subr.bf16.mxu0 %v9217_v36  ;;  %v9322_v15 = vld [vmem:[#allocation11 + $0x344] ss:$16 sps:$4 sm:$0xff]   ;;  %v9320_v36 = vld [vmem:[#allocation11 + $0x340] ss:$16 sps:$4 sm:$0xff]  }
 0xac6   :  { %5254 = vmatpush1.bf16.msra.mxu1 %v9167_v17  ;;  %v9302_v17 = vld [vmem:[#allocation11 + $0x3a0] ss:$16 sps:$4 sm:$0xff]  }
 0xac7   :  { %5255 = vmatprep.subr.bf16.mxu1 %v9172_v58  ;;  %6095 = vmatpush1.bf16.msra.mxu0 %v9215_v59  ;;  %v9304_v58 = vld [vmem:[#allocation11 + $0x3a4] ss:$16 sps:$4 sm:$0xff]  }
 0xac8   :  { %6096 = vmatprep.subr.bf16.mxu0 %v9220_v2  ;;  %v9334_v59 = vld [vmem:[#allocation11 + $0x304] ss:$16 sps:$4 sm:$0xff]   ;;  %v9332_v2 = vld [vmem:[#allocation11 + $0x300] ss:$16 sps:$4 sm:$0xff]  }
 0xaca   :  { %5256 = vmatpush2.bf16.msra.mxu1 %v9170_v44  ;;  %v9314_v44 = vld [vmem:[#allocation11 + $0x360] ss:$16 sps:$4 sm:$0xff]  }
 0xacb   :  { %5257 = vmatprep.subr.bf16.mxu1 %v9175_v22  ;;  %6097 = vmatpush2.bf16.msra.mxu0 %v9218_v63  ;;  %v9316_v22 = vld [vmem:[#allocation11 + $0x364] ss:$16 sps:$4 sm:$0xff]  }
 0xacc   :  { %6098 = vmatprep.subr.bf16.mxu0 %v9223_v10  ;;  %v11388_v10 = vld [vmem:[%s11466_s11] sm:$0xf] }
 0xace   :  { %5258 = vmatpush2.bf16.msra.mxu1 %v9173_v55  ;;  %v9328_v55 = vld [vmem:[#allocation11 + $0x324] ss:$16 sps:$4 sm:$0xff]  }
 0xacf   :  { %5259 = vmatprep.subr.bf16.mxu1 %v9178_v19  ;;  %6099 = vmatpush2.bf16.msra.mxu0 %v9221_v43  ;;  %v9326_v19 = vld [vmem:[#allocation11 + $0x320] ss:$16 sps:$4 sm:$0xff]  }
 0xad0   :  { %6100 = vmatprep.subr.bf16.mxu0 %v9226_v49  ;;  %v4457_v49 = vrot.slane %v11388_v10, %v11581_v46 }
 0xad2   :  { %5260 = vmatpush2.bf16.msra.mxu1 %v9176_v6  ;;  %v9340_v6 = vld [vmem:[#allocation11 + $0x2ec] ss:$16 sps:$4 sm:$0xff]  }
 0xad3   :  { %5261 = vmatprep.subr.bf16.mxu1 %v9181_v31  ;;  %6101 = vmatpush2.bf16.msra.mxu0 %v9224_v23 }
 0xad4   :  { %6102 = vmatprep.subr.bf16.mxu0 %v9229_v56 }
 0xad6   :  { %5262 = vmatpush2.bf16.msra.mxu1 %v9179_v9 }
 0xad7   :  { %5263 = vmatprep.subr.bf16.mxu1 %v9184_v39  ;;  %6103 = vmatpush2.bf16.msra.mxu0 %v9227_v38  ;;  %v4453_v39 = vrot.slane %v11388_v10, %v11579_v4 }
 0xad8   :  { %6104 = vmatprep.subr.bf16.mxu0 %v9232_v18 }
 0xada   :  { %5264 = vmatpush2.bf16.msra.mxu1 %v9182_v29 }
 0xadb   :  { %5265 = vmatprep.subr.bf16.mxu1 %v9187_v32  ;;  %6105 = vmatpush2.bf16.msra.mxu0 %v9230_v47 }
 0xadc   :  { %6106 = vmatprep.subr.bf16.mxu0 %v9235_v53 }
 0xade   :  { %5266 = vmatpush2.bf16.msra.mxu1 %v9185_v28 }
 0xadf   :  { %5267 = vmatprep.subr.bf16.mxu1 %v9190_v45  ;;  %6107 = vmatpush2.bf16.msra.mxu0 %v9233_v20 }
 0xae0   :  { %6108 = vmatprep.subr.bf16.mxu0 %v9238_v42 }
 0xae2   :  { %5268 = vmatpush2.bf16.msra.mxu1 %v9188_v0 }
 0xae3   :  { %5269 = vmatprep.subr.bf16.mxu1 %v9193_v34  ;;  %6109 = vmatpush2.bf16.msra.mxu0 %v9236_v40  ;;  %v9245_v40 = vld [vmem:[#allocation11 + $0xe8] ss:$16 sps:$4 sm:$0xff]  }
 0xae4   :  { %6110 = vmatprep.subr.bf16.mxu0 %v9241_v16  ;;  %v9253_v16 = vld [vmem:[#allocation11 + $0xcc] ss:$16 sps:$4 sm:$0xff]  }
 0xae6   :  { %5270 = vmatpush2.bf16.msra.mxu1 %v9191_v25 }
 0xae7   :  { %6111 = vmatpush2.bf16.msra.mxu0 %v9239_v48  ;;  %6123 = vmatprep.subr.bf16.mxu1 %v9244_v8  ;;  %v9259_v8 = vld [vmem:[#allocation11 + $0xac] ss:$16 sps:$4 sm:$0xff]  }
 0xae8   :  { %6166 = vmatprep.subr.bf16.mxu0 %v9247_v51  ;;  %v9257_v51 = vld [vmem:[#allocation11 + $0xa8] ss:$16 sps:$4 sm:$0xff]  }
 0xae9   :  { %5272 = vmatmul.mubr.bf16.vlgmr.msra.gmra.mxu1 %v11380_v61  ;;  %v9250_v61 = vld [vmem:[#allocation11 + $0x2c4] ss:$16 sps:$4 sm:$0xff]  }
 0xaea   :  { %6124 = vmatpush1.bf16.msra.mxu1 %v9242_v21  ;;  %v9251_v21 = vld [vmem:[#allocation11 + $0xc8] ss:$16 sps:$4 sm:$0xff]  }
 0xaeb   :  { %6125 = vmatprep.subr.bf16.mxu1 %v9250_v61  ;;  %v9263_v61 = vld [vmem:[#allocation11 + $0x88] ss:$16 sps:$4 sm:$0xff]  }
 0xaee   :  { %6126 = vmatpush1.bf16.msra.mxu1 %v9248_v5  ;;  %v9265_v5 = vld [vmem:[#allocation11 + $0x8c] ss:$16 sps:$4 sm:$0xff]  }
 0xaef   :  { %6127 = vmatprep.subr.bf16.mxu1 %v9256_v24  ;;  %v9269_v24 = vld [vmem:[#allocation11 + $0x68] ss:$16 sps:$4 sm:$0xff]  }
 0xaf2   :  { %6128 = vmatpush1.bf16.msra.mxu1 %v9254_v13  ;;  %v9271_v13 = vld [vmem:[#allocation11 + $0x6c] ss:$16 sps:$4 sm:$0xff]  }
 0xaf3   :  { %6129 = vmatprep.subr.bf16.mxu1 %v9262_v33  ;;  %v9275_v33 = vld [vmem:[#allocation11 + $0x48] ss:$16 sps:$4 sm:$0xff]  }
 0xaf6   :  { %6130 = vmatpush1.bf16.msra.mxu1 %v9260_v62  ;;  %v9277_v62 = vld [vmem:[#allocation11 + $0x4c] ss:$16 sps:$4 sm:$0xff]  }
 0xaf7   :  { %6131 = vmatprep.subr.bf16.mxu1 %v9268_v41  ;;  %v9281_v41 = vld [vmem:[#allocation11 + $0x28] ss:$16 sps:$4 sm:$0xff]  }
 0xafa   :  { %6132 = vmatpush1.bf16.msra.mxu1 %v9266_v1  ;;  %v9283_v1 = vld [vmem:[#allocation11 + $0x2c] ss:$16 sps:$4 sm:$0xff]  }
 0xafb   :  { %6133 = vmatprep.subr.bf16.mxu1 %v9274_v7  ;;  %v9287_v7 = vld [vmem:[#allocation11 + $0x8] ss:$16 sps:$4 sm:$0xff]  }
 0xafe   :  { %6134 = vmatpush1.bf16.msra.mxu1 %v9272_v26  ;;  %v9289_v26 = vld [vmem:[#allocation11 + $0xc] ss:$16 sps:$4 sm:$0xff]  }
 0xaff   :  { %6135 = vmatprep.subr.bf16.mxu1 %v9280_v30  ;;  %v9293_v30 = vld [vmem:[#allocation11 + $0x1e8] ss:$16 sps:$4 sm:$0xff]  }
 0xb02   :  { %6136 = vmatpush1.bf16.msra.mxu1 %v9278_v11  ;;  %v9295_v11 = vld [vmem:[#allocation11 + $0x1ec] ss:$16 sps:$4 sm:$0xff]  }
 0xb03   :  { %6137 = vmatprep.subr.bf16.mxu1 %v9286_v14  ;;  %v9299_v14 = vld [vmem:[#allocation11 + $0x1c8] ss:$16 sps:$4 sm:$0xff]  }
 0xb06   :  { %6138 = vmatpush1.bf16.msra.mxu1 %v9284_v37  ;;  %v9301_v37 = vld [vmem:[#allocation11 + $0x1cc] ss:$16 sps:$4 sm:$0xff]  }
 0xb07   :  { %6139 = vmatprep.subr.bf16.mxu1 %v9292_v54  ;;  %v9305_v54 = vld [vmem:[#allocation11 + $0x1a8] ss:$16 sps:$4 sm:$0xff]  }
 0xb0a   :  { %6140 = vmatpush2.bf16.msra.mxu1 %v9290_v57  ;;  %v9307_v57 = vld [vmem:[#allocation11 + $0x1ac] ss:$16 sps:$4 sm:$0xff]  }
 0xb0b   :  { %6141 = vmatprep.subr.bf16.mxu1 %v9298_v3 }
 0xb0e   :  { %6142 = vmatpush2.bf16.msra.mxu1 %v9296_v60  ;;  %v9313_v60 = vld [vmem:[#allocation11 + $0x18c] ss:$16 sps:$4 sm:$0xff]  }
 0xb0f   :  { %6143 = vmatprep.subr.bf16.mxu1 %v9304_v58  ;;  %v9319_v58 = vld [vmem:[#allocation11 + $0x16c] ss:$16 sps:$4 sm:$0xff]  }
 0xb12   :  { %6144 = vmatpush2.bf16.msra.mxu1 %v9302_v17  ;;  %v9311_v17 = vld [vmem:[#allocation11 + $0x188] ss:$16 sps:$4 sm:$0xff]  }
 0xb13   :  { %6145 = vmatprep.subr.bf16.mxu1 %v9310_v27  ;;  %v9317_v27 = vld [vmem:[#allocation11 + $0x168] ss:$16 sps:$4 sm:$0xff]  }
 0xb16   :  { %6146 = vmatpush2.bf16.msra.mxu1 %v9308_v50 }
 0xb17   :  { %6147 = vmatprep.subr.bf16.mxu1 %v9316_v22 }
 0xb1a   :  { %6148 = vmatpush2.bf16.msra.mxu1 %v9314_v44  ;;  %v9325_v44 = vld [vmem:[#allocation11 + $0x14c] ss:$16 sps:$4 sm:$0xff]  }
 0xb1b   :  { %6149 = vmatprep.subr.bf16.mxu1 %v9322_v15  ;;  %v9323_v15 = vld [vmem:[#allocation11 + $0x148] ss:$16 sps:$4 sm:$0xff]  }
 0xb1e   :  { %6150 = vmatpush2.bf16.msra.mxu1 %v9320_v36  ;;  %v4461_v36 = vrot.slane %v11388_v10, %v11580_v12 }
 0xb1f   :  { %6151 = vmatprep.subr.bf16.mxu1 %v9328_v55 }
 0xb22   :  { %6152 = vmatpush2.bf16.msra.mxu1 %v9326_v19  ;;  %v9331_v19 = vld [vmem:[#allocation11 + $0x12c] ss:$16 sps:$4 sm:$0xff]  }
 0xb23   :  { %6153 = vmatprep.subr.bf16.mxu1 %v9334_v59  ;;  %v4465_v59 = vrot.slane %v11388_v10, %v11582_v52 }
 0xb26   :  { %6154 = vmatpush2.bf16.msra.mxu1 %v9332_v2 }
 0xb27   :  { %6209 = vmatprep.subr.bf16.mxu1 %v9340_v6 }
 0xb29   :  { %v5144_v31 = vpop.f32.mrf.mxu0 }
 0xb2a   :  { %v5145_v56 = vadd.f32 %v5144_v31, %v4453_v39 }
 0xb2b   :  { %v5146_v63 = vpop.f32.mrf.mxu0 }
 0xb2c   :  { %v5147_v45 = vadd.f32 %v5146_v63, %v4457_v49  ;;  %v9329_v63 = vld [vmem:[#allocation11 + $0x128] ss:$16 sps:$4 sm:$0xff]  }
 0xb2d   :  { %v5148_v9 = vpop.f32.mrf.mxu0 }
 0xb2e   :  { %v5149_v23 = vadd.f32 %v5148_v9, %v4453_v39 }
 0xb2f   :  { %v5150_v29 = vpop.f32.mrf.mxu0 }
 0xb30   :  { %v5151_v38 = vadd.f32 %v5150_v29, %v4457_v49 }
 0xb69   :  { %v5187_v43 = vpop.f32.mrf.mxu1  ;;  %v5230_v3 = vpop.f32.mrf.mxu0 }
 0xb6a   :  { %v5188_v0 = vadd.f32 %v5187_v43, %v5145_v56  ;;  %v5231_v9 = vadd.f32 %v5230_v3, %v4461_v36  ;;  %v9337_v43 = vld [vmem:[#allocation11 + $0x10c] ss:$16 sps:$4 sm:$0xff]   ;;  %v9406_v3 = vld [vmem:[#allocation13 + $0x24] ss:$16 sps:$4 sm:$0xff]  }
 0xb6b   :  { %v5189_v32 = vpop.f32.mrf.mxu1  ;;  %v5232_v50 = vpop.f32.mrf.mxu0 }
 0xb6c   :  { %v5190_v47 = vadd.f32 %v5189_v32, %v5147_v45  ;;  %v5233_v49 = vadd.f32 %v5232_v50, %v4465_v59  ;;  %v9404_v50 = vld [vmem:[#allocation13 + $0x20] ss:$16 sps:$4 sm:$0xff]  }
 0xb6d   :  { %v5191_v28 = vpop.f32.mrf.mxu1  ;;  %v5234_v22 = vpop.f32.mrf.mxu0 }
 0xb6e   :  { %v5192_v18 = vadd.f32 %v5191_v28, %v5149_v23  ;;  %v5235_v31 = vadd.f32 %v5234_v22, %v4461_v36  ;;  %v9370_v22 = vld [vmem:[#allocation11 + $0x3ac] ss:$16 sps:$4 sm:$0xff]   ;;  %v9412_v36 = vld [vmem:[#allocation13 + $0x1e4] ss:$16 sps:$4 sm:$0xff]  }
 0xb6f   :  { %v5193_v34 = vpop.f32.mrf.mxu1  ;;  %v5236_v2 = vpop.f32.mrf.mxu0 }
 0xb70   :  { %v5194_v25 = vadd.f32 %v5193_v34, %v5151_v38  ;;  %v5282_v20 = vpack.c.bf16 %v5192_v18, %v5188_v0  ;;  %v5237_v29 = vadd.f32 %v5236_v2, %v4465_v59  ;;  %v9335_v38 = vld [vmem:[#allocation11 + $0x108] ss:$16 sps:$4 sm:$0xff]   ;;  %v9410_v59 = vld [vmem:[#allocation13 + $0x1e0] ss:$16 sps:$4 sm:$0xff]   ;;  %v9415_v2 = vld [vmem:[#allocation13 + $0x1c4] ss:$16 sps:$4 sm:$0xff]  }
 0xb71   :  { %v9338_v34 = vld [vmem:[#allocation11 + $0x2e8] ss:$16 sps:$4 sm:$0xff]  }
 0xb72   :  { %v5283_v53 = vpack.c.bf16 %v5194_v25, %v5190_v47  ;;  %v11396_v48 = vmax.bf16 %v11536_v35, %v5282_v20  ;;  %v9343_v25 = vld [vmem:[#allocation11 + $0x2cc] ss:$16 sps:$4 sm:$0xff]   ;;  %v9341_v20 = vld [vmem:[#allocation11 + $0x2c8] ss:$16 sps:$4 sm:$0xff]  }
 0xb74   :  { %v5287_v42 = vmax.bf16 %v11536_v35, %v5283_v53  ;;  %v9346_v53 = vld [vmem:[#allocation11 + $0x2ac] ss:$16 sps:$4 sm:$0xff]  }
 0xb76   :  { %6112 = vmatprep.mubr.bf16.mxu0 %v5287_v42 }
 0xb77   :  { %6113 = vmatmul.mubr.bf16.vlgmr.msra.gmra.mxu0 %v11396_v48 }
 0xb78   :  { %6167 = vmatpush1.bf16.msra.mxu0 %v9245_v40  ;;  %6198 = vmatprep.mubr.bf16.mxu0 %v5287_v42  ;;  %v9344_v42 = vld [vmem:[#allocation11 + $0x2a8] ss:$16 sps:$4 sm:$0xff]   ;;  %v9349_v40 = vld [vmem:[#allocation11 + $0x28c] ss:$16 sps:$4 sm:$0xff]  }
 0xb79   :  { %6168 = vmatprep.subr.bf16.mxu0 %v9253_v16  ;;  %v9386_v16 = vld [vmem:[#allocation13 + $0xe0] ss:$16 sps:$4 sm:$0xff]  }
 0xb7c   :  { %6169 = vmatpush1.bf16.msra.mxu0 %v9251_v21  ;;  %v9388_v21 = vld [vmem:[#allocation13 + $0xe4] ss:$16 sps:$4 sm:$0xff]  }
 0xb7d   :  { %6170 = vmatprep.subr.bf16.mxu0 %v9259_v8  ;;  %v9391_v8 = vld [vmem:[#allocation13 + $0xc4] ss:$16 sps:$4 sm:$0xff]  }
 0xb80   :  { %6171 = vmatpush1.bf16.msra.mxu0 %v9257_v51  ;;  %v9347_v51 = vld [vmem:[#allocation11 + $0x288] ss:$16 sps:$4 sm:$0xff]  }
 0xb81   :  { %6172 = vmatprep.subr.bf16.mxu0 %v9265_v5  ;;  %v9352_v5 = vld [vmem:[#allocation11 + $0x26c] ss:$16 sps:$4 sm:$0xff]  }
 0xb84   :  { %6173 = vmatpush1.bf16.msra.mxu0 %v9263_v61  ;;  %v9389_v61 = vld [vmem:[#allocation13 + $0xc0] ss:$16 sps:$4 sm:$0xff]  }
 0xb85   :  { %6174 = vmatprep.subr.bf16.mxu0 %v9271_v13  ;;  %v9350_v13 = vld [vmem:[#allocation11 + $0x268] ss:$16 sps:$4 sm:$0xff]  }
 0xb88   :  { %6175 = vmatpush1.bf16.msra.mxu0 %v9269_v24  ;;  %v9355_v24 = vld [vmem:[#allocation11 + $0x24c] ss:$16 sps:$4 sm:$0xff]  }
 0xb89   :  { %6176 = vmatprep.subr.bf16.mxu0 %v9277_v62  ;;  %v9392_v62 = vld [vmem:[#allocation13 + $0xa0] ss:$16 sps:$4 sm:$0xff]  }
 0xb8c   :  { %6177 = vmatpush1.bf16.msra.mxu0 %v9275_v33  ;;  %v9397_v33 = vld [vmem:[#allocation13 + $0x84] ss:$16 sps:$4 sm:$0xff]  }
 0xb8d   :  { %6178 = vmatprep.subr.bf16.mxu0 %v9283_v1  ;;  %v9353_v1 = vld [vmem:[#allocation11 + $0x248] ss:$16 sps:$4 sm:$0xff]  }
 0xb90   :  { %6179 = vmatpush1.bf16.msra.mxu0 %v9281_v41  ;;  %v9358_v41 = vld [vmem:[#allocation11 + $0x22c] ss:$16 sps:$4 sm:$0xff]  }
 0xb91   :  { %6180 = vmatprep.subr.bf16.mxu0 %v9289_v26  ;;  %v9395_v26 = vld [vmem:[#allocation13 + $0x80] ss:$16 sps:$4 sm:$0xff]  }
 0xb94   :  { %6181 = vmatpush1.bf16.msra.mxu0 %v9287_v7  ;;  %v9400_v7 = vld [vmem:[#allocation13 + $0x64] ss:$16 sps:$4 sm:$0xff]  }
 0xb95   :  { %6182 = vmatprep.subr.bf16.mxu0 %v9295_v11  ;;  %v9356_v11 = vld [vmem:[#allocation11 + $0x228] ss:$16 sps:$4 sm:$0xff]  }
 0xb98   :  { %6183 = vmatpush2.bf16.msra.mxu0 %v9293_v30  ;;  %v9361_v30 = vld [vmem:[#allocation11 + $0x20c] ss:$16 sps:$4 sm:$0xff]  }
 0xb99   :  { %6184 = vmatprep.subr.bf16.mxu0 %v9301_v37  ;;  %v9398_v37 = vld [vmem:[#allocation13 + $0x60] ss:$16 sps:$4 sm:$0xff]  }
 0xb9c   :  { %6185 = vmatpush2.bf16.msra.mxu0 %v9299_v14  ;;  %v9403_v14 = vld [vmem:[#allocation13 + $0x44] ss:$16 sps:$4 sm:$0xff]  }
 0xb9d   :  { %6186 = vmatprep.subr.bf16.mxu0 %v9307_v57  ;;  %v9359_v57 = vld [vmem:[#allocation11 + $0x208] ss:$16 sps:$4 sm:$0xff]  }
 0xba0   :  { %6187 = vmatpush2.bf16.msra.mxu0 %v9305_v54  ;;  %v9364_v54 = vld [vmem:[#allocation11 + $0x3ec] ss:$16 sps:$4 sm:$0xff]  }
 0xba1   :  { %6188 = vmatprep.subr.bf16.mxu0 %v9313_v60  ;;  %v9401_v60 = vld [vmem:[#allocation13 + $0x40] ss:$16 sps:$4 sm:$0xff]  }
 0xba4   :  { %6189 = vmatpush2.bf16.msra.mxu0 %v9311_v17  ;;  %v9362_v17 = vld [vmem:[#allocation11 + $0x3e8] ss:$16 sps:$4 sm:$0xff]  }
 0xba5   :  { %6190 = vmatprep.subr.bf16.mxu0 %v9319_v58  ;;  %v9367_v58 = vld [vmem:[#allocation11 + $0x3cc] ss:$16 sps:$4 sm:$0xff]  }
 0xba8   :  { %6191 = vmatpush2.bf16.msra.mxu0 %v9317_v27  ;;  %v9409_v27 = vld [vmem:[#allocation13 + $0x4] ss:$16 sps:$4 sm:$0xff]  }
 0xba9   :  { %v5273_v55 = vpop.f32.mrf.mxu1  ;;  %6192 = vmatprep.subr.bf16.mxu0 %v9325_v44  ;;  %v9365_v44 = vld [vmem:[#allocation11 + $0x3c8] ss:$16 sps:$4 sm:$0xff]  }
 0xbaa   :  { %v5274_v23 = vadd.f32 %v5273_v55, %v5231_v9  ;;  %v9368_v55 = vld [vmem:[#allocation11 + $0x3a8] ss:$16 sps:$4 sm:$0xff]   ;;  %v9418_v9 = vld [vmem:[#allocation13 + $0x1a4] ss:$16 sps:$4 sm:$0xff]  }
 0xbab   :  { %v5275_v6 = vpop.f32.mrf.mxu1 }
 0xbac   :  { %6193 = vmatpush2.bf16.msra.mxu0 %v9323_v15  ;;  %v5276_v28 = vadd.f32 %v5275_v6, %v5233_v49  ;;  %v9407_v15 = vld [vmem:[#allocation13] ss:$16 sps:$4 sm:$0xff]   ;;  %v9371_v6 = vld [vmem:[#allocation11 + $0x388] ss:$16 sps:$4 sm:$0xff]  }
 0xbad   :  { %v5277_v39 = vpop.f32.mrf.mxu1  ;;  %6194 = vmatprep.subr.bf16.mxu0 %v9331_v19  ;;  %v9373_v19 = vld [vmem:[#allocation11 + $0x38c] ss:$16 sps:$4 sm:$0xff]   ;;  %v9416_v49 = vld [vmem:[#allocation13 + $0x1a0] ss:$16 sps:$4 sm:$0xff]  }
 0xbae   :  { %v5278_v32 = vadd.f32 %v5277_v39, %v5235_v31  ;;  %v9376_v31 = vld [vmem:[#allocation11 + $0x36c] ss:$16 sps:$4 sm:$0xff]   ;;  %v9374_v39 = vld [vmem:[#allocation11 + $0x368] ss:$16 sps:$4 sm:$0xff]  }
 0xbaf   :  { %v5279_v56 = vpop.f32.mrf.mxu1 }
 0xbb0   :  { %v5280_v45 = vadd.f32 %v5279_v56, %v5237_v29  ;;  %6195 = vmatpush2.bf16.msra.mxu0 %v9329_v63  ;;  %v5284_v18 = vpack.c.bf16 %v5278_v32, %v5274_v23  ;;  %v9413_v63 = vld [vmem:[#allocation13 + $0x1c0] ss:$16 sps:$4 sm:$0xff]   ;;  %v9421_v29 = vld [vmem:[#allocation13 + $0x184] ss:$16 sps:$4 sm:$0xff]   ;;  %v9377_v32 = vld [vmem:[#allocation11 + $0x348] ss:$16 sps:$4 sm:$0xff]  }
 0xbb1   :  { %6196 = vmatprep.subr.bf16.mxu0 %v9337_v43  ;;  %v9379_v43 = vld [vmem:[#allocation11 + $0x34c] ss:$16 sps:$4 sm:$0xff]   ;;  %v9419_v56 = vld [vmem:[#allocation13 + $0x180] ss:$16 sps:$4 sm:$0xff]  }
 0xbb2   :  { %v5285_v10 = vpack.c.bf16 %v5280_v45, %v5276_v28  ;;  %v11405_v47 = vmax.bf16 %v11536_v35, %v5284_v18  ;;  %v9382_v23 = vld [vmem:[#allocation11 + $0x32c] ss:$16 sps:$4 sm:$0xff]   ;;  %v9424_v28 = vld [vmem:[#allocation13 + $0x164] ss:$16 sps:$4 sm:$0xff]   ;;  %v9380_v45 = vld [vmem:[#allocation11 + $0x328] ss:$16 sps:$4 sm:$0xff]  }
 0xbb3   :  { %v9422_v18 = vld [vmem:[#allocation13 + $0x160] ss:$16 sps:$4 sm:$0xff]  }
 0xbb4   :  { %6197 = vmatpush2.bf16.msra.mxu0 %v9335_v38  ;;  %v5289_v0 = vmax.bf16 %v11536_v35, %v5285_v10  ;;  %v9385_v38 = vld [vmem:[#allocation11 + $0x30c] ss:$16 sps:$4 sm:$0xff]   ;;  %v9383_v10 = vld [vmem:[#allocation11 + $0x308] ss:$16 sps:$4 sm:$0xff]  }
 0xbb5   :  { %7050 = vmatprep.subr.bf16.mxu0 %v9388_v21  ;;  %v9439_v21 = vld [vmem:[#allocation13 + $0xec] ss:$16 sps:$4 sm:$0xff]  }
 0xbb6   :  { %6155 = vmatprep.mubr.bf16.mxu1 %v5289_v0 }
 0xbb7   :  { %6156 = vmatmul.mubr.bf16.vlgmr.msra.gmra.mxu1 %v11405_v47  ;;  %6199 = vmatmul.mubr.bf16.vlgmr.msra.gmra.mxu0 %v11396_v48  ;;  %v9394_v48 = vld [vmem:[#allocation13 + $0xa4] ss:$16 sps:$4 sm:$0xff]  }
 0xbb8   :  { %6210 = vmatpush1.bf16.msra.mxu1 %v9338_v34  ;;  %6241 = vmatprep.mubr.bf16.mxu1 %v5289_v0  ;;  %v9427_v0 = vld [vmem:[#allocation13 + $0x144] ss:$16 sps:$4 sm:$0xff]   ;;  %v9425_v34 = vld [vmem:[#allocation13 + $0x140] ss:$16 sps:$4 sm:$0xff]  }
 0xbb9   :  { %6211 = vmatprep.subr.bf16.mxu1 %v9343_v25  ;;  %7051 = vmatpush1.bf16.msra.mxu0 %v9386_v16  ;;  %v9430_v25 = vld [vmem:[#allocation13 + $0x124] ss:$16 sps:$4 sm:$0xff]  }
 0xbba   :  { %7052 = vmatprep.subr.bf16.mxu0 %v9391_v8  ;;  %v9436_v16 = vld [vmem:[#allocation13 + $0x2e4] ss:$16 sps:$4 sm:$0xff]   ;;  %v9440_v8 = vld [vmem:[#allocation13 + $0x2c0] ss:$16 sps:$4 sm:$0xff]  }
 0xbbc   :  { %6212 = vmatpush1.bf16.msra.mxu1 %v9341_v20  ;;  %v9428_v20 = vld [vmem:[#allocation13 + $0x120] ss:$16 sps:$4 sm:$0xff]  }
 0xbbd   :  { %6213 = vmatprep.subr.bf16.mxu1 %v9346_v53  ;;  %7053 = vmatpush1.bf16.msra.mxu0 %v9389_v61  ;;  %v9433_v53 = vld [vmem:[#allocation13 + $0x104] ss:$16 sps:$4 sm:$0xff]   ;;  %v9452_v61 = vld [vmem:[#allocation13 + $0x280] ss:$16 sps:$4 sm:$0xff]  }
 0xbbe   :  { %7054 = vmatprep.subr.bf16.mxu0 %v9394_v48  ;;  %v9454_v48 = vld [vmem:[#allocation13 + $0x284] ss:$16 sps:$4 sm:$0xff]  }
 0xbc0   :  { %6214 = vmatpush1.bf16.msra.mxu1 %v9344_v42  ;;  %v9431_v42 = vld [vmem:[#allocation13 + $0x100] ss:$16 sps:$4 sm:$0xff]  }
 0xbc1   :  { %6215 = vmatprep.subr.bf16.mxu1 %v9349_v40  ;;  %7055 = vmatpush1.bf16.msra.mxu0 %v9392_v62  ;;  %v9434_v40 = vld [vmem:[#allocation13 + $0x2e0] ss:$16 sps:$4 sm:$0xff]  }
 0xbc2   :  { %7056 = vmatprep.subr.bf16.mxu0 %v9397_v33  ;;  %v9464_v62 = vld [vmem:[#allocation13 + $0x240] ss:$16 sps:$4 sm:$0xff]   ;;  %v9466_v33 = vld [vmem:[#allocation13 + $0x244] ss:$16 sps:$4 sm:$0xff]  }
 0xbc4   :  { %6216 = vmatpush1.bf16.msra.mxu1 %v9347_v51  ;;  %v9446_v51 = vld [vmem:[#allocation13 + $0x2a0] ss:$16 sps:$4 sm:$0xff]  }
 0xbc5   :  { %6217 = vmatprep.subr.bf16.mxu1 %v9352_v5  ;;  %7057 = vmatpush1.bf16.msra.mxu0 %v9395_v26  ;;  %v9448_v5 = vld [vmem:[#allocation13 + $0x2a4] ss:$16 sps:$4 sm:$0xff]   ;;  %v9476_v26 = vld [vmem:[#allocation13 + $0x200] ss:$16 sps:$4 sm:$0xff]  }
 0xbc6   :  { %7058 = vmatprep.subr.bf16.mxu0 %v9400_v7  ;;  %v9478_v7 = vld [vmem:[#allocation13 + $0x204] ss:$16 sps:$4 sm:$0xff]  }
 0xbc8   :  { %6218 = vmatpush1.bf16.msra.mxu1 %v9350_v13  ;;  %v9458_v13 = vld [vmem:[#allocation13 + $0x260] ss:$16 sps:$4 sm:$0xff]  }
 0xbc9   :  { %6219 = vmatprep.subr.bf16.mxu1 %v9355_v24  ;;  %7059 = vmatpush1.bf16.msra.mxu0 %v9398_v37  ;;  %v9460_v24 = vld [vmem:[#allocation13 + $0x264] ss:$16 sps:$4 sm:$0xff]   ;;  %v9488_v37 = vld [vmem:[#allocation13 + $0x3c0] ss:$16 sps:$4 sm:$0xff]  }
 0xbca   :  { %7060 = vmatprep.subr.bf16.mxu0 %v9403_v14  ;;  %v9490_v14 = vld [vmem:[#allocation13 + $0x3c4] ss:$16 sps:$4 sm:$0xff]  }
 0xbcc   :  { %6220 = vmatpush1.bf16.msra.mxu1 %v9353_v1  ;;  %v9470_v1 = vld [vmem:[#allocation13 + $0x220] ss:$16 sps:$4 sm:$0xff]  }
 0xbcd   :  { %6221 = vmatprep.subr.bf16.mxu1 %v9358_v41  ;;  %7061 = vmatpush1.bf16.msra.mxu0 %v9401_v60  ;;  %v9472_v41 = vld [vmem:[#allocation13 + $0x224] ss:$16 sps:$4 sm:$0xff]   ;;  %v9500_v60 = vld [vmem:[#allocation13 + $0x380] ss:$16 sps:$4 sm:$0xff]  }
 0xbce   :  { %7062 = vmatprep.subr.bf16.mxu0 %v9406_v3  ;;  %v9502_v3 = vld [vmem:[#allocation13 + $0x384] ss:$16 sps:$4 sm:$0xff]  }
 0xbd0   :  { %6222 = vmatpush1.bf16.msra.mxu1 %v9356_v11  ;;  %v9482_v11 = vld [vmem:[#allocation13 + $0x3e0] ss:$16 sps:$4 sm:$0xff]  }
 0xbd1   :  { %6223 = vmatprep.subr.bf16.mxu1 %v9361_v30  ;;  %7063 = vmatpush1.bf16.msra.mxu0 %v9404_v50  ;;  %v9484_v30 = vld [vmem:[#allocation13 + $0x3e4] ss:$16 sps:$4 sm:$0xff]  }
 0xbd2   :  { %7064 = vmatprep.subr.bf16.mxu0 %v9409_v27  ;;  %v9514_v50 = vld [vmem:[#allocation13 + $0x344] ss:$16 sps:$4 sm:$0xff]   ;;  %v9512_v27 = vld [vmem:[#allocation13 + $0x340] ss:$16 sps:$4 sm:$0xff]  }
 0xbd4   :  { %6224 = vmatpush1.bf16.msra.mxu1 %v9359_v57  ;;  %v9494_v57 = vld [vmem:[#allocation13 + $0x3a0] ss:$16 sps:$4 sm:$0xff]  }
 0xbd5   :  { %6225 = vmatprep.subr.bf16.mxu1 %v9364_v54  ;;  %7065 = vmatpush1.bf16.msra.mxu0 %v9407_v15  ;;  %v9496_v54 = vld [vmem:[#allocation13 + $0x3a4] ss:$16 sps:$4 sm:$0xff]  }
 0xbd6   :  { %7066 = vmatprep.subr.bf16.mxu0 %v9412_v36  ;;  %v9526_v15 = vld [vmem:[#allocation13 + $0x304] ss:$16 sps:$4 sm:$0xff]   ;;  %v9524_v36 = vld [vmem:[#allocation13 + $0x300] ss:$16 sps:$4 sm:$0xff]  }
 0xbd8   :  { %6226 = vmatpush2.bf16.msra.mxu1 %v9362_v17  ;;  %v9506_v17 = vld [vmem:[#allocation13 + $0x360] ss:$16 sps:$4 sm:$0xff]  }
 0xbd9   :  { %6227 = vmatprep.subr.bf16.mxu1 %v9367_v58  ;;  %7067 = vmatpush2.bf16.msra.mxu0 %v9410_v59  ;;  %v9508_v58 = vld [vmem:[#allocation13 + $0x364] ss:$16 sps:$4 sm:$0xff]  }
 0xbda   :  { %7068 = vmatprep.subr.bf16.mxu0 %v9415_v2  ;;  %v11413_v2 = vld [vmem:[%s11468_s13] sm:$0xf] }
 0xbdc   :  { %6228 = vmatpush2.bf16.msra.mxu1 %v9365_v44  ;;  %v9520_v44 = vld [vmem:[#allocation13 + $0x324] ss:$16 sps:$4 sm:$0xff]  }
 0xbdd   :  { %6229 = vmatprep.subr.bf16.mxu1 %v9370_v22  ;;  %7069 = vmatpush2.bf16.msra.mxu0 %v9413_v63  ;;  %v9518_v22 = vld [vmem:[#allocation13 + $0x320] ss:$16 sps:$4 sm:$0xff]  }
 0xbde   :  { %7070 = vmatprep.subr.bf16.mxu0 %v9418_v9  ;;  %v5427_v9 = vrot.slane %v11413_v2, %v11581_v46 }
 0xbe0   :  { %6230 = vmatpush2.bf16.msra.mxu1 %v9368_v55  ;;  %v9532_v55 = vld [vmem:[#allocation13 + $0x2ec] ss:$16 sps:$4 sm:$0xff]  }
 0xbe1   :  { %6231 = vmatprep.subr.bf16.mxu1 %v9373_v19  ;;  %7071 = vmatpush2.bf16.msra.mxu0 %v9416_v49 }
 0xbe2   :  { %7072 = vmatprep.subr.bf16.mxu0 %v9421_v29 }
 0xbe4   :  { %6232 = vmatpush2.bf16.msra.mxu1 %v9371_v6 }
 0xbe5   :  { %6233 = vmatprep.subr.bf16.mxu1 %v9376_v31  ;;  %7073 = vmatpush2.bf16.msra.mxu0 %v9419_v56  ;;  %v5423_v31 = vrot.slane %v11413_v2, %v11579_v4 }
 0xbe6   :  { %7074 = vmatprep.subr.bf16.mxu0 %v9424_v28 }
 0xbe8   :  { %6234 = vmatpush2.bf16.msra.mxu1 %v9374_v39 }
 0xbe9   :  { %6235 = vmatprep.subr.bf16.mxu1 %v9379_v43  ;;  %7075 = vmatpush2.bf16.msra.mxu0 %v9422_v18 }
 0xbea   :  { %7076 = vmatprep.subr.bf16.mxu0 %v9427_v0 }
 0xbec   :  { %6236 = vmatpush2.bf16.msra.mxu1 %v9377_v32 }
 0xbed   :  { %6237 = vmatprep.subr.bf16.mxu1 %v9382_v23  ;;  %7077 = vmatpush2.bf16.msra.mxu0 %v9425_v34 }
 0xbee   :  { %7078 = vmatprep.subr.bf16.mxu0 %v9430_v25 }
 0xbf0   :  { %6238 = vmatpush2.bf16.msra.mxu1 %v9380_v45 }
 0xbf1   :  { %6239 = vmatprep.subr.bf16.mxu1 %v9385_v38  ;;  %7079 = vmatpush2.bf16.msra.mxu0 %v9428_v20  ;;  %v9437_v20 = vld [vmem:[#allocation13 + $0xe8] ss:$16 sps:$4 sm:$0xff]  }
 0xbf2   :  { %7080 = vmatprep.subr.bf16.mxu0 %v9433_v53 }
 0xbf4   :  { %6240 = vmatpush2.bf16.msra.mxu1 %v9383_v10 }
 0xbf5   :  { %7081 = vmatpush2.bf16.msra.mxu0 %v9431_v42  ;;  %7093 = vmatprep.subr.bf16.mxu1 %v9436_v16  ;;  %v9445_v42 = vld [vmem:[#allocation13 + $0xcc] ss:$16 sps:$4 sm:$0xff]  }
 0xbf6   :  { %7136 = vmatprep.subr.bf16.mxu0 %v9439_v21  ;;  %v9451_v16 = vld [vmem:[#allocation13 + $0xac] ss:$16 sps:$4 sm:$0xff]   ;;  %v9449_v21 = vld [vmem:[#allocation13 + $0xa8] ss:$16 sps:$4 sm:$0xff]  }
 0xbf7   :  { %6242 = vmatmul.mubr.bf16.vlgmr.msra.gmra.mxu1 %v11405_v47  ;;  %v9442_v47 = vld [vmem:[#allocation13 + $0x2c4] ss:$16 sps:$4 sm:$0xff]  }
 0xbf8   :  { %7094 = vmatpush1.bf16.msra.mxu1 %v9434_v40  ;;  %v9443_v40 = vld [vmem:[#allocation13 + $0xc8] ss:$16 sps:$4 sm:$0xff]  }
 0xbf9   :  { %7095 = vmatprep.subr.bf16.mxu1 %v9442_v47  ;;  %v9455_v47 = vld [vmem:[#allocation13 + $0x88] ss:$16 sps:$4 sm:$0xff]  }
 0xbfc   :  { %7096 = vmatpush1.bf16.msra.mxu1 %v9440_v8  ;;  %v9457_v8 = vld [vmem:[#allocation13 + $0x8c] ss:$16 sps:$4 sm:$0xff]  }
 0xbfd   :  { %7097 = vmatprep.subr.bf16.mxu1 %v9448_v5  ;;  %v9461_v5 = vld [vmem:[#allocation13 + $0x68] ss:$16 sps:$4 sm:$0xff]  }
 0xc00   :  { %7098 = vmatpush1.bf16.msra.mxu1 %v9446_v51  ;;  %v9463_v51 = vld [vmem:[#allocation13 + $0x6c] ss:$16 sps:$4 sm:$0xff]  }
 0xc01   :  { %7099 = vmatprep.subr.bf16.mxu1 %v9454_v48  ;;  %v9467_v48 = vld [vmem:[#allocation13 + $0x48] ss:$16 sps:$4 sm:$0xff]  }
 0xc04   :  { %7100 = vmatpush1.bf16.msra.mxu1 %v9452_v61  ;;  %v9469_v61 = vld [vmem:[#allocation13 + $0x4c] ss:$16 sps:$4 sm:$0xff]  }
 0xc05   :  { %7101 = vmatprep.subr.bf16.mxu1 %v9460_v24  ;;  %v9473_v24 = vld [vmem:[#allocation13 + $0x28] ss:$16 sps:$4 sm:$0xff]  }
 0xc08   :  { %7102 = vmatpush1.bf16.msra.mxu1 %v9458_v13  ;;  %v9475_v13 = vld [vmem:[#allocation13 + $0x2c] ss:$16 sps:$4 sm:$0xff]  }
 0xc09   :  { %7103 = vmatprep.subr.bf16.mxu1 %v9466_v33  ;;  %v9479_v33 = vld [vmem:[#allocation13 + $0x8] ss:$16 sps:$4 sm:$0xff]  }
 0xc0c   :  { %7104 = vmatpush1.bf16.msra.mxu1 %v9464_v62  ;;  %v9481_v62 = vld [vmem:[#allocation13 + $0xc] ss:$16 sps:$4 sm:$0xff]  }
 0xc0d   :  { %7105 = vmatprep.subr.bf16.mxu1 %v9472_v41  ;;  %v9485_v41 = vld [vmem:[#allocation13 + $0x1e8] ss:$16 sps:$4 sm:$0xff]  }
 0xc10   :  { %7106 = vmatpush1.bf16.msra.mxu1 %v9470_v1  ;;  %v9487_v1 = vld [vmem:[#allocation13 + $0x1ec] ss:$16 sps:$4 sm:$0xff]  }
 0xc11   :  { %7107 = vmatprep.subr.bf16.mxu1 %v9478_v7  ;;  %v9491_v7 = vld [vmem:[#allocation13 + $0x1c8] ss:$16 sps:$4 sm:$0xff]  }
 0xc14   :  { %7108 = vmatpush1.bf16.msra.mxu1 %v9476_v26  ;;  %v9493_v26 = vld [vmem:[#allocation13 + $0x1cc] ss:$16 sps:$4 sm:$0xff]  }
 0xc15   :  { %7109 = vmatprep.subr.bf16.mxu1 %v9484_v30  ;;  %v9497_v30 = vld [vmem:[#allocation13 + $0x1a8] ss:$16 sps:$4 sm:$0xff]  }
 0xc18   :  { %7110 = vmatpush2.bf16.msra.mxu1 %v9482_v11  ;;  %v9499_v11 = vld [vmem:[#allocation13 + $0x1ac] ss:$16 sps:$4 sm:$0xff]  }
 0xc19   :  { %7111 = vmatprep.subr.bf16.mxu1 %v9490_v14 }
 0xc1c   :  { %7112 = vmatpush2.bf16.msra.mxu1 %v9488_v37  ;;  %v9505_v37 = vld [vmem:[#allocation13 + $0x18c] ss:$16 sps:$4 sm:$0xff]  }
 0xc1d   :  { %7113 = vmatprep.subr.bf16.mxu1 %v9496_v54  ;;  %v9511_v54 = vld [vmem:[#allocation13 + $0x16c] ss:$16 sps:$4 sm:$0xff]  }
 0xc20   :  { %7114 = vmatpush2.bf16.msra.mxu1 %v9494_v57  ;;  %v9503_v57 = vld [vmem:[#allocation13 + $0x188] ss:$16 sps:$4 sm:$0xff]  }
 0xc21   :  { %7115 = vmatprep.subr.bf16.mxu1 %v9502_v3  ;;  %v9509_v3 = vld [vmem:[#allocation13 + $0x168] ss:$16 sps:$4 sm:$0xff]  }
 0xc24   :  { %7116 = vmatpush2.bf16.msra.mxu1 %v9500_v60 }
 0xc25   :  { %7117 = vmatprep.subr.bf16.mxu1 %v9508_v58 }
 0xc28   :  { %7118 = vmatpush2.bf16.msra.mxu1 %v9506_v17  ;;  %v9517_v17 = vld [vmem:[#allocation13 + $0x14c] ss:$16 sps:$4 sm:$0xff]  }
 0xc29   :  { %7119 = vmatprep.subr.bf16.mxu1 %v9514_v50  ;;  %v9515_v50 = vld [vmem:[#allocation13 + $0x148] ss:$16 sps:$4 sm:$0xff]  }
 0xc2c   :  { %7120 = vmatpush2.bf16.msra.mxu1 %v9512_v27  ;;  %v5431_v27 = vrot.slane %v11413_v2, %v11580_v12 }
 0xc2d   :  { %7121 = vmatprep.subr.bf16.mxu1 %v9520_v44 }
 0xc30   :  { %7122 = vmatpush2.bf16.msra.mxu1 %v9518_v22  ;;  %v9523_v22 = vld [vmem:[#allocation13 + $0x12c] ss:$16 sps:$4 sm:$0xff]  }
 0xc31   :  { %7123 = vmatprep.subr.bf16.mxu1 %v9526_v15  ;;  %v5435_v15 = vrot.slane %v11413_v2, %v11582_v52 }
 0xc34   :  { %7124 = vmatpush2.bf16.msra.mxu1 %v9524_v36 }
 0xc35   :  { %7179 = vmatprep.subr.bf16.mxu1 %v9532_v55 }
 0xc37   :  { %v6114_v19 = vpop.f32.mrf.mxu0 }
 0xc38   :  { %v6115_v29 = vadd.f32 %v6114_v19, %v5423_v31 }
 0xc39   :  { %v6116_v59 = vpop.f32.mrf.mxu0 }
 0xc3a   :  { %v6117_v23 = vadd.f32 %v6116_v59, %v5427_v9  ;;  %v9521_v59 = vld [vmem:[#allocation13 + $0x128] ss:$16 sps:$4 sm:$0xff]  }
 0xc3b   :  { %v6118_v6 = vpop.f32.mrf.mxu0 }
 0xc3c   :  { %v6119_v49 = vadd.f32 %v6118_v6, %v5423_v31 }
 0xc3d   :  { %v6120_v39 = vpop.f32.mrf.mxu0 }
 0xc3e   :  { %v6121_v56 = vadd.f32 %v6120_v39, %v5427_v9 }
 0xc77   :  { %v6157_v63 = vpop.f32.mrf.mxu1  ;;  %v6200_v14 = vpop.f32.mrf.mxu0 }
 0xc78   :  { %v6158_v45 = vadd.f32 %v6157_v63, %v6115_v29  ;;  %v6201_v6 = vadd.f32 %v6200_v14, %v5431_v27  ;;  %v9529_v63 = vld [vmem:[#allocation13 + $0x10c] ss:$16 sps:$4 sm:$0xff]   ;;  %v9557_v14 = vld [vmem:[#allocation13 + $0x3c8] ss:$16 sps:$4 sm:$0xff]  }
 0xc79   :  { %v6159_v43 = vpop.f32.mrf.mxu1  ;;  %v6202_v60 = vpop.f32.mrf.mxu0 }
 0xc7a   :  { %v6160_v18 = vadd.f32 %v6159_v43, %v6117_v23  ;;  %v6203_v9 = vadd.f32 %v6202_v60, %v5435_v15  ;;  %v9565_v60 = vld [vmem:[#allocation13 + $0x38c] ss:$16 sps:$4 sm:$0xff]  }
 0xc7b   :  { %v6161_v32 = vpop.f32.mrf.mxu1  ;;  %v6204_v58 = vpop.f32.mrf.mxu0 }
 0xc7c   :  { %v6162_v28 = vadd.f32 %v6161_v32, %v6119_v49  ;;  %v6205_v19 = vadd.f32 %v6204_v58, %v5431_v27  ;;  %v9566_v58 = vld [vmem:[#allocation13 + $0x368] ss:$16 sps:$4 sm:$0xff]  }
 0xc7d   :  { %v6163_v38 = vpop.f32.mrf.mxu1  ;;  %v6206_v36 = vpop.f32.mrf.mxu0  ;;  %v9569_v27 = vld [vmem:[#allocation13 + $0x348] ss:$16 sps:$4 sm:$0xff]  }
 0xc7e   :  { %v6164_v10 = vadd.f32 %v6163_v38, %v6121_v56  ;;  %v6252_v0 = vpack.c.bf16 %v6162_v28, %v6158_v45  ;;  %v6207_v39 = vadd.f32 %v6206_v36, %v5435_v15  ;;  %v9527_v56 = vld [vmem:[#allocation13 + $0x108] ss:$16 sps:$4 sm:$0xff]   ;;  %v9577_v15 = vld [vmem:[#allocation13 + $0x30c] ss:$16 sps:$4 sm:$0xff]  }
 0xc7f   :  { %v9530_v38 = vld [vmem:[#allocation13 + $0x2e8] ss:$16 sps:$4 sm:$0xff]  }
 0xc80   :  { %v6253_v34 = vpack.c.bf16 %v6164_v10, %v6160_v18  ;;  %v11421_v53 = vmax.bf16 %v11536_v35, %v6252_v0  ;;  %v9535_v10 = vld [vmem:[#allocation13 + $0x2cc] ss:$16 sps:$4 sm:$0xff]   ;;  %v9533_v0 = vld [vmem:[#allocation13 + $0x2c8] ss:$16 sps:$4 sm:$0xff]  }
 0xc81   :  { %v9575_v36 = vld [vmem:[#allocation13 + $0x308] ss:$16 sps:$4 sm:$0xff]  }
 0xc82   :  { %v6257_v25 = vmax.bf16 %v11536_v35, %v6253_v34  ;;  %v9538_v34 = vld [vmem:[#allocation13 + $0x2ac] ss:$16 sps:$4 sm:$0xff]  }
 0xc84   :  { %7082 = vmatprep.mubr.bf16.mxu0 %v6257_v25 }
 0xc85   :  { %7083 = vmatmul.mubr.bf16.vlgmr.msra.gmra.mxu0 %v11421_v53 }
 0xc86   :  { %7137 = vmatpush1.bf16.msra.mxu0 %v9437_v20  ;;  %7168 = vmatprep.mubr.bf16.mxu0 %v6257_v25  ;;  %v9536_v25 = vld [vmem:[#allocation13 + $0x2a8] ss:$16 sps:$4 sm:$0xff]   ;;  %v9541_v20 = vld [vmem:[#allocation13 + $0x28c] ss:$16 sps:$4 sm:$0xff]  }
 0xc87   :  { %7138 = vmatprep.subr.bf16.mxu0 %v9445_v42  ;;  %v9578_v42 = vld [vmem:[#allocation14 + $0x78] sm:$0xff]  }
 0xc8a   :  { %7139 = vmatpush1.bf16.msra.mxu0 %v9443_v40  ;;  %v9579_v40 = vld [vmem:[#allocation14 + $0x38] sm:$0xff]  }
 0xc8b   :  { %7140 = vmatprep.subr.bf16.mxu0 %v9451_v16  ;;  %v9580_v16 = vld [vmem:[#allocation14 + $0x70] sm:$0xff]  }
 0xc8e   :  { %7141 = vmatpush1.bf16.msra.mxu0 %v9449_v21  ;;  %v9539_v21 = vld [vmem:[#allocation13 + $0x288] ss:$16 sps:$4 sm:$0xff]  }
 0xc8f   :  { %7142 = vmatprep.subr.bf16.mxu0 %v9457_v8  ;;  %v9544_v8 = vld [vmem:[#allocation13 + $0x26c] ss:$16 sps:$4 sm:$0xff]  }
 0xc92   :  { %7143 = vmatpush1.bf16.msra.mxu0 %v9455_v47  ;;  %v9581_v47 = vld [vmem:[#allocation14 + $0x30] sm:$0xff]  }
 0xc93   :  { %7144 = vmatprep.subr.bf16.mxu0 %v9463_v51  ;;  %v9542_v51 = vld [vmem:[#allocation13 + $0x268] ss:$16 sps:$4 sm:$0xff]  }
 0xc96   :  { %7145 = vmatpush1.bf16.msra.mxu0 %v9461_v5  ;;  %v9547_v5 = vld [vmem:[#allocation13 + $0x24c] ss:$16 sps:$4 sm:$0xff]  }
 0xc97   :  { %7146 = vmatprep.subr.bf16.mxu0 %v9469_v61  ;;  %v9583_v61 = vld [vmem:[#allocation14 + $0x28] sm:$0xff]  }
 0xc9a   :  { %7147 = vmatpush1.bf16.msra.mxu0 %v9467_v48  ;;  %v9584_v48 = vld [vmem:[#allocation14 + $0x60] sm:$0xff]  }
 0xc9b   :  { %7148 = vmatprep.subr.bf16.mxu0 %v9475_v13  ;;  %v9545_v13 = vld [vmem:[#allocation13 + $0x248] ss:$16 sps:$4 sm:$0xff]  }
 0xc9e   :  { %7149 = vmatpush1.bf16.msra.mxu0 %v9473_v24  ;;  %v9550_v24 = vld [vmem:[#allocation13 + $0x22c] ss:$16 sps:$4 sm:$0xff]  }
 0xc9f   :  { %7150 = vmatprep.subr.bf16.mxu0 %v9481_v62  ;;  %v9585_v62 = vld [vmem:[#allocation14 + $0x20] sm:$0xff]  }
 0xca2   :  { %7151 = vmatpush1.bf16.msra.mxu0 %v9479_v33  ;;  %v9586_v33 = vld [vmem:[#allocation14 + $0x58] sm:$0xff]  }
 0xca3   :  { %7152 = vmatprep.subr.bf16.mxu0 %v9487_v1  ;;  %v9548_v1 = vld [vmem:[#allocation13 + $0x228] ss:$16 sps:$4 sm:$0xff]  }
 0xca6   :  { %7153 = vmatpush2.bf16.msra.mxu0 %v9485_v41  ;;  %v9553_v41 = vld [vmem:[#allocation13 + $0x20c] ss:$16 sps:$4 sm:$0xff]  }
 0xca7   :  { %7154 = vmatprep.subr.bf16.mxu0 %v9493_v26  ;;  %v9587_v26 = vld [vmem:[#allocation14 + $0x18] sm:$0xff]  }
 0xcaa   :  { %7155 = vmatpush2.bf16.msra.mxu0 %v9491_v7  ;;  %v9551_v7 = vld [vmem:[#allocation13 + $0x208] ss:$16 sps:$4 sm:$0xff]  }
 0xcab   :  { %7156 = vmatprep.subr.bf16.mxu0 %v9499_v11  ;;  %v9556_v11 = vld [vmem:[#allocation13 + $0x3ec] ss:$16 sps:$4 sm:$0xff]  }
 0xcae   :  { %7157 = vmatpush2.bf16.msra.mxu0 %v9497_v30  ;;  %v9554_v30 = vld [vmem:[#allocation13 + $0x3e8] ss:$16 sps:$4 sm:$0xff]  }
 0xcaf   :  { %7158 = vmatprep.subr.bf16.mxu0 %v9505_v37  ;;  %v9559_v37 = vld [vmem:[#allocation13 + $0x3cc] ss:$16 sps:$4 sm:$0xff]  }
 0xcb2   :  { %7159 = vmatpush2.bf16.msra.mxu0 %v9503_v57  ;;  %v9562_v57 = vld [vmem:[#allocation13 + $0x3ac] ss:$16 sps:$4 sm:$0xff]  }
 0xcb3   :  { %7160 = vmatprep.subr.bf16.mxu0 %v9511_v54  ;;  %v9560_v54 = vld [vmem:[#allocation13 + $0x3a8] ss:$16 sps:$4 sm:$0xff]  }
 0xcb6   :  { %7161 = vmatpush2.bf16.msra.mxu0 %v9509_v3  ;;  %v9563_v3 = vld [vmem:[#allocation13 + $0x388] ss:$16 sps:$4 sm:$0xff]  }
 0xcb7   :  { %v6243_v44 = vpop.f32.mrf.mxu1  ;;  %7162 = vmatprep.subr.bf16.mxu0 %v9517_v17  ;;  %v9568_v17 = vld [vmem:[#allocation13 + $0x36c] ss:$16 sps:$4 sm:$0xff]  }
 0xcb8   :  { %v6244_v49 = vadd.f32 %v6243_v44, %v6201_v6  ;;  %v9574_v44 = vld [vmem:[#allocation13 + $0x32c] ss:$16 sps:$4 sm:$0xff]  }
 0xcb9   :  { %v6245_v55 = vpop.f32.mrf.mxu1  ;;  %v9591_v6 = vld [vmem:[#allocation14 + $0x8] sm:$0xff]  }
 0xcba   :  { %7163 = vmatpush2.bf16.msra.mxu0 %v9515_v50  ;;  %v6246_v32 = vadd.f32 %v6245_v55, %v6203_v9  ;;  %v9571_v50 = vld [vmem:[#allocation13 + $0x34c] ss:$16 sps:$4 sm:$0xff]   ;;  %v9588_v55 = vld [vmem:[#allocation14 + $0x50] sm:$0xff]  }
 0xcbb   :  { %v6247_v31 = vpop.f32.mrf.mxu1  ;;  %7164 = vmatprep.subr.bf16.mxu0 %v9523_v22  ;;  %v9572_v22 = vld [vmem:[#allocation13 + $0x328] ss:$16 sps:$4 sm:$0xff]  }
 0xcbc   :  { %v6248_v43 = vadd.f32 %v6247_v31, %v6205_v19  ;;  %v9589_v19 = vld [vmem:[#allocation14 + $0x10] sm:$0xff]   ;;  %v9592_v31 = vld [vmem:[#allocation14 + $0x40] sm:$0xff]   ;;  %v9594_v9 = vld [vmem:[#allocation14 + $0xf8] sm:$0xff]  }
 0xcbd   :  { %v6249_v29 = vpop.f32.mrf.mxu1 }
 0xcbe   :  { %v6250_v23 = vadd.f32 %v6249_v29, %v6207_v39  ;;  %7165 = vmatpush2.bf16.msra.mxu0 %v9521_v59  ;;  %v6254_v28 = vpack.c.bf16 %v6248_v43, %v6244_v49  ;;  %v9590_v59 = vld [vmem:[#allocation14 + $0x48] sm:$0xff]   ;;  %v9595_v39 = vld [vmem:[#allocation14 + $0xb8] sm:$0xff]   ;;  %v9596_v43 = vld [vmem:[#allocation14 + $0xf0] sm:$0xff]  }
 0xcbf   :  { %7166 = vmatprep.subr.bf16.mxu0 %v9529_v63  ;;  %v9593_v63 = vld [vmem:[#allocation14] sm:$0xff]   ;;  %v9597_v49 = vld [vmem:[#allocation14 + $0xb0] sm:$0xff]   ;;  %v9598_v29 = vld [vmem:[#allocation14 + $0xe8] sm:$0xff]  }
 0xcc0   :  { %v6255_v2 = vpack.c.bf16 %v6250_v23, %v6246_v32  ;;  %v11430_v18 = vmax.bf16 %v11536_v35, %v6254_v28  ;;  %v9599_v32 = vld [vmem:[#allocation14 + $0xa8] sm:$0xff]   ;;  %v9600_v23 = vld [vmem:[#allocation14 + $0xe0] sm:$0xff]   ;;  %v9602_v28 = vld [vmem:[#allocation14 + $0xd8] sm:$0xff]  }
 0xcc2   :  { %7167 = vmatpush2.bf16.msra.mxu0 %v9527_v56  ;;  %v6259_v45 = vmax.bf16 %v11536_v35, %v6255_v2  ;;  %v9601_v56 = vld [vmem:[#allocation14 + $0xa0] sm:$0xff]   ;;  %v9603_v2 = vld [vmem:[#allocation14 + $0x98] sm:$0xff]  }
 0xcc3   :  { %8422 = vmatprep.subr.bf16.mxu0 %v9578_v42  ;;  %v6388_v42 = vld [vmem:[%s11470_s15] sm:$0xf] }
 0xcc4   :  { %7125 = vmatprep.mubr.bf16.mxu1 %v6259_v45 }
 0xcc5   :  { %7126 = vmatmul.mubr.bf16.vlgmr.msra.gmra.mxu1 %v11430_v18  ;;  %7169 = vmatmul.mubr.bf16.vlgmr.msra.gmra.mxu0 %v11421_v53  ;;  %v9582_v53 = vld [vmem:[#allocation14 + $0x68] sm:$0xff]  }
 0xcc6   :  { %7180 = vmatpush1.bf16.msra.mxu1 %v9530_v38  ;;  %7211 = vmatprep.mubr.bf16.mxu1 %v6259_v45  ;;  %v9604_v45 = vld [vmem:[#allocation14 + $0xd0] sm:$0xff]  }
 0xcc7   :  { %7181 = vmatprep.subr.bf16.mxu1 %v9535_v10  ;;  %8423 = vmatpush3.bf16.msra.mxu0 %v9579_v40  ;;  %v9605_v38 = vld [vmem:[#allocation14 + $0x90] sm:$0xff]   ;;  %v9607_v10 = vld [vmem:[#allocation14 + $0x88] sm:$0xff]  }
 0xcc8   :  { %8424 = vmatprep.subr.bf16.mxu0 %v9580_v16  ;;  %v6393_v16 = vrot.slane %v6388_v42, %v11579_v4 }
 0xcca   :  { %7182 = vmatpush1.bf16.msra.mxu1 %v9533_v0  ;;  %v9608_v0 = vld [vmem:[#allocation14 + $0xc0] sm:$0xff]  }
 0xccb   :  { %7183 = vmatprep.subr.bf16.mxu1 %v9538_v34  ;;  %8425 = vmatpush3.bf16.msra.mxu0 %v9581_v47  ;;  %v9609_v34 = vld [vmem:[#allocation14 + $0x80] sm:$0xff]  }
 0xccc   :  { %8426 = vmatprep.subr.bf16.mxu0 %v9582_v53 }
 0xcce   :  { %7184 = vmatpush1.bf16.msra.mxu1 %v9536_v25 }
 0xccf   :  { %7185 = vmatprep.subr.bf16.mxu1 %v9541_v20  ;;  %8427 = vmatpush3.bf16.msra.mxu0 %v9583_v61 }
 0xcd0   :  { %8428 = vmatprep.subr.bf16.mxu0 %v9584_v48 }
 0xcd2   :  { %7186 = vmatpush1.bf16.msra.mxu1 %v9539_v21 }
 0xcd3   :  { %7187 = vmatprep.subr.bf16.mxu1 %v9544_v8  ;;  %8429 = vmatpush3.bf16.msra.mxu0 %v9585_v62  ;;  %v6397_v8 = vrot.slane %v6388_v42, %v11581_v46 }
 0xcd4   :  { %8430 = vmatprep.subr.bf16.mxu0 %v9586_v33 }
 0xcd6   :  { %7188 = vmatpush1.bf16.msra.mxu1 %v9542_v51 }
 0xcd7   :  { %7189 = vmatprep.subr.bf16.mxu1 %v9547_v5  ;;  %8431 = vmatpush3.bf16.msra.mxu0 %v9587_v26 }
 0xcd8   :  { %8432 = vmatprep.subr.bf16.mxu0 %v9588_v55 }
 0xcda   :  { %7190 = vmatpush1.bf16.msra.mxu1 %v9545_v13 }
 0xcdb   :  { %7191 = vmatprep.subr.bf16.mxu1 %v9550_v24  ;;  %8433 = vmatpush3.bf16.msra.mxu0 %v9589_v19 }
 0xcdc   :  { %8434 = vmatprep.subr.bf16.mxu0 %v9590_v59 }
 0xcde   :  { %7192 = vmatpush1.bf16.msra.mxu1 %v9548_v1 }
 0xcdf   :  { %7193 = vmatprep.subr.bf16.mxu1 %v9553_v41  ;;  %8435 = vmatpush3.bf16.msra.mxu0 %v9591_v6 }
 0xce0   :  { %8436 = vmatprep.subr.bf16.mxu0 %v9592_v31 }
 0xce2   :  { %7194 = vmatpush1.bf16.msra.mxu1 %v9551_v7 }
 0xce3   :  { %7195 = vmatprep.subr.bf16.mxu1 %v9556_v11  ;;  %8437 = vmatpush3.bf16.msra.mxu0 %v9593_v63 }
 0xce6   :  { %7196 = vmatpush2.bf16.msra.mxu1 %v9554_v30 }
 0xce7   :  { %7197 = vmatprep.subr.bf16.mxu1 %v9559_v37 }
 0xcea   :  { %7198 = vmatpush2.bf16.msra.mxu1 %v9557_v14  ;;  %v6401_v14 = vrot.slane %v6388_v42, %v11580_v12 }
 0xceb   :  { %7199 = vmatprep.subr.bf16.mxu1 %v9562_v57 }
 0xcee   :  { %7200 = vmatpush2.bf16.msra.mxu1 %v9560_v54  ;;  %v6405_v54 = vrot.slane %v6388_v42, %v11582_v52 }
 0xcef   :  { %7201 = vmatprep.subr.bf16.mxu1 %v9565_v60 }
 0xcf2   :  { %7202 = vmatpush2.bf16.msra.mxu1 %v9563_v3 }
 0xcf3   :  { %7203 = vmatprep.subr.bf16.mxu1 %v9568_v17 }
 0xcf6   :  { %7204 = vmatpush2.bf16.msra.mxu1 %v9566_v58 }
 0xcf7   :  { %7205 = vmatprep.subr.bf16.mxu1 %v9571_v50 }
 0xcfa   :  { %7206 = vmatpush2.bf16.msra.mxu1 %v9569_v27 }
 0xcfb   :  { %7207 = vmatprep.subr.bf16.mxu1 %v9574_v44 }
 0xcfe   :  { %7208 = vmatpush2.bf16.msra.mxu1 %v9572_v22 }
 0xcff   :  { %7209 = vmatprep.subr.bf16.mxu1 %v9577_v15 }
 0xd02   :  { %7210 = vmatpush2.bf16.msra.mxu1 %v9575_v36 }
 0xd03   :  { %8444 = vmatprep.subr.bf16.mxu1 %v9594_v9 }
 0xd05   :  { %7212 = vmatmul.mubr.bf16.vlgmr.msra.gmra.mxu1 %v11430_v18  ;;  %v9606_v18 = vld [vmem:[#allocation14 + $0xc8] sm:$0xff]  }
 0xd06   :  { %8445 = vmatpush3.bf16.msra.mxu1 %v9595_v39 }
 0xd07   :  { %8446 = vmatprep.subr.bf16.mxu1 %v9596_v43  ;;  %v8389_v43 = vld [vmem:[%s11472_s17] ss:$0 sm:$0xff] }
 0xd0a   :  { %8447 = vmatpush3.bf16.msra.mxu1 %v9597_v49 }
 0xd0b   :  { %8448 = vmatprep.subr.bf16.mxu1 %v9598_v29 }
 0xd0e   :  { %8449 = vmatpush3.bf16.msra.mxu1 %v9599_v32 }
 0xd0f   :  { %8450 = vmatprep.subr.bf16.mxu1 %v9600_v23 }
 0xd12   :  { %8451 = vmatpush3.bf16.msra.mxu1 %v9601_v56 }
 0xd13   :  { %8452 = vmatprep.subr.bf16.mxu1 %v9602_v28 }
 0xd16   :  { %8453 = vmatpush3.bf16.msra.mxu1 %v9603_v2 }
 0xd17   :  { %8454 = vmatprep.subr.bf16.mxu1 %v9604_v45 }
 0xd1a   :  { %8455 = vmatpush3.bf16.msra.mxu1 %v9605_v38 }
 0xd1b   :  { %8456 = vmatprep.subr.bf16.mxu1 %v9606_v18 }
 0xd1e   :  { %8457 = vmatpush3.bf16.msra.mxu1 %v9607_v10 }
 0xd1f   :  { %8458 = vmatprep.subr.bf16.mxu1 %v9608_v0 }
 0xd22   :  { %8459 = vmatpush3.bf16.msra.mxu1 %v9609_v34 }
 0xd45   :  { %v7084_v25 = vpop.f32.mrf.mxu0 }
 0xd46   :  { %v7085_v5 = vadd.f32 %v7084_v25, %v6393_v16 }
 0xd47   :  { %v7086_v20 = vpop.f32.mrf.mxu0 }
 0xd48   :  { %v7087_v48 = vadd.f32 %v7086_v20, %v6397_v8 }
 0xd49   :  { %v7088_v40 = vpop.f32.mrf.mxu0 }
 0xd4a   :  { %v7089_v51 = vadd.f32 %v7088_v40, %v6393_v16 }
 0xd4b   :  { %v7090_v47 = vpop.f32.mrf.mxu0 }
 0xd4c   :  { %v7091_v13 = vadd.f32 %v7090_v47, %v6397_v8 }
 0xd85   :  { %v7127_v21 = vpop.f32.mrf.mxu1  ;;  %v7170_v46 = vpop.f32.mrf.mxu0 }
 0xd86   :  { %v7128_v62 = vadd.f32 %v7127_v21, %v7085_v5  ;;  %v7171_v58 = vadd.f32 %v7170_v46, %v6401_v14 }
 0xd87   :  { %v7129_v53 = vpop.f32.mrf.mxu1  ;;  %v7172_v30 = vpop.f32.mrf.mxu0 }
 0xd88   :  { %v7130_v1 = vadd.f32 %v7129_v53, %v7087_v48  ;;  %v7173_v27 = vadd.f32 %v7172_v30, %v6405_v54 }
 0xd89   :  { %v7131_v61 = vpop.f32.mrf.mxu1  ;;  %v7174_v37 = vpop.f32.mrf.mxu0 }
 0xd8a   :  { %v7132_v24 = vadd.f32 %v7131_v61, %v7089_v51  ;;  %v7175_v17 = vadd.f32 %v7174_v37, %v6401_v14 }
 0xd8b   :  { %v7133_v33 = vpop.f32.mrf.mxu1  ;;  %v7176_v60 = vpop.f32.mrf.mxu0 }
 0xd8c   :  { %v7134_v41 = vadd.f32 %v7133_v33, %v7091_v13  ;;  %v7222_v26 = vpack.c.bf16 %v7132_v24, %v7128_v62  ;;  %v7177_v44 = vadd.f32 %v7176_v60, %v6405_v54 }
 0xd8e   :  { %v7223_v7 = vpack.c.bf16 %v7134_v41, %v7130_v1  ;;  %v7226_v4 = vmax.bf16 %v11536_v35, %v7222_v26 }
 0xd90   :  { %v7227_v11 = vmax.bf16 %v11536_v35, %v7223_v7 }
 0xd92   :  { %7525 = vmatprep.mubr.bf16.mxu0 %v7227_v11 }
 0xd93   :  { %7526 = vmatmul.mubr.bf16.vlgmr.msra.gmra.mxu0 %v7226_v4 }
 0xdc5   :  { %v7213_v57 = vpop.f32.mrf.mxu1 }
 0xdc6   :  { %v7214_v15 = vadd.f32 %v7213_v57, %v7171_v58 }
 0xdc7   :  { %v7215_v3 = vpop.f32.mrf.mxu1 }
 0xdc8   :  { %v7216_v55 = vadd.f32 %v7215_v3, %v7173_v27 }
 0xdc9   :  { %v7217_v50 = vpop.f32.mrf.mxu1 }
 0xdca   :  { %v7218_v22 = vadd.f32 %v7217_v50, %v7175_v17 }
 0xdcb   :  { %v7219_v36 = vpop.f32.mrf.mxu1 }
 0xdcc   :  { %v7220_v19 = vadd.f32 %v7219_v36, %v7177_v44  ;;  %v7224_v59 = vpack.c.bf16 %v7218_v22, %v7214_v15 }
 0xdce   :  { %v7225_v6 = vpack.c.bf16 %v7220_v19, %v7216_v55  ;;  %v7228_v12 = vmax.bf16 %v11536_v35, %v7224_v59 }
 0xdd0   :  { %v7229_v31 = vmax.bf16 %v11536_v35, %v7225_v6 }
 0xdd2   :  { %7566 = vmatprep.mubr.bf16.mxu1 %v7229_v31 }
 0xdd3   :  { %7567 = vmatmul.mubr.bf16.vlgmr.msra.gmra.mxu1 %v7228_v12 }
 0xe53   :  { %v8438_v52 = vpop.f32.mrf.mxu0 }
 0xe55   :  { %v8439_v63 = vpop.f32.mrf.mxu0 }
 0xe56   :  { %v8440_v39 = vadd.f32 %v8439_v63, %v8438_v52 }
 0xe57   :  { %v8441_v9 = vpop.f32.mrf.mxu0 }
 0xe58   :  { %v7528_v23 = vadd.f32 %v8440_v39, %v8389_v43 }
 0xe59   :  { %v8442_v49 = vpop.f32.mrf.mxu0 }
 0xe5a   :  { %v8443_v56 = vadd.f32 %v8442_v49, %v8441_v9 }
 0xe5c   :  { %v7531_v35 = vadd.f32 %v8443_v56, %v8389_v43 }
 0xe93   :  { %v8460_v29 = vpop.f32.mrf.mxu1 }
 0xe95   :  { %v8461_v32 = vpop.f32.mrf.mxu1 }
 0xe96   :  { %v8462_v28 = vadd.f32 %v8461_v32, %v8460_v29 }
 0xe97   :  { %v8463_v2 = vpop.f32.mrf.mxu1 }
 0xe98   :  { %v7569_v45 = vadd.f32 %v8462_v28, %v7528_v23 }
 0xe99   :  { %v8464_v38 = vpop.f32.mrf.mxu1 }
 0xe9a   :  { %7575 = vst [vmem:[%s11473_s18] sm:$0xff] %v7569_v45  ;;  %v8465_v18 = vadd.f32 %v8464_v38, %v8463_v2 }
 0xe9c   :  { %v7572_v10 = vadd.f32 %v8465_v18, %v7531_v35 }
 0xe9e   :  { %7576 = vst [vmem:[%s11473_s18 + $0x8] sm:$0xff] %v7572_v10 }
 0xe9f   :  { %7581 = vsyncpa [#allocation4], 1 }
 0xea0   :  { %7582 = vsyncpa [#allocation6], 1 }
 0xea1   :  { %7583 = vsyncpa [#allocation9], 1 }
 0xea2   :  { %7584 = vsyncpa [#allocation12], 1 }
 0xea3   :  { %7585 = vsyncpa [#allocation15], 1 }

</bundles_post_ra>
